<compile_context>
chip_gen: v5e
topology: v5e:2x2
jax: 0.10.0
libtpu: 0.0.40
codegen_flags: <defaults>
</compile_context>

<pallas_src>
import jax
import jax.numpy as jnp
from jax.experimental import pallas as pl
from jax.experimental.pallas import tpu as pltpu

D_IN = 1024
D_OUT = 1024


def _pick_tn():
    """Out-feature tile width per TPU generation.

    v7x has 2 TensorCores/chip -> 2 parallel weight tiles (each TC streams half
    the bf16 weight). Single-TC v5e/v6e (and older): one full-width tile, since
    extra grid steps are pure overhead on this DMA-bound kernel.
    """
    try:
        kind = jax.devices()[0].device_kind.lower()
    except Exception:
        kind = ""
    return 512 if ("v7" in kind or "7x" in kind) else 1024


def _fused_linear_relu_sum_kernel(x_ref, wt_ref, b_ref, o_ref):
    # x_ref : [B, D_IN]   f32, resident across the grid (tiny, 32 KiB)
    # wt_ref: [D_IN, TN]  bf16, one streamed tile of the pre-transposed weight
    # b_ref : [1, TN]     f32 bias tile
    # o_ref : [8, 128]    f32 partial-sum block (lane-dense, unmasked store)
    B = x_ref.shape[0]
    tn = wt_ref.shape[1]

    x = x_ref[...].astype(wt_ref.dtype)                  # cheap bf16 cast of resident x
    # Canonical MXU matmul, f32 accumulation; no operand transposes needed.
    y = jnp.dot(x, wt_ref[...], preferred_element_type=jnp.float32)   # [B, TN]
    y = jnp.maximum(y + b_ref[...], 0.0)                 # bias + ReLU (dense vregs)

    # Total-preserving fold to an (8,128) block using only VPU adds on
    # layout-aligned static slices (no cross-lane reduce, no mask, no iota).
    blk = y[:, 0:128]
    for g in range(1, tn // 128):                        # fold lane groups
        blk = blk + y[:, g * 128:(g + 1) * 128]
    out = blk[0:8, :]
    for r in range(1, B // 8):                           # fold batch groups of 8
        out = out + blk[r * 8:(r + 1) * 8, :]
    o_ref[...] = out


def prepare_params(w, b):
    """One-time, amortized parameter prep (do this OUTSIDE the jitted call).

    torch Linear weight [out, in] f32 -> pre-transposed [in, out] bf16 so the
    kernel streams half the bytes and runs a transpose-free matmul. Bias kept
    f32 (exact), reshaped to (1, D_OUT) for a clean BlockSpec.
    """
    wt_bf16 = jnp.asarray(w).T.astype(jnp.bfloat16)      # [D_IN, D_OUT]
    b2 = jnp.asarray(b, jnp.float32).reshape(1, D_OUT)
    return wt_bf16, b2


def test_module_forward(x, wt_bf16, b2):
    """x: [B, 1024] f32; wt_bf16: [1024, 1024] bf16 (pre-transposed); b2: [1, 1024] f32."""
    B = x.shape[0]
    assert B % 8 == 0, "kernel assumes batch multiple of 8"
    # TODO(synk): support batch sizes that are not a multiple of 8 (pad + mask).

    tn = _pick_tn()
    num_tiles = D_OUT // tn

    cost = pl.CostEstimate(
        flops=2 * B * D_IN * D_OUT,
        transcendentals=0,
        bytes_accessed=wt_bf16.size * 2 + x.size * 4 + b2.size * 4
        + num_tiles * 8 * 128 * 4,
    )

    partials = pl.pallas_call(
        _fused_linear_relu_sum_kernel,
        out_shape=jax.ShapeDtypeStruct((num_tiles * 8, 128), jnp.float32),
        grid_spec=pltpu.PrefetchScalarGridSpec(
            num_scalar_prefetch=0,
            grid=(num_tiles,),
            in_specs=[
                pl.BlockSpec((B, D_IN), lambda j: (0, 0)),     # x: resident
                pl.BlockSpec((D_IN, tn), lambda j: (0, j)),    # weight: streamed bf16 tiles
                pl.BlockSpec((1, tn), lambda j: (0, j)),       # bias: matching tile
            ],
            out_specs=pl.BlockSpec((8, 128), lambda j: (j, 0)),
        ),
        compiler_params=pltpu.CompilerParams(
            dimension_semantics=("parallel",),                 # megacore split on v7x
        ),
        cost_estimate=cost,
    )(x, wt_bf16, b2)

    # Residual hoisted out of the kernel: sum(relu(xW^T+b)+x) = sum(relu(..)) + sum(x).
    # Both tiny reduces fuse into one small XLA epilogue.
    return (jnp.sum(partials) + jnp.sum(x),)


if __name__ == "__main__":
    key = jax.random.PRNGKey(0)
    kx, kw, kb = jax.random.split(key, 3)

    B = 8  # small batch; feature dims fixed at 1024 by Linear(1024, 1024)
    x = jax.random.normal(kx, (B, D_IN), dtype=jnp.float32)
    # Deterministic "Linear" params (torch.nn.Linear(1024, 1024) layout [out, in])
    bound = 1.0 / (D_IN ** 0.5)
    w = jax.random.uniform(kw, (D_OUT, D_IN), dtype=jnp.float32,
                           minval=-bound, maxval=bound)
    b = jax.random.uniform(kb, (D_OUT,), dtype=jnp.float32,
                           minval=-bound, maxval=bound)

    # Amortized, one-time weight prep (pre-transpose + bf16) outside the jitted call.
    wt_bf16, b2 = prepare_params(w, b)

    fwd = jax.jit(test_module_forward)
    (result,) = fwd(x, wt_bf16, b2)
    result = jax.block_until_ready(result)

    # Pure-JAX f32 reference check. Tolerance revisited for the bf16 weight /
    # activation stream (f32 accumulation): expected |err| ~ O(0.1-0.5) on a ~2e3 sum.
    ref = jnp.sum(jnp.maximum(x @ w.T + b, 0.0) + x)
    assert jnp.allclose(result, ref, rtol=2e-3, atol=1.0), (result, ref)

    print("KERNEL_OK")
</pallas_src>

<mosaic_0001>
module attributes {stable_mosaic.version = 11 : i64} {
  func.func @_fused_linear_relu_sum_kernel(%arg0: i32, %arg1: memref<8x1024xf32, #tpu.memory_space<vmem>>, %arg2: memref<1024x1024xbf16, #tpu.memory_space<vmem>>, %arg3: memref<1x1024xf32, #tpu.memory_space<vmem>>, %arg4: memref<8x128xf32, #tpu.memory_space<vmem>>) attributes {dimension_semantics = [#tpu.dimension_semantics<parallel>], iteration_bounds = array<i64: 1>, scalar_prefetch = 0 : i64, scratch_operands = 0 : i64, tpu.core_type = #tpu.core_type<tc>, window_params = [{pipeline_mode = #tpu.pipeline_mode<synchronous>, transform_indices = @transform_0, window_bounds = array<i64: 8, 1024>}, {transform_indices = @transform_1, window_bounds = array<i64: 1024, 1024>}, {transform_indices = @transform_2, window_bounds = array<i64: 1, 1024>}, {transform_indices = @transform_3, window_bounds = array<i64: 8, 128>}]} {
    %c0 = arith.constant 0 : index
    %c0_0 = arith.constant 0 : index
    %0 = vector.load %arg1[%c0, %c0_0] : memref<8x1024xf32, #tpu.memory_space<vmem>>, vector<8x1024xf32>
    %1 = arith.truncf %0 : vector<8x1024xf32> to vector<8x1024xbf16>
    %c0_1 = arith.constant 0 : index
    %c0_2 = arith.constant 0 : index
    %2 = vector.load %arg2[%c0_1, %c0_2] : memref<1024x1024xbf16, #tpu.memory_space<vmem>>, vector<1024x1024xbf16>
    %cst = arith.constant dense<0.000000e+00> : vector<8x1024xf32>
    %3 = tpu.matmul %1, %2, %cst {dimension_numbers = #tpu.dot_dimension_numbers<[1], [0], [0], [1], [0, 0, 1, 1], [], []>} : vector<8x1024xbf16>, vector<1024x1024xbf16>, vector<8x1024xf32> -> vector<8x1024xf32>
    %c0_3 = arith.constant 0 : index
    %c0_4 = arith.constant 0 : index
    %4 = vector.load %arg3[%c0_3, %c0_4] : memref<1x1024xf32, #tpu.memory_space<vmem>>, vector<1x1024xf32>
    %5 = vector.broadcast %4 : vector<1x1024xf32> to vector<8x1024xf32>
    %6 = arith.addf %3, %5 : vector<8x1024xf32>
    %cst_5 = arith.constant 0.000000e+00 : f32
    %7 = vector.broadcast %cst_5 : f32 to vector<8x1024xf32>
    %8 = arith.maximumf %6, %7 : vector<8x1024xf32>
    %9 = vector.extract_strided_slice %8 {offsets = [0, 0], sizes = [8, 128], strides = [1, 1]} : vector<8x1024xf32> to vector<8x128xf32>
    %10 = vector.extract_strided_slice %8 {offsets = [0, 128], sizes = [8, 128], strides = [1, 1]} : vector<8x1024xf32> to vector<8x128xf32>
    %11 = arith.addf %9, %10 : vector<8x128xf32>
    %12 = vector.extract_strided_slice %8 {offsets = [0, 256], sizes = [8, 128], strides = [1, 1]} : vector<8x1024xf32> to vector<8x128xf32>
    %13 = arith.addf %11, %12 : vector<8x128xf32>
    %14 = vector.extract_strided_slice %8 {offsets = [0, 384], sizes = [8, 128], strides = [1, 1]} : vector<8x1024xf32> to vector<8x128xf32>
    %15 = arith.addf %13, %14 : vector<8x128xf32>
    %16 = vector.extract_strided_slice %8 {offsets = [0, 512], sizes = [8, 128], strides = [1, 1]} : vector<8x1024xf32> to vector<8x128xf32>
    %17 = arith.addf %15, %16 : vector<8x128xf32>
    %18 = vector.extract_strided_slice %8 {offsets = [0, 640], sizes = [8, 128], strides = [1, 1]} : vector<8x1024xf32> to vector<8x128xf32>
    %19 = arith.addf %17, %18 : vector<8x128xf32>
    %20 = vector.extract_strided_slice %8 {offsets = [0, 768], sizes = [8, 128], strides = [1, 1]} : vector<8x1024xf32> to vector<8x128xf32>
    %21 = arith.addf %19, %20 : vector<8x128xf32>
    %22 = vector.extract_strided_slice %8 {offsets = [0, 896], sizes = [8, 128], strides = [1, 1]} : vector<8x1024xf32> to vector<8x128xf32>
    %23 = arith.addf %21, %22 : vector<8x128xf32>
    %c0_6 = arith.constant 0 : index
    %c0_7 = arith.constant 0 : index
    %24 = vector.load %arg4[%c0_6, %c0_7] : memref<8x128xf32, #tpu.memory_space<vmem>>, vector<8x128xf32>
    tpu.vector_store %arg4[%c0_6, %c0_7], %23 {strides = array<i32>} : memref<8x128xf32, #tpu.memory_space<vmem>>, vector<8x128xf32>,
    return
  }
  func.func @transform_0(%arg0: i32) -> (i32, i32) {
    %c0_i32 = arith.constant 0 : i32
    %c0_i32_0 = arith.constant 0 : i32
    %c0_i32_1 = arith.constant 0 : i32
    return %c0_i32, %c0_i32_0 : i32, i32
  }
  func.func @transform_1(%arg0: i32) -> (i32, i32) {
    %c0_i32 = arith.constant 0 : i32
    %c0_i32_0 = arith.constant 0 : i32
    return %c0_i32, %arg0 : i32, i32
  }
  func.func @transform_2(%arg0: i32) -> (i32, i32) {
    %c0_i32 = arith.constant 0 : i32
    %c0_i32_0 = arith.constant 0 : i32
    return %c0_i32, %arg0 : i32, i32
  }
  func.func @transform_3(%arg0: i32) -> (i32, i32) {
    %c0_i32 = arith.constant 0 : i32
    %c0_i32_0 = arith.constant 0 : i32
    return %arg0, %c0_i32 : i32, i32
  }
}

</mosaic_0001>

<bundles_post_ra>
// kernel: test_module_forward.1
= control target key start
LH: loop header
LB: loop body
LE: loop exit
PB: predicated region body
PF: predicated region fallthrough
CT: control target
= control target key end

     0   :  { %8 = vsyncpa [#allocation3], 0  ;;  %s6821_s0 = inlined_call_operand.hbm [shape: f32[8,1024], index: 0, kind: input, shape index: {}]   ;;  %s6822_s1 = inlined_call_operand.hbm [shape: bf16[1024,1024], index: 1, kind: input, shape index: {}]   ;;  %s6823_s2 = inlined_call_operand.hbm [shape: f32[1,1024], index: 2, kind: input, shape index: {}]   ;;  %s6824_s3 = inlined_call_operand.vmem [shape: f32[8,128], index: 3, kind: output, shape index: {}]  }
   0x1   :  { %9 = vsyncpa [#allocation5], 0  ;;  %s25_s14 = sshll.u32 %s6822_s1, 4  ;;  %s6660_s15 = smov [#allocation4]   ;;  %s26_s14 = int_to_ptr.hbm [resolvable:$true] %s25_s14 }
   0x2   :  { %s27_s16 = sshll.u32 %s6660_s15, 4  ;;  %s15_s19 = sshll.u32 %s6821_s0, 4  ;;  %s28_s16 = int_to_ptr.vmem [resolvable:$true] %s27_s16  ;;  %s16_s19 = int_to_ptr.hbm [resolvable:$true] %s15_s19 }
   0x3   :  { %s6661_s20 = smov 512   ;;  %s6662_s21 = smov 32  }
   0x4   :  { %33 = dma.hbm_to_vmem [thread:$0]  %s26_s14, 65536, %s28_s16, [#allocation5], %s6661_s20, %s6661_s20, %s6662_s21  }
   0x5   :  { %s6663_s22 = smov [#allocation2]   ;;  %s39_s26 = sshll.u32 %s6823_s2, 4  ;;  %s40_s26 = int_to_ptr.hbm [resolvable:$true] %s39_s26 }
   0x6   :  { %s17_s23 = sshll.u32 %s6663_s22, 4  ;;  %s6664_s1 = smov [#allocation6]   ;;  %s18_s23 = int_to_ptr.vmem [resolvable:$true] %s17_s23 }
   0x7   :  { %20 = dma.hbm_to_vmem [thread:$0]  %s16_s19, 1024, %s18_s23, [#allocation3]  }
   0x8   :  { %s41_s27 = sshll.u32 %s6664_s1, 4  ;;  %s42_s27 = int_to_ptr.vmem [resolvable:$true] %s41_s27 }
   0x9   :  { %44 = dma.hbm_to_vmem [thread:$0]  %s40_s26, 128, %s42_s27, [#allocation5]  }
   0xa   :  { %6656 = dma.done.wait [#allocation3], 1024  }
   0xb   :  { %6657 = vsyncadd [#allocation3], 4294966272 }
   0xc   :  { %6658 = dma.done.wait [#allocation5], 65664  }
   0xd   :  { %6659 = vsyncadd [#allocation5], 4294901632  ;;  %v4243_v0 = vld [vmem:[#allocation4 + $0x1c0] sm:$0xf] }
   0xe   :  { %v6125_v1 = vld [vmem:[#allocation4 + $0x1dc] sm:$0xf0] }
   0xf   :  { %v4499_v2 = vld [vmem:[#allocation4 + $0x3c0] sm:$0xf]  ;;  %v4244_v3 = vor.u32 %v6125_v1, %v4243_v0 }
  0x10   :  { %v6189_v4 = vld [vmem:[#allocation4 + $0x3dc] sm:$0xf0] }
  0x11   :  { %v4755_v5 = vld [vmem:[#allocation4 + $0x5c0] sm:$0xf]  ;;  %v4500_v7 = vor.u32 %v6189_v4, %v4499_v2  ;;  %3163 = vmatpush.bf16.msra.mxu0 %v4244_v3 }
  0x12   :  { %v6253_v6 = vld [vmem:[#allocation4 + $0x5dc] sm:$0xf0] }
  0x13   :  { %v4756_v8 = vor.u32 %v6253_v6, %v4755_v5  ;;  %v5011_v9 = vld [vmem:[#allocation4 + $0x7c0] sm:$0xf]  ;;  %3176 = vmatpush.bf16.msra.mxu1 %v4500_v7 }
  0x14   :  { %v6317_v10 = vld [vmem:[#allocation4 + $0x7dc] sm:$0xf0] }
  0x15   :  { %v4211_v11 = vld [vmem:[#allocation4 + $0x180] sm:$0xf]  ;;  %v5012_v12 = vor.u32 %v6317_v10, %v5011_v9  ;;  %3189 = vmatpush.bf16.msra.mxu2 %v4756_v8 }
  0x16   :  { %v6117_v13 = vld [vmem:[#allocation4 + $0x19c] sm:$0xf0] }
  0x17   :  { %v4467_v14 = vld [vmem:[#allocation4 + $0x380] sm:$0xf]  ;;  %v4212_v16 = vor.u32 %v6117_v13, %v4211_v11  ;;  %3202 = vmatpush.bf16.msra.mxu3 %v5012_v12 }
  0x18   :  { %v6181_v15 = vld [vmem:[#allocation4 + $0x39c] sm:$0xf0] }
  0x19   :  { %v4468_v17 = vor.u32 %v6181_v15, %v4467_v14  ;;  %v4723_v18 = vld [vmem:[#allocation4 + $0x580] sm:$0xf]  ;;  %3164 = vmatpush.bf16.msra.mxu0 %v4212_v16 }
  0x1a   :  { %v6245_v19 = vld [vmem:[#allocation4 + $0x59c] sm:$0xf0] }
  0x1b   :  { %v4979_v20 = vld [vmem:[#allocation4 + $0x780] sm:$0xf]  ;;  %v4724_v21 = vor.u32 %v6245_v19, %v4723_v18  ;;  %3177 = vmatpush.bf16.msra.mxu1 %v4468_v17 }
  0x1c   :  { %v6309_v22 = vld [vmem:[#allocation4 + $0x79c] sm:$0xf0] }
  0x1d   :  { %v4179_v23 = vld [vmem:[#allocation4 + $0x140] sm:$0xf]  ;;  %v4980_v25 = vor.u32 %v6309_v22, %v4979_v20  ;;  %3190 = vmatpush.bf16.msra.mxu2 %v4724_v21 }
  0x1e   :  { %v6109_v24 = vld [vmem:[#allocation4 + $0x15c] sm:$0xf0] }
  0x1f   :  { %v4435_v26 = vld [vmem:[#allocation4 + $0x340] sm:$0xf]  ;;  %v4180_v29 = vor.u32 %v6109_v24, %v4179_v23  ;;  %3203 = vmatpush.bf16.msra.mxu3 %v4980_v25 }
  0x20   :  { %v6173_v27 = vld [vmem:[#allocation4 + $0x35c] sm:$0xf0] }
  0x21   :  { %v4691_v28 = vld [vmem:[#allocation4 + $0x540] sm:$0xf]  ;;  %v4436_v33 = vor.u32 %v6173_v27, %v4435_v26  ;;  %3165 = vmatpush.bf16.msra.mxu0 %v4180_v29 }
  0x22   :  { %v6237_v30 = vld [vmem:[#allocation4 + $0x55c] sm:$0xf0] }
  0x23   :  { %v4947_v31 = vld [vmem:[#allocation4 + $0x740] sm:$0xf]  ;;  %v4692_v34 = vor.u32 %v6237_v30, %v4691_v28  ;;  %3178 = vmatpush.bf16.msra.mxu1 %v4436_v33 }
  0x24   :  { %v6301_v32 = vld [vmem:[#allocation4 + $0x75c] sm:$0xf0] }
  0x25   :  { %v4147_v35 = vld [vmem:[#allocation4 + $0x100] sm:$0xf]  ;;  %v4948_v38 = vor.u32 %v6301_v32, %v4947_v31  ;;  %3191 = vmatpush.bf16.msra.mxu2 %v4692_v34 }
  0x26   :  { %v6101_v36 = vld [vmem:[#allocation4 + $0x11c] sm:$0xf0] }
  0x27   :  { %v4403_v37 = vld [vmem:[#allocation4 + $0x300] sm:$0xf]  ;;  %v4148_v44 = vor.u32 %v6101_v36, %v4147_v35  ;;  %3204 = vmatpush.bf16.msra.mxu3 %v4948_v38 }
  0x28   :  { %v6165_v39 = vld [vmem:[#allocation4 + $0x31c] sm:$0xf0] }
  0x29   :  { %v4659_v40 = vld [vmem:[#allocation4 + $0x500] sm:$0xf]  ;;  %v4404_v45 = vor.u32 %v6165_v39, %v4403_v37  ;;  %3166 = vmatpush.bf16.msra.mxu0 %v4148_v44 }
  0x2a   :  { %v6229_v41 = vld [vmem:[#allocation4 + $0x51c] sm:$0xf0] }
  0x2b   :  { %v4915_v42 = vld [vmem:[#allocation4 + $0x700] sm:$0xf]  ;;  %v4660_v46 = vor.u32 %v6229_v41, %v4659_v40  ;;  %3179 = vmatpush.bf16.msra.mxu1 %v4404_v45 }
  0x2c   :  { %v6293_v43 = vld [vmem:[#allocation4 + $0x71c] sm:$0xf0] }
  0x2d   :  { %v4115_v47 = vld [vmem:[#allocation4 + $0xc0] sm:$0xf]  ;;  %v4916_v50 = vor.u32 %v6293_v43, %v4915_v42  ;;  %3192 = vmatpush.bf16.msra.mxu2 %v4660_v46 }
  0x2e   :  { %v6093_v48 = vld [vmem:[#allocation4 + $0xdc] sm:$0xf0] }
  0x2f   :  { %v4371_v49 = vld [vmem:[#allocation4 + $0x2c0] sm:$0xf]  ;;  %v4116_v56 = vor.u32 %v6093_v48, %v4115_v47  ;;  %3205 = vmatpush.bf16.msra.mxu3 %v4916_v50 }
  0x30   :  { %v6157_v51 = vld [vmem:[#allocation4 + $0x2dc] sm:$0xf0] }
  0x31   :  { %v4627_v52 = vld [vmem:[#allocation4 + $0x4c0] sm:$0xf]  ;;  %v4372_v57 = vor.u32 %v6157_v51, %v4371_v49  ;;  %3167 = vmatpush.bf16.msra.mxu0 %v4116_v56 }
  0x32   :  { %v6221_v53 = vld [vmem:[#allocation4 + $0x4dc] sm:$0xf0] }
  0x33   :  { %v4883_v54 = vld [vmem:[#allocation4 + $0x6c0] sm:$0xf]  ;;  %v4628_v58 = vor.u32 %v6221_v53, %v4627_v52  ;;  %3180 = vmatpush.bf16.msra.mxu1 %v4372_v57 }
  0x34   :  { %v6285_v55 = vld [vmem:[#allocation4 + $0x6dc] sm:$0xf0] }
  0x35   :  { %v4083_v59 = vld [vmem:[#allocation4 + $0x80] sm:$0xf]  ;;  %v4884_v62 = vor.u32 %v6285_v55, %v4883_v54  ;;  %3193 = vmatpush.bf16.msra.mxu2 %v4628_v58  ;;  %v59_v58 = vld [vmem:[#allocation2 + $0x10] sm:$0xff] }
  0x36   :  { %v6085_v60 = vld [vmem:[#allocation4 + $0x9c] sm:$0xf0] }
  0x37   :  { %v4339_v61 = vld [vmem:[#allocation4 + $0x280] sm:$0xf]  ;;  %v4084_v4 = vor.u32 %v6085_v60, %v4083_v59  ;;  %3206 = vmatpush.bf16.msra.mxu3 %v4884_v62 }
  0x38   :  { %v6149_v63 = vld [vmem:[#allocation4 + $0x29c] sm:$0xf0] }
  0x39   :  { %v4595_v0 = vld [vmem:[#allocation4 + $0x480] sm:$0xf]  ;;  %v4340_v5 = vor.u32 %v6149_v63, %v4339_v61  ;;  %3168 = vmatpush.bf16.msra.mxu0 %v4084_v4  ;;  %v6694_v63 = vpack.c.bf16 %v59_v58, %v59_v58 }
  0x3a   :  { %v6213_v1 = vld [vmem:[#allocation4 + $0x49c] sm:$0xf0] }
  0x3b   :  { %v4851_v2 = vld [vmem:[#allocation4 + $0x680] sm:$0xf]  ;;  %v4596_v6 = vor.u32 %v6213_v1, %v4595_v0  ;;  %3181 = vmatpush.bf16.msra.mxu1 %v4340_v5 }
  0x3c   :  { %v6277_v3 = vld [vmem:[#allocation4 + $0x69c] sm:$0xf0] }
  0x3d   :  { %v4051_v7 = vld [vmem:[#allocation4 + $0x40] sm:$0xf]  ;;  %v4852_v10 = vor.u32 %v6277_v3, %v4851_v2  ;;  %3194 = vmatpush.bf16.msra.mxu2 %v4596_v6 }
  0x3e   :  { %v6077_v8 = vld [vmem:[#allocation4 + $0x5c] sm:$0xf0] }
  0x3f   :  { %v4307_v9 = vld [vmem:[#allocation4 + $0x240] sm:$0xf]  ;;  %v4052_v16 = vor.u32 %v6077_v8, %v4051_v7  ;;  %3207 = vmatpush.bf16.msra.mxu3 %v4852_v10  ;;  %v60_v10 = vld [vmem:[#allocation2 + $0x18] sm:$0xff] }
  0x40   :  { %v6141_v11 = vld [vmem:[#allocation4 + $0x25c] sm:$0xf0] }
  0x41   :  { %v4563_v12 = vld [vmem:[#allocation4 + $0x440] sm:$0xf]  ;;  %v4308_v19 = vor.u32 %v6141_v11, %v4307_v9  ;;  %3169 = vmatpush.bf16.msra.mxu0 %v4052_v16  ;;  %v58_v11 = vld [vmem:[#allocation2 + $0x8] sm:$0xff]  ;;  %v6699_v16 = vpack.c.bf16 %v60_v10, %v60_v10  ;;  %v4501_v10 = vld [vmem:[#allocation4 + $0x3e0] sm:$0xf0] }
  0x42   :  { %v6205_v13 = vld [vmem:[#allocation4 + $0x45c] sm:$0xf0] }
  0x43   :  { %v4819_v14 = vld [vmem:[#allocation4 + $0x640] sm:$0xf]  ;;  %v4564_v20 = vor.u32 %v6205_v13, %v4563_v12  ;;  %3182 = vmatpush.bf16.msra.mxu1 %v4308_v19 }
  0x44   :  { %v6269_v15 = vld [vmem:[#allocation4 + $0x65c] sm:$0xf0] }
  0x45   :  { %v4019_v17 = vld [vmem:[#allocation4] sm:$0xf]  ;;  %v4820_v24 = vor.u32 %v6269_v15, %v4819_v14  ;;  %3195 = vmatpush.bf16.msra.mxu2 %v4564_v20 }
  0x46   :  { %v6069_v18 = vld [vmem:[#allocation4 + $0x1c] sm:$0xf0] }
  0x47   :  { %v4275_v21 = vld [vmem:[#allocation4 + $0x200] sm:$0xf]  ;;  %v4020_v31 = vor.u32 %v6069_v18, %v4019_v17  ;;  %3208 = vmatpush.bf16.msra.mxu3 %v4820_v24  ;;  %v6701_v17 = vpack.c.bf16 %v58_v11, %v58_v11  ;;  %v6249_v11 = vld [vmem:[#allocation4 + $0x5c4] sm:$0xf] }
  0x48   :  { %v6133_v22 = vld [vmem:[#allocation4 + $0x21c] sm:$0xf0] }
  0x49   :  { %v4531_v23 = vld [vmem:[#allocation4 + $0x400] sm:$0xf]  ;;  %v4276_v35 = vor.u32 %v6133_v22, %v4275_v21  ;;  %3170 = vmatpush.bf16.msra.mxu0 %v4020_v31 }
  0x4a   :  { %v6197_v25 = vld [vmem:[#allocation4 + $0x41c] sm:$0xf0] }
  0x4b   :  { %v4787_v26 = vld [vmem:[#allocation4 + $0x600] sm:$0xf]  ;;  %v4532_v36 = vor.u32 %v6197_v25, %v4531_v23  ;;  %3183 = vmatpush.bf16.msra.mxu1 %v4276_v35 }
  0x4c   :  { %v6261_v27 = vld [vmem:[#allocation4 + $0x61c] sm:$0xf0] }
  0x4d   :  { %v5267_v28 = vld [vmem:[#allocation4 + $0x9c0] sm:$0xf]  ;;  %v4788_v39 = vor.u32 %v6261_v27, %v4787_v26  ;;  %3196 = vmatpush.bf16.msra.mxu2 %v4532_v36 }
  0x4e   :  { %v6381_v29 = vld [vmem:[#allocation4 + $0x9dc] sm:$0xf0]  ;;  %3184 = vmatmul.bf16.vlgmr.msra.gmra.mxu1 %v6701_v17 }
  0x4f   :  { %v5523_v30 = vld [vmem:[#allocation4 + $0xbc0] sm:$0xf]  ;;  %v5268_v40 = vor.u32 %v6381_v29, %v5267_v28  ;;  %3209 = vmatpush.bf16.msra.mxu3 %v4788_v39 }
  0x50   :  { %v6445_v32 = vld [vmem:[#allocation4 + $0xbdc] sm:$0xf0]  ;;  %3197 = vmatmul.bf16.vlgmr.msra.gmra.mxu2 %v6694_v63 }
  0x51   :  { %v5779_v33 = vld [vmem:[#allocation4 + $0xdc0] sm:$0xf]  ;;  %v5524_v41 = vor.u32 %v6445_v32, %v5523_v30  ;;  %3215 = vmatpush.bf16.msrb.mxu0 %v5268_v40 }
  0x52   :  { %v6509_v34 = vld [vmem:[#allocation4 + $0xddc] sm:$0xf0]  ;;  %3210 = vmatmul.bf16.vlgmr.msra.gmra.mxu3 %v6699_v16 }
  0x53   :  { %v6035_v37 = vld [vmem:[#allocation4 + $0xfc0] sm:$0xf]  ;;  %v5780_v42 = vor.u32 %v6509_v34, %v5779_v33  ;;  %3228 = vmatpush.bf16.msrb.mxu1 %v5524_v41 }
  0x54   :  { %v6573_v38 = vld [vmem:[#allocation4 + $0xfdc] sm:$0xf0] }
  0x55   :  { %v5235_v43 = vld [vmem:[#allocation4 + $0x980] sm:$0xf]  ;;  %v6036_v46 = vor.u32 %v6573_v38, %v6035_v37  ;;  %3241 = vmatpush.bf16.msrb.mxu2 %v5780_v42 }
  0x56   :  { %v6373_v44 = vld [vmem:[#allocation4 + $0x99c] sm:$0xf0] }
  0x57   :  { %v5491_v45 = vld [vmem:[#allocation4 + $0xb80] sm:$0xf]  ;;  %v5236_v52 = vor.u32 %v6373_v44, %v5235_v43  ;;  %3254 = vmatpush.bf16.msrb.mxu3 %v6036_v46 }
  0x58   :  { %v6437_v47 = vld [vmem:[#allocation4 + $0xb9c] sm:$0xf0] }
  0x59   :  { %v5747_v48 = vld [vmem:[#allocation4 + $0xd80] sm:$0xf]  ;;  %v5492_v54 = vor.u32 %v6437_v47, %v5491_v45  ;;  %3216 = vmatpush.bf16.msrb.mxu0 %v5236_v52 }
  0x5a   :  { %v6501_v49 = vld [vmem:[#allocation4 + $0xd9c] sm:$0xf0] }
  0x5b   :  { %v6003_v50 = vld [vmem:[#allocation4 + $0xf80] sm:$0xf]  ;;  %v5748_v55 = vor.u32 %v6501_v49, %v5747_v48  ;;  %3229 = vmatpush.bf16.msrb.mxu1 %v5492_v54 }
  0x5c   :  { %v6565_v51 = vld [vmem:[#allocation4 + $0xf9c] sm:$0xf0] }
  0x5d   :  { %v5203_v53 = vld [vmem:[#allocation4 + $0x940] sm:$0xf]  ;;  %v6004_v59 = vor.u32 %v6565_v51, %v6003_v50  ;;  %3242 = vmatpush.bf16.msrb.mxu2 %v5748_v55 }
  0x5e   :  { %v6365_v56 = vld [vmem:[#allocation4 + $0x95c] sm:$0xf0] }
  0x5f   :  { %v5459_v57 = vld [vmem:[#allocation4 + $0xb40] sm:$0xf]  ;;  %v5204_v2 = vor.u32 %v6365_v56, %v5203_v53  ;;  %3255 = vmatpush.bf16.msrb.mxu3 %v6004_v59 }
  0x60   :  { %v6429_v60 = vld [vmem:[#allocation4 + $0xb5c] sm:$0xf0] }
  0x61   :  { %v5715_v61 = vld [vmem:[#allocation4 + $0xd40] sm:$0xf]  ;;  %v5460_v6 = vor.u32 %v6429_v60, %v5459_v57  ;;  %3217 = vmatpush.bf16.msrb.mxu0 %v5204_v2 }
  0x62   :  { %v6493_v62 = vld [vmem:[#allocation4 + $0xd5c] sm:$0xf0] }
  0x63   :  { %v5971_v0 = vld [vmem:[#allocation4 + $0xf40] sm:$0xf]  ;;  %v5716_v7 = vor.u32 %v6493_v62, %v5715_v61  ;;  %3230 = vmatpush.bf16.msrb.mxu1 %v5460_v6  ;;  %v4245_v6 = vld [vmem:[#allocation4 + $0x1e0] sm:$0xf0] }
  0x64   :  { %v6557_v1 = vld [vmem:[#allocation4 + $0xf5c] sm:$0xf0] }
  0x65   :  { %v5171_v3 = vld [vmem:[#allocation4 + $0x900] sm:$0xf]  ;;  %v5972_v12 = vor.u32 %v6557_v1, %v5971_v0  ;;  %3243 = vmatpush.bf16.msrb.mxu2 %v5716_v7  ;;  %v6185_v7 = vld [vmem:[#allocation4 + $0x3c4] sm:$0xf] }
  0x66   :  { %v6357_v4 = vld [vmem:[#allocation4 + $0x91c] sm:$0xf0] }
  0x67   :  { %v57_v5 = vld [vmem:[#allocation2] sm:$0xff]  ;;  %v5172_v20 = vor.u32 %v6357_v4, %v5171_v3  ;;  %3256 = vmatpush.bf16.msrb.mxu3 %v5972_v12 }
  0x68   :  { %v5427_v8 = vld [vmem:[#allocation4 + $0xb00] sm:$0xf]  ;;  %v6697_v9 = vpack.c.bf16 %v57_v5, %v57_v5  ;;  %v6121_v5 = vld [vmem:[#allocation4 + $0x1c4] sm:$0xf] }
  0x69   :  { %v6421_v13 = vld [vmem:[#allocation4 + $0xb1c] sm:$0xf0]  ;;  %3218 = vmatpush.bf16.msrb.mxu0 %v5172_v20  ;;  %v4757_v12 = vld [vmem:[#allocation4 + $0x5e0] sm:$0xf0] }
  0x6a   :  { %v5683_v14 = vld [vmem:[#allocation4 + $0xd00] sm:$0xf]  ;;  %3171 = vmatmul.bf16.vlgmr.msra.gmra.mxu0 %v6697_v9  ;;  %v5428_v21 = vor.u32 %v6421_v13, %v5427_v8 }
  0x6b   :  { %v6485_v15 = vld [vmem:[#allocation4 + $0xd1c] sm:$0xf0] }
  0x6c   :  { %v5939_v18 = vld [vmem:[#allocation4 + $0xf00] sm:$0xf]  ;;  %v5684_v22 = vor.u32 %v6485_v15, %v5683_v14  ;;  %3231 = vmatpush.bf16.msrb.mxu1 %v5428_v21  ;;  %v6313_v15 = vld [vmem:[#allocation4 + $0x7c4] sm:$0xf]  ;;  %v4248_v21 = vor.u32 %v6121_v5, %v4245_v6 }
  0x6d   :  { %v6549_v19 = vld [vmem:[#allocation4 + $0xf1c] sm:$0xf0]  ;;  %v4117_v5 = vld [vmem:[#allocation4 + $0xe0] sm:$0xf0] }
  0x6e   :  { %v5139_v23 = vld [vmem:[#allocation4 + $0x8c0] sm:$0xf]  ;;  %v5940_v26 = vor.u32 %v6549_v19, %v5939_v18  ;;  %3244 = vmatpush.bf16.msrb.mxu2 %v5684_v22  ;;  %v5013_v18 = vld [vmem:[#allocation4 + $0x7e0] sm:$0xf0]  ;;  %v63_v19 = vld [vmem:[#allocation2 + $0x30] sm:$0xff] }
  0x6f   :  { %v6349_v24 = vld [vmem:[#allocation4 + $0x8dc] sm:$0xf0]  ;;  %v6113_v22 = vld [vmem:[#allocation4 + $0x184] sm:$0xf] }
  0x70   :  { %v5395_v25 = vld [vmem:[#allocation4 + $0xac0] sm:$0xf]  ;;  %v5140_v32 = vor.u32 %v6349_v24, %v5139_v23  ;;  %3257 = vmatpush.bf16.msrb.mxu3 %v5940_v26  ;;  %v64_v24 = vld [vmem:[#allocation2 + $0x38] sm:$0xff]  ;;  %v4760_v26 = vor.u32 %v6249_v11, %v4757_v12  ;;  %v6153_v6 = vld [vmem:[#allocation4 + $0x2c4] sm:$0xf] }
  0x71   :  { %v6413_v27 = vld [vmem:[#allocation4 + $0xadc] sm:$0xf0]  ;;  %v4629_v11 = vld [vmem:[#allocation4 + $0x4e0] sm:$0xf0] }
  0x72   :  { %v5651_v28 = vld [vmem:[#allocation4 + $0xcc0] sm:$0xf]  ;;  %v5396_v33 = vor.u32 %v6413_v27, %v5395_v25  ;;  %3219 = vmatpush.bf16.msrb.mxu0 %v5140_v32  ;;  %v4504_v25 = vor.u32 %v6185_v7, %v4501_v10  ;;  %v4213_v27 = vld [vmem:[#allocation4 + $0x1a0] sm:$0xf0] }
  0x73   :  { %v6477_v29 = vld [vmem:[#allocation4 + $0xcdc] sm:$0xf0]  ;;  %v6241_v32 = vld [vmem:[#allocation4 + $0x584] sm:$0xf] }
  0x74   :  { %v5907_v30 = vld [vmem:[#allocation4 + $0xec0] sm:$0xf]  ;;  %v5652_v34 = vor.u32 %v6477_v29, %v5651_v28  ;;  %3232 = vmatpush.bf16.msrb.mxu1 %v5396_v33  ;;  %v6177_v28 = vld [vmem:[#allocation4 + $0x384] sm:$0xf]  ;;  %v62_v29 = vld [vmem:[#allocation2 + $0x28] sm:$0xff] }
  0x75   :  { %v6541_v31 = vld [vmem:[#allocation4 + $0xedc] sm:$0xf0]  ;;  %v4725_v33 = vld [vmem:[#allocation4 + $0x5a0] sm:$0xf0] }
  0x76   :  { %v5107_v35 = vld [vmem:[#allocation4 + $0x880] sm:$0xf]  ;;  %v5908_v38 = vor.u32 %v6541_v31, %v5907_v30  ;;  %3245 = vmatpush.bf16.msrb.mxu2 %v5652_v34  ;;  %v5016_v30 = vor.u32 %v6313_v15, %v5013_v18  ;;  %v4469_v31 = vld [vmem:[#allocation4 + $0x3a0] sm:$0xf0]  ;;  %v6706_v34 = vpack.c.bf16 %v63_v19, %v63_v19 }
  0x77   :  { %v6341_v36 = vld [vmem:[#allocation4 + $0x89c] sm:$0xf0]  ;;  %v6217_v10 = vld [vmem:[#allocation4 + $0x4c4] sm:$0xf] }
  0x78   :  { %v5363_v37 = vld [vmem:[#allocation4 + $0xa80] sm:$0xf]  ;;  %v5108_v44 = vor.u32 %v6341_v36, %v5107_v35  ;;  %3258 = vmatpush.bf16.msrb.mxu3 %v5908_v38  ;;  %v6305_v35 = vld [vmem:[#allocation4 + $0x784] sm:$0xf]  ;;  %v6710_v38 = vpack.c.bf16 %v64_v24, %v64_v24  ;;  %v4632_v18 = vor.u32 %v6217_v10, %v4629_v11 }
  0x79   :  { %v6405_v39 = vld [vmem:[#allocation4 + $0xa9c] sm:$0xf0]  ;;  %v4981_v36 = vld [vmem:[#allocation4 + $0x7a0] sm:$0xf0] }
  0x7a   :  { %v5619_v40 = vld [vmem:[#allocation4 + $0xc80] sm:$0xf]  ;;  %v5364_v45 = vor.u32 %v6405_v39, %v5363_v37  ;;  %3220 = vmatpush.bf16.msrb.mxu0 %v5108_v44  ;;  %v4216_v39 = vor.u32 %v6113_v22, %v4213_v27  ;;  %v4181_v44 = vld [vmem:[#allocation4 + $0x160] sm:$0xf0] }
  0x7b   :  { %v6469_v41 = vld [vmem:[#allocation4 + $0xc9c] sm:$0xf0]  ;;  %v6281_v12 = vld [vmem:[#allocation4 + $0x6c4] sm:$0xf] }
  0x7c   :  { %v5875_v42 = vld [vmem:[#allocation4 + $0xe80] sm:$0xf]  ;;  %v5620_v46 = vor.u32 %v6469_v41, %v5619_v40  ;;  %3233 = vmatpush.bf16.msrb.mxu1 %v5364_v45  ;;  %v6712_v40 = vpack.c.bf16 %v62_v29, %v62_v29  ;;  %v4472_v41 = vor.u32 %v6177_v28, %v4469_v31  ;;  %v6169_v45 = vld [vmem:[#allocation4 + $0x344] sm:$0xf] }
  0x7d   :  { %v6533_v43 = vld [vmem:[#allocation4 + $0xe9c] sm:$0xf0]  ;;  %v6081_v19 = vld [vmem:[#allocation4 + $0x84] sm:$0xf] }
  0x7e   :  { %v5075_v47 = vld [vmem:[#allocation4 + $0x840] sm:$0xf]  ;;  %v5876_v50 = vor.u32 %v6533_v43, %v5875_v42  ;;  %3246 = vmatpush.bf16.msrb.mxu2 %v5620_v46  ;;  %v4728_v42 = vor.u32 %v6241_v32, %v4725_v33  ;;  %v6105_v43 = vld [vmem:[#allocation4 + $0x144] sm:$0xf]  ;;  %v4984_v46 = vor.u32 %v6305_v35, %v4981_v36 }
  0x7f   :  { %v6333_v48 = vld [vmem:[#allocation4 + $0x85c] sm:$0xf0]  ;;  %v6209_v24 = vld [vmem:[#allocation4 + $0x484] sm:$0xf] }
  0x80   :  { %v5331_v49 = vld [vmem:[#allocation4 + $0xa40] sm:$0xf]  ;;  %v5076_v56 = vor.u32 %v6333_v48, %v5075_v47  ;;  %3259 = vmatpush.bf16.msrb.mxu3 %v5876_v50  ;;  %v4437_v47 = vld [vmem:[#allocation4 + $0x360] sm:$0xf0] }
  0x81   :  { %v6397_v51 = vld [vmem:[#allocation4 + $0xa5c] sm:$0xf0]  ;;  %v6233_v48 = vld [vmem:[#allocation4 + $0x544] sm:$0xf] }
  0x82   :  { %v5587_v52 = vld [vmem:[#allocation4 + $0xc40] sm:$0xf]  ;;  %v5332_v59 = vor.u32 %v6397_v51, %v5331_v49  ;;  %3221 = vmatpush.bf16.msrb.mxu0 %v5076_v56  ;;  %v4693_v49 = vld [vmem:[#allocation4 + $0x560] sm:$0xf0] }
  0x83   :  { %v6461_v53 = vld [vmem:[#allocation4 + $0xc5c] sm:$0xf0]  ;;  %v6297_v50 = vld [vmem:[#allocation4 + $0x744] sm:$0xf] }
  0x84   :  { %v5843_v54 = vld [vmem:[#allocation4 + $0xe40] sm:$0xf]  ;;  %v5588_v60 = vor.u32 %v6461_v53, %v5587_v52  ;;  %3234 = vmatpush.bf16.msrb.mxu1 %v5332_v59  ;;  %v4949_v51 = vld [vmem:[#allocation4 + $0x760] sm:$0xf0]  ;;  %v4184_v52 = vor.u32 %v6105_v43, %v4181_v44  ;;  %v4440_v53 = vor.u32 %v6169_v45, %v4437_v47 }
  0x85   :  { %v6525_v55 = vld [vmem:[#allocation4 + $0xe5c] sm:$0xf0]  ;;  %v4149_v56 = vld [vmem:[#allocation4 + $0x120] sm:$0xf0] }
  0x86   :  { %v5043_v57 = vld [vmem:[#allocation4 + $0x800] sm:$0xf]  ;;  %v5844_v1 = vor.u32 %v6525_v55, %v5843_v54  ;;  %3247 = vmatpush.bf16.msrb.mxu2 %v5588_v60  ;;  %v4696_v54 = vor.u32 %v6233_v48, %v4693_v49  ;;  %v6097_v55 = vld [vmem:[#allocation4 + $0x104] sm:$0xf] }
  0x87   :  { %v6325_v58 = vld [vmem:[#allocation4 + $0x81c] sm:$0xf0]  ;;  %v4405_v59 = vld [vmem:[#allocation4 + $0x320] sm:$0xf0] }
  0x88   :  { %v5299_v61 = vld [vmem:[#allocation4 + $0xa00] sm:$0xf]  ;;  %v5044_v8 = vor.u32 %v6325_v58, %v5043_v57  ;;  %3260 = vmatpush.bf16.msrb.mxu3 %v5844_v1  ;;  %v6161_v57 = vld [vmem:[#allocation4 + $0x304] sm:$0xf]  ;;  %v4952_v58 = vor.u32 %v6297_v50, %v4949_v51  ;;  %v4152_v1 = vor.u32 %v6097_v55, %v4149_v56 }
  0x89   :  { %v6389_v62 = vld [vmem:[#allocation4 + $0xa1c] sm:$0xf0]  ;;  %v6225_v60 = vld [vmem:[#allocation4 + $0x504] sm:$0xf] }
  0x8a   :  { %v5555_v0 = vld [vmem:[#allocation4 + $0xc00] sm:$0xf]  ;;  %v5300_v13 = vor.u32 %v6389_v62, %v5299_v61  ;;  %3222 = vmatpush.bf16.msrb.mxu0 %v5044_v8  ;;  %v4661_v61 = vld [vmem:[#allocation4 + $0x520] sm:$0xf0] }
  0x8b   :  { %v6453_v2 = vld [vmem:[#allocation4 + $0xc1c] sm:$0xf0]  ;;  %v6289_v62 = vld [vmem:[#allocation4 + $0x704] sm:$0xf] }
  0x8c   :  { %v5811_v3 = vld [vmem:[#allocation4 + $0xe00] sm:$0xf]  ;;  %v5556_v14 = vor.u32 %v6453_v2, %v5555_v0  ;;  %3235 = vmatpush.bf16.msrb.mxu1 %v5300_v13  ;;  %v4917_v0 = vld [vmem:[#allocation4 + $0x720] sm:$0xf0]  ;;  %v4408_v2 = vor.u32 %v6161_v57, %v4405_v59 }
  0x8d   :  { %v6517_v4 = vld [vmem:[#allocation4 + $0xe1c] sm:$0xf0]  ;;  %v4920_v7 = vor.u32 %v6289_v62, %v4917_v0  ;;  %v4373_v8 = vld [vmem:[#allocation4 + $0x2e0] sm:$0xf0] }
  0x8e   :  { %v5812_v20 = vor.u32 %v6517_v4, %v5811_v3  ;;  %v61_v23 = vld [vmem:[#allocation2 + $0x20] sm:$0xff]  ;;  %3248 = vmatpush.bf16.msrb.mxu2 %v5556_v14  ;;  %3267 = vmatpush.bf16.msra.mxu0 %v4248_v21  ;;  %v4664_v3 = vor.u32 %v6225_v60, %v4661_v61  ;;  %v4376_v15 = vor.u32 %v6153_v6, %v4373_v8 }
  0x8f   :  { %v6708_v37 = vpack.c.bf16 %v61_v23, %v61_v23  ;;  %3236 = vmatmul.bf16.vlgmr.msrb.gmra.mxu1 %v6712_v40  ;;  %v6089_v4 = vld [vmem:[#allocation4 + $0xc4] sm:$0xf] }
  0x90   :  { %3261 = vmatpush.bf16.msrb.mxu3 %v5812_v20  ;;  %3280 = vmatpush.bf16.msra.mxu1 %v4504_v25  ;;  %v4885_v13 = vld [vmem:[#allocation4 + $0x6e0] sm:$0xf0]  ;;  %v4120_v14 = vor.u32 %v6089_v4, %v4117_v5 }
  0x91   :  { %3249 = vmatmul.bf16.vlgmr.msrb.gmra.mxu2 %v6706_v34  ;;  %3223 = vmatmul.bf16.vlgmr.msrb.gmra.mxu0 %v6708_v37  ;;  %v4085_v20 = vld [vmem:[#allocation4 + $0xa0] sm:$0xf0]  ;;  %v4888_v22 = vor.u32 %v6281_v12, %v4885_v13 }
  0x92   :  { %3293 = vmatpush.bf16.msra.mxu2 %v4760_v26  ;;  %3268 = vmatpush.bf16.msra.mxu0 %v4216_v39  ;;  %v6145_v21 = vld [vmem:[#allocation4 + $0x284] sm:$0xf]  ;;  %v4088_v28 = vor.u32 %v6081_v19, %v4085_v20 }
  0x93   :  { %3262 = vmatmul.bf16.vlgmr.msrb.gmra.mxu3 %v6710_v38  ;;  %v4341_v23 = vld [vmem:[#allocation4 + $0x2a0] sm:$0xf0] }
  0x94   :  { %3306 = vmatpush.bf16.msra.mxu3 %v5016_v30  ;;  %3281 = vmatpush.bf16.msra.mxu1 %v4472_v41  ;;  %v4597_v25 = vld [vmem:[#allocation4 + $0x4a0] sm:$0xf0]  ;;  %v4344_v29 = vor.u32 %v6145_v21, %v4341_v23 }
  0x95   :  { %v6273_v26 = vld [vmem:[#allocation4 + $0x684] sm:$0xf]  ;;  %v4600_v30 = vor.u32 %v6209_v24, %v4597_v25 }
  0x96   :  { %3294 = vmatpush.bf16.msra.mxu2 %v4728_v42  ;;  %3269 = vmatpush.bf16.msra.mxu0 %v4184_v52  ;;  %v4853_v27 = vld [vmem:[#allocation4 + $0x6a0] sm:$0xf0] }
  0x97   :  { %v6073_v31 = vld [vmem:[#allocation4 + $0x44] sm:$0xf]  ;;  %v4856_v35 = vor.u32 %v6273_v26, %v4853_v27 }
  0x98   :  { %3307 = vmatpush.bf16.msra.mxu3 %v4984_v46  ;;  %3282 = vmatpush.bf16.msra.mxu1 %v4440_v53  ;;  %v4053_v32 = vld [vmem:[#allocation4 + $0x60] sm:$0xf0] }
  0x99   :  { %v6137_v33 = vld [vmem:[#allocation4 + $0x244] sm:$0xf]  ;;  %v4056_v44 = vor.u32 %v6073_v31, %v4053_v32 }
  0x9a   :  { %3295 = vmatpush.bf16.msra.mxu2 %v4696_v54  ;;  %3270 = vmatpush.bf16.msra.mxu0 %v4152_v1  ;;  %v4309_v36 = vld [vmem:[#allocation4 + $0x260] sm:$0xf0] }
  0x9b   :  { %v6201_v39 = vld [vmem:[#allocation4 + $0x444] sm:$0xf]  ;;  %v4312_v47 = vor.u32 %v6137_v33, %v4309_v36 }
  0x9c   :  { %3308 = vmatpush.bf16.msra.mxu3 %v4952_v58  ;;  %3283 = vmatpush.bf16.msra.mxu1 %v4408_v2  ;;  %v4565_v41 = vld [vmem:[#allocation4 + $0x460] sm:$0xf0] }
  0x9d   :  { %v6265_v42 = vld [vmem:[#allocation4 + $0x644] sm:$0xf]  ;;  %v4568_v48 = vor.u32 %v6201_v39, %v4565_v41 }
  0x9e   :  { %3296 = vmatpush.bf16.msra.mxu2 %v4664_v3  ;;  %3271 = vmatpush.bf16.msra.mxu0 %v4120_v14  ;;  %v4821_v43 = vld [vmem:[#allocation4 + $0x660] sm:$0xf0] }
  0x9f   :  { %v6065_v45 = vld [vmem:[#allocation4 + $0x4] sm:$0xf]  ;;  %v4824_v52 = vor.u32 %v6265_v42, %v4821_v43 }
  0xa0   :  { %3309 = vmatpush.bf16.msra.mxu3 %v4920_v7  ;;  %3284 = vmatpush.bf16.msra.mxu1 %v4376_v15  ;;  %v4021_v46 = vld [vmem:[#allocation4 + $0x20] sm:$0xf0] }
  0xa1   :  { %v6129_v49 = vld [vmem:[#allocation4 + $0x204] sm:$0xf]  ;;  %v4024_v59 = vor.u32 %v6065_v45, %v4021_v46 }
  0xa2   :  { %3297 = vmatpush.bf16.msra.mxu2 %v4632_v18  ;;  %3272 = vmatpush.bf16.msra.mxu0 %v4088_v28  ;;  %v4277_v50 = vld [vmem:[#allocation4 + $0x220] sm:$0xf0] }
  0xa3   :  { %v6193_v51 = vld [vmem:[#allocation4 + $0x404] sm:$0xf]  ;;  %v4280_v0 = vor.u32 %v6129_v49, %v4277_v50 }
  0xa4   :  { %3310 = vmatpush.bf16.msra.mxu3 %v4888_v22  ;;  %3285 = vmatpush.bf16.msra.mxu1 %v4344_v29  ;;  %v4533_v53 = vld [vmem:[#allocation4 + $0x420] sm:$0xf0] }
  0xa5   :  { %v6257_v54 = vld [vmem:[#allocation4 + $0x604] sm:$0xf]  ;;  %v4536_v1 = vor.u32 %v6193_v51, %v4533_v53 }
  0xa6   :  { %3298 = vmatpush.bf16.msra.mxu2 %v4600_v30  ;;  %v4789_v55 = vld [vmem:[#allocation4 + $0x620] sm:$0xf0]  ;;  %3273 = vmatpush.bf16.msra.mxu0 %v4056_v44 }
  0xa7   :  { %v6377_v56 = vld [vmem:[#allocation4 + $0x9c4] sm:$0xf]  ;;  %v4792_v4 = vor.u32 %v6257_v54, %v4789_v55 }
  0xa8   :  { %3311 = vmatpush.bf16.msra.mxu3 %v4856_v35  ;;  %v5269_v57 = vld [vmem:[#allocation4 + $0x9e0] sm:$0xf0]  ;;  %3286 = vmatpush.bf16.msra.mxu1 %v4312_v47 }
  0xa9   :  { %v6441_v58 = vld [vmem:[#allocation4 + $0xbc4] sm:$0xf]  ;;  %v5272_v5 = vor.u32 %v6377_v56, %v5269_v57 }
  0xaa   :  { %v5525_v60 = vld [vmem:[#allocation4 + $0xbe0] sm:$0xf0]  ;;  %3299 = vmatpush.bf16.msra.mxu2 %v4568_v48  ;;  %3274 = vmatpush.bf16.msra.mxu0 %v4024_v59 }
  0xab   :  { %v6505_v61 = vld [vmem:[#allocation4 + $0xdc4] sm:$0xf]  ;;  %v5528_v6 = vor.u32 %v6441_v58, %v5525_v60 }
  0xac   :  { %v5781_v62 = vld [vmem:[#allocation4 + $0xde0] sm:$0xf0]  ;;  %3312 = vmatpush.bf16.msra.mxu3 %v4824_v52  ;;  %3287 = vmatpush.bf16.msra.mxu1 %v4280_v0 }
  0xad   :  { %v6569_v2 = vld [vmem:[#allocation4 + $0xfc4] sm:$0xf]  ;;  %v5784_v7 = vor.u32 %v6505_v61, %v5781_v62  ;;  %3275 = vmatmul.bf16.vlgmr.msra.gmra.mxu0 %v6697_v9 }
  0xae   :  { %v6037_v3 = vld [vmem:[#allocation4 + $0xfe0] sm:$0xf0]  ;;  %3300 = vmatpush.bf16.msra.mxu2 %v4536_v1  ;;  %3319 = vmatpush.bf16.msrb.mxu0 %v5272_v5 }
  0xaf   :  { %v6369_v8 = vld [vmem:[#allocation4 + $0x984] sm:$0xf]  ;;  %v6040_v12 = vor.u32 %v6569_v2, %v6037_v3  ;;  %3288 = vmatmul.bf16.vlgmr.msra.gmra.mxu1 %v6701_v17 }
  0xb0   :  { %v5237_v10 = vld [vmem:[#allocation4 + $0x9a0] sm:$0xf0]  ;;  %3313 = vmatpush.bf16.msra.mxu3 %v4792_v4  ;;  %3332 = vmatpush.bf16.msrb.mxu1 %v5528_v6 }
  0xb1   :  { %v6433_v11 = vld [vmem:[#allocation4 + $0xb84] sm:$0xf]  ;;  %v5240_v20 = vor.u32 %v6369_v8, %v5237_v10  ;;  %3301 = vmatmul.bf16.vlgmr.msra.gmra.mxu2 %v6694_v63 }
  0xb2   :  { %v5493_v13 = vld [vmem:[#allocation4 + $0xba0] sm:$0xf0]  ;;  %3345 = vmatpush.bf16.msrb.mxu2 %v5784_v7 }
  0xb3   :  { %v6497_v14 = vld [vmem:[#allocation4 + $0xd84] sm:$0xf]  ;;  %v5496_v21 = vor.u32 %v6433_v11, %v5493_v13  ;;  %3314 = vmatmul.bf16.vlgmr.msra.gmra.mxu3 %v6699_v16  ;;  %3320 = vmatpush.bf16.msrb.mxu0 %v5240_v20 }
  0xb4   :  { %v5749_v15 = vld [vmem:[#allocation4 + $0xda0] sm:$0xf0]  ;;  %3358 = vmatpush.bf16.msrb.mxu3 %v6040_v12 }
  0xb5   :  { %v6561_v18 = vld [vmem:[#allocation4 + $0xf84] sm:$0xf]  ;;  %v5752_v22 = vor.u32 %v6497_v14, %v5749_v15  ;;  %3333 = vmatpush.bf16.msrb.mxu1 %v5496_v21 }
  0xb6   :  { %v6005_v19 = vld [vmem:[#allocation4 + $0xfa0] sm:$0xf0] }
  0xb7   :  { %v6361_v23 = vld [vmem:[#allocation4 + $0x944] sm:$0xf]  ;;  %v6008_v26 = vor.u32 %v6561_v18, %v6005_v19  ;;  %3346 = vmatpush.bf16.msrb.mxu2 %v5752_v22 }
  0xb8   :  { %v5205_v24 = vld [vmem:[#allocation4 + $0x960] sm:$0xf0] }
  0xb9   :  { %v6425_v25 = vld [vmem:[#allocation4 + $0xb44] sm:$0xf]  ;;  %v5208_v32 = vor.u32 %v6361_v23, %v5205_v24  ;;  %3359 = vmatpush.bf16.msrb.mxu3 %v6008_v26 }
  0xba   :  { %v5461_v27 = vld [vmem:[#allocation4 + $0xb60] sm:$0xf0] }
  0xbb   :  { %v6489_v28 = vld [vmem:[#allocation4 + $0xd44] sm:$0xf]  ;;  %v5464_v33 = vor.u32 %v6425_v25, %v5461_v27  ;;  %3321 = vmatpush.bf16.msrb.mxu0 %v5208_v32 }
  0xbc   :  { %v5717_v29 = vld [vmem:[#allocation4 + $0xd60] sm:$0xf0] }
  0xbd   :  { %v6553_v30 = vld [vmem:[#allocation4 + $0xf44] sm:$0xf]  ;;  %v5720_v35 = vor.u32 %v6489_v28, %v5717_v29  ;;  %3334 = vmatpush.bf16.msrb.mxu1 %v5464_v33 }
  0xbe   :  { %v5973_v31 = vld [vmem:[#allocation4 + $0xf60] sm:$0xf0] }
  0xbf   :  { %v6353_v36 = vld [vmem:[#allocation4 + $0x904] sm:$0xf]  ;;  %v5976_v42 = vor.u32 %v6553_v30, %v5973_v31  ;;  %3347 = vmatpush.bf16.msrb.mxu2 %v5720_v35 }
  0xc0   :  { %v5173_v39 = vld [vmem:[#allocation4 + $0x920] sm:$0xf0] }
  0xc1   :  { %v6417_v41 = vld [vmem:[#allocation4 + $0xb04] sm:$0xf]  ;;  %v5176_v48 = vor.u32 %v6353_v36, %v5173_v39  ;;  %3360 = vmatpush.bf16.msrb.mxu3 %v5976_v42  ;;  %v4251_v39 = vld [vmem:[#allocation4 + $0x1c8] sm:$0xf] }
  0xc2   :  { %v5429_v43 = vld [vmem:[#allocation4 + $0xb20] sm:$0xf0]  ;;  %v4507_v42 = vld [vmem:[#allocation4 + $0x3c8] sm:$0xf] }
  0xc3   :  { %v6481_v44 = vld [vmem:[#allocation4 + $0xd04] sm:$0xf]  ;;  %v5432_v49 = vor.u32 %v6417_v41, %v5429_v43  ;;  %3322 = vmatpush.bf16.msrb.mxu0 %v5176_v48  ;;  %v6126_v41 = vld [vmem:[#allocation4 + $0x1e4] sm:$0xf0] }
  0xc4   :  { %v5685_v45 = vld [vmem:[#allocation4 + $0xd20] sm:$0xf0] }
  0xc5   :  { %v6545_v46 = vld [vmem:[#allocation4 + $0xf04] sm:$0xf]  ;;  %v5688_v50 = vor.u32 %v6481_v44, %v5685_v45  ;;  %3335 = vmatpush.bf16.msrb.mxu1 %v5432_v49  ;;  %v6190_v44 = vld [vmem:[#allocation4 + $0x3e4] sm:$0xf0] }
  0xc6   :  { %v5941_v47 = vld [vmem:[#allocation4 + $0xf20] sm:$0xf0]  ;;  %v4763_v45 = vld [vmem:[#allocation4 + $0x5c8] sm:$0xf] }
  0xc7   :  { %v6345_v51 = vld [vmem:[#allocation4 + $0x8c4] sm:$0xf]  ;;  %v5944_v54 = vor.u32 %v6545_v46, %v5941_v47  ;;  %3348 = vmatpush.bf16.msrb.mxu2 %v5688_v50  ;;  %v6254_v46 = vld [vmem:[#allocation4 + $0x5e4] sm:$0xf0] }
  0xc8   :  { %v5141_v52 = vld [vmem:[#allocation4 + $0x8e0] sm:$0xf0]  ;;  %v5019_v49 = vld [vmem:[#allocation4 + $0x7c8] sm:$0xf] }
  0xc9   :  { %v6409_v53 = vld [vmem:[#allocation4 + $0xac4] sm:$0xf]  ;;  %v5144_v60 = vor.u32 %v6345_v51, %v5141_v52  ;;  %3361 = vmatpush.bf16.msrb.mxu3 %v5944_v54  ;;  %v6318_v50 = vld [vmem:[#allocation4 + $0x7e4] sm:$0xf0]  ;;  %v4252_v52 = vor.u32 %v6126_v41, %v4251_v39  ;;  %v4764_v54 = vor.u32 %v6254_v46, %v4763_v45 }
  0xca   :  { %v5397_v55 = vld [vmem:[#allocation4 + $0xae0] sm:$0xf0]  ;;  %v4635_v39 = vld [vmem:[#allocation4 + $0x4c8] sm:$0xf] }
  0xcb   :  { %v6473_v56 = vld [vmem:[#allocation4 + $0xcc4] sm:$0xf]  ;;  %v5400_v61 = vor.u32 %v6409_v53, %v5397_v55  ;;  %3323 = vmatpush.bf16.msrb.mxu0 %v5144_v60  ;;  %v4508_v53 = vor.u32 %v6190_v44, %v4507_v42  ;;  %v4219_v55 = vld [vmem:[#allocation4 + $0x188] sm:$0xf] }
  0xcc   :  { %v5653_v57 = vld [vmem:[#allocation4 + $0xce0] sm:$0xf0]  ;;  %v4731_v60 = vld [vmem:[#allocation4 + $0x588] sm:$0xf] }
  0xcd   :  { %v6537_v58 = vld [vmem:[#allocation4 + $0xec4] sm:$0xf]  ;;  %v5656_v62 = vor.u32 %v6473_v56, %v5653_v57  ;;  %3336 = vmatpush.bf16.msrb.mxu1 %v5400_v61  ;;  %v6118_v56 = vld [vmem:[#allocation4 + $0x1a4] sm:$0xf0] }
  0xce   :  { %v5909_v59 = vld [vmem:[#allocation4 + $0xee0] sm:$0xf0]  ;;  %v4475_v57 = vld [vmem:[#allocation4 + $0x388] sm:$0xf] }
  0xcf   :  { %v6337_v0 = vld [vmem:[#allocation4 + $0x884] sm:$0xf]  ;;  %v5912_v3 = vor.u32 %v6537_v58, %v5909_v59  ;;  %3349 = vmatpush.bf16.msrb.mxu2 %v5656_v62  ;;  %v5020_v58 = vor.u32 %v6318_v50, %v5019_v49  ;;  %v6182_v59 = vld [vmem:[#allocation4 + $0x3a4] sm:$0xf0] }
  0xd0   :  { %v5109_v1 = vld [vmem:[#allocation4 + $0x8a0] sm:$0xf0]  ;;  %v6246_v61 = vld [vmem:[#allocation4 + $0x5a4] sm:$0xf0] }
  0xd1   :  { %v6401_v2 = vld [vmem:[#allocation4 + $0xa84] sm:$0xf]  ;;  %v5112_v10 = vor.u32 %v6337_v0, %v5109_v1  ;;  %3362 = vmatpush.bf16.msrb.mxu3 %v5912_v3  ;;  %v4987_v62 = vld [vmem:[#allocation4 + $0x788] sm:$0xf]  ;;  %v4220_v1 = vor.u32 %v6118_v56, %v4219_v55  ;;  %v4732_v3 = vor.u32 %v6246_v61, %v4731_v60 }
  0xd2   :  { %v5365_v4 = vld [vmem:[#allocation4 + $0xaa0] sm:$0xf0]  ;;  %v6310_v0 = vld [vmem:[#allocation4 + $0x7a4] sm:$0xf0] }
  0xd3   :  { %v6465_v5 = vld [vmem:[#allocation4 + $0xc84] sm:$0xf]  ;;  %v5368_v11 = vor.u32 %v6401_v2, %v5365_v4  ;;  %3324 = vmatpush.bf16.msrb.mxu0 %v5112_v10  ;;  %v4476_v2 = vor.u32 %v6182_v59, %v4475_v57  ;;  %v4187_v4 = vld [vmem:[#allocation4 + $0x148] sm:$0xf] }
  0xd4   :  { %v5621_v6 = vld [vmem:[#allocation4 + $0xca0] sm:$0xf0]  ;;  %v4699_v10 = vld [vmem:[#allocation4 + $0x548] sm:$0xf] }
  0xd5   :  { %v6529_v7 = vld [vmem:[#allocation4 + $0xe84] sm:$0xf]  ;;  %v5624_v12 = vor.u32 %v6465_v5, %v5621_v6  ;;  %3337 = vmatpush.bf16.msrb.mxu1 %v5368_v11  ;;  %v6110_v5 = vld [vmem:[#allocation4 + $0x164] sm:$0xf0] }
  0xd6   :  { %v5877_v8 = vld [vmem:[#allocation4 + $0xea0] sm:$0xf0]  ;;  %v4443_v6 = vld [vmem:[#allocation4 + $0x348] sm:$0xf] }
  0xd7   :  { %v6329_v13 = vld [vmem:[#allocation4 + $0x844] sm:$0xf]  ;;  %v5880_v18 = vor.u32 %v6529_v7, %v5877_v8  ;;  %3350 = vmatpush.bf16.msrb.mxu2 %v5624_v12  ;;  %v4988_v7 = vor.u32 %v6310_v0, %v4987_v62  ;;  %v6174_v8 = vld [vmem:[#allocation4 + $0x364] sm:$0xf0] }
  0xd8   :  { %v5077_v14 = vld [vmem:[#allocation4 + $0x860] sm:$0xf0]  ;;  %v6238_v11 = vld [vmem:[#allocation4 + $0x564] sm:$0xf0] }
  0xd9   :  { %v6393_v15 = vld [vmem:[#allocation4 + $0xa44] sm:$0xf]  ;;  %v5080_v24 = vor.u32 %v6329_v13, %v5077_v14  ;;  %3363 = vmatpush.bf16.msrb.mxu3 %v5880_v18  ;;  %v4955_v12 = vld [vmem:[#allocation4 + $0x748] sm:$0xf]  ;;  %v4188_v14 = vor.u32 %v6110_v5, %v4187_v4  ;;  %v4700_v18 = vor.u32 %v6238_v11, %v4699_v10 }
  0xda   :  { %v5333_v19 = vld [vmem:[#allocation4 + $0xa60] sm:$0xf0]  ;;  %v6302_v13 = vld [vmem:[#allocation4 + $0x764] sm:$0xf0] }
  0xdb   :  { %v6457_v20 = vld [vmem:[#allocation4 + $0xc44] sm:$0xf]  ;;  %v5336_v27 = vor.u32 %v6393_v15, %v5333_v19  ;;  %3325 = vmatpush.bf16.msrb.mxu0 %v5080_v24  ;;  %v4444_v15 = vor.u32 %v6174_v8, %v4443_v6  ;;  %v4155_v19 = vld [vmem:[#allocation4 + $0x108] sm:$0xf] }
  0xdc   :  { %v5589_v21 = vld [vmem:[#allocation4 + $0xc60] sm:$0xf0]  ;;  %v4667_v24 = vld [vmem:[#allocation4 + $0x508] sm:$0xf] }
  0xdd   :  { %v6521_v22 = vld [vmem:[#allocation4 + $0xe44] sm:$0xf]  ;;  %v5592_v28 = vor.u32 %v6457_v20, %v5589_v21  ;;  %3338 = vmatpush.bf16.msrb.mxu1 %v5336_v27  ;;  %v6102_v20 = vld [vmem:[#allocation4 + $0x124] sm:$0xf0] }
  0xde   :  { %v5845_v23 = vld [vmem:[#allocation4 + $0xe60] sm:$0xf0]  ;;  %v4411_v21 = vld [vmem:[#allocation4 + $0x308] sm:$0xf] }
  0xdf   :  { %v6321_v25 = vld [vmem:[#allocation4 + $0x804] sm:$0xf]  ;;  %v5848_v32 = vor.u32 %v6521_v22, %v5845_v23  ;;  %3351 = vmatpush.bf16.msrb.mxu2 %v5592_v28  ;;  %v4956_v22 = vor.u32 %v6302_v13, %v4955_v12  ;;  %v6166_v23 = vld [vmem:[#allocation4 + $0x324] sm:$0xf0]  ;;  %v4156_v28 = vor.u32 %v6102_v20, %v4155_v19 }
  0xe0   :  { %v5045_v26 = vld [vmem:[#allocation4 + $0x820] sm:$0xf0]  ;;  %v6294_v27 = vld [vmem:[#allocation4 + $0x724] sm:$0xf0] }
  0xe1   :  { %v6385_v29 = vld [vmem:[#allocation4 + $0xa04] sm:$0xf]  ;;  %v5048_v43 = vor.u32 %v6321_v25, %v5045_v26  ;;  %3364 = vmatpush.bf16.msrb.mxu3 %v5848_v32  ;;  %v6230_v25 = vld [vmem:[#allocation4 + $0x524] sm:$0xf0] }
  0xe2   :  { %v5301_v30 = vld [vmem:[#allocation4 + $0xa20] sm:$0xf0]  ;;  %v4923_v26 = vld [vmem:[#allocation4 + $0x708] sm:$0xf] }
  0xe3   :  { %v6449_v31 = vld [vmem:[#allocation4 + $0xc04] sm:$0xf]  ;;  %v5304_v47 = vor.u32 %v6385_v29, %v5301_v30  ;;  %3326 = vmatpush.bf16.msrb.mxu0 %v5048_v43  ;;  %v4412_v29 = vor.u32 %v6166_v23, %v4411_v21  ;;  %v4668_v30 = vor.u32 %v6230_v25, %v4667_v24  ;;  %v6094_v32 = vld [vmem:[#allocation4 + $0xe4] sm:$0xf0] }
  0xe4   :  { %v5557_v33 = vld [vmem:[#allocation4 + $0xc20] sm:$0xf0]  ;;  %v6222_v41 = vld [vmem:[#allocation4 + $0x4e4] sm:$0xf0] }
  0xe5   :  { %v6513_v35 = vld [vmem:[#allocation4 + $0xe04] sm:$0xf]  ;;  %v5560_v48 = vor.u32 %v6449_v31, %v5557_v33  ;;  %3339 = vmatpush.bf16.msrb.mxu1 %v5304_v47  ;;  %v4123_v31 = vld [vmem:[#allocation4 + $0xc8] sm:$0xf]  ;;  %v4636_v46 = vor.u32 %v6222_v41, %v4635_v39 }
  0xe6   :  { %v5813_v36 = vld [vmem:[#allocation4 + $0xe20] sm:$0xf0]  ;;  %3327 = vmatmul.bf16.vlgmr.msrb.gmra.mxu0 %v6708_v37  ;;  %v4379_v33 = vld [vmem:[#allocation4 + $0x2c8] sm:$0xf]  ;;  %v4124_v44 = vor.u32 %v6094_v32, %v4123_v31 }
  0xe7   :  { %v5816_v51 = vor.u32 %v6513_v35, %v5813_v36  ;;  %3352 = vmatpush.bf16.msrb.mxu2 %v5560_v48  ;;  %3371 = vmatpush.bf16.msra.mxu0 %v4252_v52  ;;  %v4924_v35 = vor.u32 %v6294_v27, %v4923_v26  ;;  %v6158_v36 = vld [vmem:[#allocation4 + $0x2e4] sm:$0xf0] }
  0xe8   :  { %3340 = vmatmul.bf16.vlgmr.msrb.gmra.mxu1 %v6712_v40  ;;  %v4891_v42 = vld [vmem:[#allocation4 + $0x6c8] sm:$0xf]  ;;  %v4380_v45 = vor.u32 %v6158_v36, %v4379_v33 }
  0xe9   :  { %3365 = vmatpush.bf16.msrb.mxu3 %v5816_v51  ;;  %3384 = vmatpush.bf16.msra.mxu1 %v4508_v53  ;;  %v6286_v43 = vld [vmem:[#allocation4 + $0x6e4] sm:$0xf0] }
  0xea   :  { %3353 = vmatmul.bf16.vlgmr.msrb.gmra.mxu2 %v6706_v34  ;;  %v4091_v47 = vld [vmem:[#allocation4 + $0x88] sm:$0xf]  ;;  %v4892_v50 = vor.u32 %v6286_v43, %v4891_v42 }
  0xeb   :  { %3397 = vmatpush.bf16.msra.mxu2 %v4764_v54  ;;  %3372 = vmatpush.bf16.msra.mxu0 %v4220_v1  ;;  %v6086_v48 = vld [vmem:[#allocation4 + $0xa4] sm:$0xf0] }
  0xec   :  { %3366 = vmatmul.bf16.vlgmr.msrb.gmra.mxu3 %v6710_v38  ;;  %v4347_v49 = vld [vmem:[#allocation4 + $0x288] sm:$0xf]  ;;  %v4092_v56 = vor.u32 %v6086_v48, %v4091_v47 }
  0xed   :  { %3410 = vmatpush.bf16.msra.mxu3 %v5020_v58  ;;  %3385 = vmatpush.bf16.msra.mxu1 %v4476_v2  ;;  %v6150_v51 = vld [vmem:[#allocation4 + $0x2a4] sm:$0xf0] }
  0xee   :  { %v4603_v52 = vld [vmem:[#allocation4 + $0x488] sm:$0xf]  ;;  %v4348_v57 = vor.u32 %v6150_v51, %v4347_v49 }
  0xef   :  { %3398 = vmatpush.bf16.msra.mxu2 %v4732_v3  ;;  %3373 = vmatpush.bf16.msra.mxu0 %v4188_v14  ;;  %v6214_v53 = vld [vmem:[#allocation4 + $0x4a4] sm:$0xf0] }
  0xf0   :  { %v4859_v54 = vld [vmem:[#allocation4 + $0x688] sm:$0xf]  ;;  %v4604_v58 = vor.u32 %v6214_v53, %v4603_v52 }
  0xf1   :  { %3411 = vmatpush.bf16.msra.mxu3 %v4988_v7  ;;  %3386 = vmatpush.bf16.msra.mxu1 %v4444_v15  ;;  %v6278_v55 = vld [vmem:[#allocation4 + $0x6a4] sm:$0xf0] }
  0xf2   :  { %v4059_v59 = vld [vmem:[#allocation4 + $0x48] sm:$0xf]  ;;  %v4860_v62 = vor.u32 %v6278_v55, %v4859_v54 }
  0xf3   :  { %3399 = vmatpush.bf16.msra.mxu2 %v4700_v18  ;;  %3374 = vmatpush.bf16.msra.mxu0 %v4156_v28  ;;  %v6078_v60 = vld [vmem:[#allocation4 + $0x64] sm:$0xf0] }
  0xf4   :  { %v4315_v61 = vld [vmem:[#allocation4 + $0x248] sm:$0xf]  ;;  %v4060_v5 = vor.u32 %v6078_v60, %v4059_v59 }
  0xf5   :  { %3412 = vmatpush.bf16.msra.mxu3 %v4956_v22  ;;  %3387 = vmatpush.bf16.msra.mxu1 %v4412_v29  ;;  %v6142_v0 = vld [vmem:[#allocation4 + $0x264] sm:$0xf0] }
  0xf6   :  { %v4571_v1 = vld [vmem:[#allocation4 + $0x448] sm:$0xf]  ;;  %v4316_v8 = vor.u32 %v6142_v0, %v4315_v61 }
  0xf7   :  { %3400 = vmatpush.bf16.msra.mxu2 %v4668_v30  ;;  %3375 = vmatpush.bf16.msra.mxu0 %v4124_v44  ;;  %v6206_v2 = vld [vmem:[#allocation4 + $0x464] sm:$0xf0] }
  0xf8   :  { %v4827_v3 = vld [vmem:[#allocation4 + $0x648] sm:$0xf]  ;;  %v4572_v10 = vor.u32 %v6206_v2, %v4571_v1 }
  0xf9   :  { %3413 = vmatpush.bf16.msra.mxu3 %v4924_v35  ;;  %3388 = vmatpush.bf16.msra.mxu1 %v4380_v45  ;;  %v6270_v4 = vld [vmem:[#allocation4 + $0x664] sm:$0xf0] }
  0xfa   :  { %v4027_v6 = vld [vmem:[#allocation4 + $0x8] sm:$0xf]  ;;  %v4828_v14 = vor.u32 %v6270_v4, %v4827_v3 }
  0xfb   :  { %3401 = vmatpush.bf16.msra.mxu2 %v4636_v46  ;;  %3376 = vmatpush.bf16.msra.mxu0 %v4092_v56  ;;  %v6070_v7 = vld [vmem:[#allocation4 + $0x24] sm:$0xf0] }
  0xfc   :  { %v4283_v11 = vld [vmem:[#allocation4 + $0x208] sm:$0xf]  ;;  %v4028_v23 = vor.u32 %v6070_v7, %v4027_v6  ;;  %v6730_v7 = vld [vmem:[#allocation6] sm:$0xff] }
  0xfd   :  { %3414 = vmatpush.bf16.msra.mxu3 %v4892_v50  ;;  %3389 = vmatpush.bf16.msra.mxu1 %v4348_v57  ;;  %v6134_v12 = vld [vmem:[#allocation4 + $0x224] sm:$0xf0] }
  0xfe   :  { %v4539_v13 = vld [vmem:[#allocation4 + $0x408] sm:$0xf]  ;;  %v4284_v27 = vor.u32 %v6134_v12, %v4283_v11 }
  0xff   :  { %3402 = vmatpush.bf16.msra.mxu2 %v4604_v58  ;;  %v6198_v15 = vld [vmem:[#allocation4 + $0x424] sm:$0xf0]  ;;  %3377 = vmatpush.bf16.msra.mxu0 %v4060_v5 }
 0x100   :  { %v4795_v18 = vld [vmem:[#allocation4 + $0x608] sm:$0xf]  ;;  %v4540_v28 = vor.u32 %v6198_v15, %v4539_v13 }
 0x101   :  { %3415 = vmatpush.bf16.msra.mxu3 %v4860_v62  ;;  %v6262_v19 = vld [vmem:[#allocation4 + $0x624] sm:$0xf0]  ;;  %3390 = vmatpush.bf16.msra.mxu1 %v4316_v8 }
 0x102   :  { %v5275_v20 = vld [vmem:[#allocation4 + $0x9c8] sm:$0xf]  ;;  %v4796_v31 = vor.u32 %v6262_v19, %v4795_v18  ;;  %v587_v19 = vperm.slane %v6730_v7, 0 }
 0x103   :  { %v6382_v21 = vld [vmem:[#allocation4 + $0x9e4] sm:$0xf0]  ;;  %3403 = vmatpush.bf16.msra.mxu2 %v4572_v10  ;;  %3378 = vmatpush.bf16.msra.mxu0 %v4028_v23 }
 0x104   :  { %v5531_v22 = vld [vmem:[#allocation4 + $0xbc8] sm:$0xf]  ;;  %v5276_v32 = vor.u32 %v6382_v21, %v5275_v20 }
 0x105   :  { %v6446_v24 = vld [vmem:[#allocation4 + $0xbe4] sm:$0xf0]  ;;  %3416 = vmatpush.bf16.msra.mxu3 %v4828_v14  ;;  %3391 = vmatpush.bf16.msra.mxu1 %v4284_v27  ;;  %v3172_v27 = vpop.f32.mrf.mxu0 }
 0x106   :  { %v5787_v25 = vld [vmem:[#allocation4 + $0xdc8] sm:$0xf]  ;;  %v5532_v33 = vor.u32 %v6446_v24, %v5531_v22  ;;  %3379 = vmatmul.bf16.vlgmr.msra.gmra.mxu0 %v6697_v9 }
 0x107   :  { %v6510_v26 = vld [vmem:[#allocation4 + $0xde4] sm:$0xf0]  ;;  %3404 = vmatpush.bf16.msra.mxu2 %v4540_v28  ;;  %3423 = vmatpush.bf16.msrb.mxu0 %v5276_v32 }
 0x108   :  { %v6043_v29 = vld [vmem:[#allocation4 + $0xfc8] sm:$0xf]  ;;  %v5788_v35 = vor.u32 %v6510_v26, %v5787_v25  ;;  %3392 = vmatmul.bf16.vlgmr.msra.gmra.mxu1 %v6701_v17 }
 0x109   :  { %v6574_v30 = vld [vmem:[#allocation4 + $0xfe4] sm:$0xf0]  ;;  %3417 = vmatpush.bf16.msra.mxu3 %v4796_v31  ;;  %3436 = vmatpush.bf16.msrb.mxu1 %v5532_v33  ;;  %v3173_v33 = vadd.f32 %v3172_v27, %v587_v19  ;;  %v6314_v27 = vld [vmem:[#allocation4 + $0x7cc] sm:$0xf] }
 0x10a   :  { %v5243_v36 = vld [vmem:[#allocation4 + $0x988] sm:$0xf]  ;;  %v6044_v42 = vor.u32 %v6574_v30, %v6043_v29  ;;  %3405 = vmatmul.bf16.vlgmr.msra.gmra.mxu2 %v6694_v63 }
 0x10b   :  { %v6374_v39 = vld [vmem:[#allocation4 + $0x9a4] sm:$0xf0]  ;;  %3449 = vmatpush.bf16.msrb.mxu2 %v5788_v35 }
 0x10c   :  { %v5499_v41 = vld [vmem:[#allocation4 + $0xb88] sm:$0xf]  ;;  %v5244_v48 = vor.u32 %v6374_v39, %v5243_v36  ;;  %3418 = vmatmul.bf16.vlgmr.msra.gmra.mxu3 %v6699_v16 }
 0x10d   :  { %v6438_v43 = vld [vmem:[#allocation4 + $0xba4] sm:$0xf0]  ;;  %3462 = vmatpush.bf16.msrb.mxu3 %v6044_v42 }
 0x10e   :  { %v5755_v44 = vld [vmem:[#allocation4 + $0xd88] sm:$0xf]  ;;  %v5500_v49 = vor.u32 %v6438_v43, %v5499_v41  ;;  %3424 = vmatpush.bf16.msrb.mxu0 %v5244_v48 }
 0x10f   :  { %v6502_v45 = vld [vmem:[#allocation4 + $0xda4] sm:$0xf0] }
 0x110   :  { %v6011_v46 = vld [vmem:[#allocation4 + $0xf88] sm:$0xf]  ;;  %v5756_v50 = vor.u32 %v6502_v45, %v5755_v44  ;;  %3437 = vmatpush.bf16.msrb.mxu1 %v5500_v49  ;;  %v3185_v44 = vpop.f32.mrf.mxu1  ;;  %v3198_v45 = vpop.f32.mrf.mxu2 }
 0x111   :  { %v6566_v47 = vld [vmem:[#allocation4 + $0xfa4] sm:$0xf0] }
 0x112   :  { %v5211_v51 = vld [vmem:[#allocation4 + $0x948] sm:$0xf]  ;;  %v6012_v54 = vor.u32 %v6566_v47, %v6011_v46  ;;  %3450 = vmatpush.bf16.msrb.mxu2 %v5756_v50  ;;  %v3186_v47 = vadd.f32 %v3185_v44, %v3173_v33  ;;  %v6114_v33 = vld [vmem:[#allocation4 + $0x18c] sm:$0xf] }
 0x113   :  { %v6366_v52 = vld [vmem:[#allocation4 + $0x964] sm:$0xf0]  ;;  %v4733_v44 = vld [vmem:[#allocation4 + $0x5a8] sm:$0xf0] }
 0x114   :  { %v5467_v53 = vld [vmem:[#allocation4 + $0xb48] sm:$0xf]  ;;  %v5212_v60 = vor.u32 %v6366_v52, %v5211_v51  ;;  %3463 = vmatpush.bf16.msrb.mxu3 %v6012_v54 }
 0x115   :  { %v6430_v55 = vld [vmem:[#allocation4 + $0xb64] sm:$0xf0] }
 0x116   :  { %v5723_v56 = vld [vmem:[#allocation4 + $0xd48] sm:$0xf]  ;;  %v5468_v62 = vor.u32 %v6430_v55, %v5467_v53  ;;  %3425 = vmatpush.bf16.msrb.mxu0 %v5212_v60  ;;  %v3211_v60 = vpop.f32.mrf.mxu3 }
 0x117   :  { %v6494_v57 = vld [vmem:[#allocation4 + $0xd64] sm:$0xf0] }
 0x118   :  { %v5979_v58 = vld [vmem:[#allocation4 + $0xf48] sm:$0xf]  ;;  %v5724_v0 = vor.u32 %v6494_v57, %v5723_v56  ;;  %3438 = vmatpush.bf16.msrb.mxu1 %v5468_v62  ;;  %v3199_v57 = vadd.f32 %v3198_v45, %v3186_v47  ;;  %v3187_v19 = vpop.f32.mrf.mxu1  ;;  %v6306_v45 = vld [vmem:[#allocation4 + $0x78c] sm:$0xf] }
 0x119   :  { %v6558_v59 = vld [vmem:[#allocation4 + $0xf64] sm:$0xf0]  ;;  %v6154_v19 = vld [vmem:[#allocation4 + $0x2cc] sm:$0xf] }
 0x11a   :  { %v5179_v61 = vld [vmem:[#allocation4 + $0x908] sm:$0xf]  ;;  %v5980_v4 = vor.u32 %v6558_v59, %v5979_v58  ;;  %3451 = vmatpush.bf16.msrb.mxu2 %v5724_v0 }
 0x11b   :  { %v6358_v1 = vld [vmem:[#allocation4 + $0x924] sm:$0xf0] }
 0x11c   :  { %v5435_v2 = vld [vmem:[#allocation4 + $0xb08] sm:$0xf]  ;;  %v5180_v11 = vor.u32 %v6358_v1, %v5179_v61  ;;  %3464 = vmatpush.bf16.msrb.mxu3 %v5980_v4  ;;  %v6733_v1 = vadd.f32 %v3211_v60, %v3199_v57  ;;  %v6298_v57 = vld [vmem:[#allocation4 + $0x74c] sm:$0xf] }
 0x11d   :  { %v6422_v3 = vld [vmem:[#allocation4 + $0xb24] sm:$0xf0] }
 0x11e   :  { %v5691_v5 = vld [vmem:[#allocation4 + $0xd08] sm:$0xf]  ;;  %v5436_v13 = vor.u32 %v6422_v3, %v5435_v2  ;;  %3426 = vmatpush.bf16.msrb.mxu0 %v5180_v11  ;;  %v3174_v2 = vpop.f32.mrf.mxu0 }
 0x11f   :  { %v6486_v6 = vld [vmem:[#allocation4 + $0xd24] sm:$0xf0]  ;;  %v6162_v2 = vld [vmem:[#allocation4 + $0x30c] sm:$0xf] }
 0x120   :  { %v5947_v8 = vld [vmem:[#allocation4 + $0xf08] sm:$0xf]  ;;  %v5692_v14 = vor.u32 %v6486_v6, %v5691_v5  ;;  %3439 = vmatpush.bf16.msrb.mxu1 %v5436_v13 }
 0x121   :  { %v6550_v10 = vld [vmem:[#allocation4 + $0xf24] sm:$0xf0] }
 0x122   :  { %v5147_v12 = vld [vmem:[#allocation4 + $0x8c8] sm:$0xf]  ;;  %v5948_v20 = vor.u32 %v6550_v10, %v5947_v8  ;;  %3452 = vmatpush.bf16.msrb.mxu2 %v5692_v14  ;;  %v6122_v14 = vld [vmem:[#allocation4 + $0x1cc] sm:$0xf] }
 0x123   :  { %v6350_v15 = vld [vmem:[#allocation4 + $0x8e4] sm:$0xf0] }
 0x124   :  { %v5403_v18 = vld [vmem:[#allocation4 + $0xac8] sm:$0xf]  ;;  %v5148_v26 = vor.u32 %v6350_v15, %v5147_v12  ;;  %3465 = vmatpush.bf16.msrb.mxu3 %v5948_v20  ;;  %v4253_v15 = vld [vmem:[#allocation4 + $0x1e8] sm:$0xf0]  ;;  %v3200_v20 = vpop.f32.mrf.mxu2 }
 0x125   :  { %v6414_v21 = vld [vmem:[#allocation4 + $0xae4] sm:$0xf0] }
 0x126   :  { %v5659_v22 = vld [vmem:[#allocation4 + $0xcc8] sm:$0xf]  ;;  %v5404_v28 = vor.u32 %v6414_v21, %v5403_v18  ;;  %3427 = vmatpush.bf16.msrb.mxu0 %v5148_v26  ;;  %v6186_v18 = vld [vmem:[#allocation4 + $0x3cc] sm:$0xf] }
 0x127   :  { %v6478_v23 = vld [vmem:[#allocation4 + $0xce4] sm:$0xf0] }
 0x128   :  { %v5915_v24 = vld [vmem:[#allocation4 + $0xec8] sm:$0xf]  ;;  %v5660_v29 = vor.u32 %v6478_v23, %v5659_v22  ;;  %3440 = vmatpush.bf16.msrb.mxu1 %v5404_v28  ;;  %v4509_v22 = vld [vmem:[#allocation4 + $0x3e8] sm:$0xf0] }
 0x129   :  { %v6542_v25 = vld [vmem:[#allocation4 + $0xee4] sm:$0xf0]  ;;  %v6250_v23 = vld [vmem:[#allocation4 + $0x5cc] sm:$0xf] }
 0x12a   :  { %v5115_v30 = vld [vmem:[#allocation4 + $0x888] sm:$0xf]  ;;  %v5916_v35 = vor.u32 %v6542_v25, %v5915_v24  ;;  %3453 = vmatpush.bf16.msrb.mxu2 %v5660_v29  ;;  %v4765_v24 = vld [vmem:[#allocation4 + $0x5e8] sm:$0xf0] }
 0x12b   :  { %v6342_v31 = vld [vmem:[#allocation4 + $0x8a4] sm:$0xf0]  ;;  %v5021_v28 = vld [vmem:[#allocation4 + $0x7e8] sm:$0xf0] }
 0x12c   :  { %v5371_v32 = vld [vmem:[#allocation4 + $0xa88] sm:$0xf]  ;;  %v5116_v46 = vor.u32 %v6342_v31, %v5115_v30  ;;  %3466 = vmatpush.bf16.msrb.mxu3 %v5916_v35  ;;  %v4256_v30 = vor.u32 %v6122_v14, %v4253_v15  ;;  %v4512_v31 = vor.u32 %v6186_v18, %v4509_v22  ;;  %v4221_v35 = vld [vmem:[#allocation4 + $0x1a8] sm:$0xf0] }
 0x12d   :  { %v6406_v36 = vld [vmem:[#allocation4 + $0xaa4] sm:$0xf0]  ;;  %v4224_v47 = vor.u32 %v6114_v33, %v4221_v35  ;;  %v6090_v15 = vld [vmem:[#allocation4 + $0xcc] sm:$0xf] }
 0x12e   :  { %v5627_v39 = vld [vmem:[#allocation4 + $0xc88] sm:$0xf]  ;;  %v5372_v48 = vor.u32 %v6406_v36, %v5371_v32  ;;  %3428 = vmatpush.bf16.msrb.mxu0 %v5116_v46  ;;  %v4768_v32 = vor.u32 %v6250_v23, %v4765_v24  ;;  %v6178_v36 = vld [vmem:[#allocation4 + $0x38c] sm:$0xf] }
 0x12f   :  { %v6470_v41 = vld [vmem:[#allocation4 + $0xca4] sm:$0xf0]  ;;  %v4989_v46 = vld [vmem:[#allocation4 + $0x7a8] sm:$0xf0] }
 0x130   :  { %v5883_v42 = vld [vmem:[#allocation4 + $0xe88] sm:$0xf]  ;;  %v5628_v49 = vor.u32 %v6470_v41, %v5627_v39  ;;  %3441 = vmatpush.bf16.msrb.mxu1 %v5372_v48  ;;  %v3213_v39 = vpop.f32.mrf.mxu3  ;;  %v5024_v41 = vor.u32 %v6314_v27, %v5021_v28  ;;  %v4125_v18 = vld [vmem:[#allocation4 + $0xe8] sm:$0xf0] }
 0x131   :  { %v6534_v43 = vld [vmem:[#allocation4 + $0xea4] sm:$0xf0]  ;;  %v4381_v23 = vld [vmem:[#allocation4 + $0x2e8] sm:$0xf0] }
 0x132   :  { %v5083_v50 = vld [vmem:[#allocation4 + $0x848] sm:$0xf]  ;;  %v5884_v53 = vor.u32 %v6534_v43, %v5883_v42  ;;  %3454 = vmatpush.bf16.msrb.mxu2 %v5628_v49  ;;  %v4477_v42 = vld [vmem:[#allocation4 + $0x3a8] sm:$0xf0] }
 0x133   :  { %v6334_v51 = vld [vmem:[#allocation4 + $0x864] sm:$0xf0]  ;;  %v6242_v43 = vld [vmem:[#allocation4 + $0x58c] sm:$0xf]  ;;  %v4480_v48 = vor.u32 %v6178_v36, %v4477_v42  ;;  %v3250_v36 = vpop.f32.mrf.mxu2 }
 0x134   :  { %v5339_v52 = vld [vmem:[#allocation4 + $0xa48] sm:$0xf]  ;;  %v5084_v61 = vor.u32 %v6334_v51, %v5083_v50  ;;  %3467 = vmatpush.bf16.msrb.mxu3 %v5884_v53  ;;  %v4736_v49 = vor.u32 %v6242_v43, %v4733_v44  ;;  %v6106_v50 = vld [vmem:[#allocation4 + $0x14c] sm:$0xf]  ;;  %v4992_v53 = vor.u32 %v6306_v45, %v4989_v46 }
 0x135   :  { %v6398_v54 = vld [vmem:[#allocation4 + $0xa64] sm:$0xf0]  ;;  %v4189_v51 = vld [vmem:[#allocation4 + $0x168] sm:$0xf0] }
 0x136   :  { %v5595_v55 = vld [vmem:[#allocation4 + $0xc48] sm:$0xf]  ;;  %v5340_v3 = vor.u32 %v6398_v54, %v5339_v52  ;;  %3429 = vmatpush.bf16.msrb.mxu0 %v5084_v61  ;;  %v6170_v52 = vld [vmem:[#allocation4 + $0x34c] sm:$0xf] }
 0x137   :  { %v6462_v56 = vld [vmem:[#allocation4 + $0xc64] sm:$0xf0]  ;;  %v4445_v54 = vld [vmem:[#allocation4 + $0x368] sm:$0xf0] }
 0x138   :  { %v5851_v58 = vld [vmem:[#allocation4 + $0xe48] sm:$0xf]  ;;  %v5596_v4 = vor.u32 %v6462_v56, %v5595_v55  ;;  %3442 = vmatpush.bf16.msrb.mxu1 %v5340_v3  ;;  %v6234_v55 = vld [vmem:[#allocation4 + $0x54c] sm:$0xf]  ;;  %v4448_v60 = vor.u32 %v6170_v52, %v4445_v54  ;;  %v3263_v44 = vpop.f32.mrf.mxu3 }
 0x139   :  { %v6526_v59 = vld [vmem:[#allocation4 + $0xe64] sm:$0xf0]  ;;  %v4701_v56 = vld [vmem:[#allocation4 + $0x568] sm:$0xf0] }
 0x13a   :  { %v5051_v62 = vld [vmem:[#allocation4 + $0x808] sm:$0xf]  ;;  %v5852_v10 = vor.u32 %v6526_v59, %v5851_v58  ;;  %3455 = vmatpush.bf16.msrb.mxu2 %v5596_v4  ;;  %v4957_v58 = vld [vmem:[#allocation4 + $0x768] sm:$0xf0]  ;;  %v4192_v59 = vor.u32 %v6106_v50, %v4189_v51  ;;  %v4704_v61 = vor.u32 %v6234_v55, %v4701_v56 }
 0x13b   :  { %v6326_v0 = vld [vmem:[#allocation4 + $0x824] sm:$0xf0]  ;;  %v4960_v3 = vor.u32 %v6298_v57, %v4957_v58  ;;  %v4413_v4 = vld [vmem:[#allocation4 + $0x328] sm:$0xf0] }
 0x13c   :  { %v5307_v5 = vld [vmem:[#allocation4 + $0xa08] sm:$0xf]  ;;  %v5052_v21 = vor.u32 %v6326_v0, %v5051_v62  ;;  %3468 = vmatpush.bf16.msrb.mxu3 %v5852_v10  ;;  %v6098_v62 = vld [vmem:[#allocation4 + $0x10c] sm:$0xf] }
 0x13d   :  { %v6390_v6 = vld [vmem:[#allocation4 + $0xa24] sm:$0xf0]  ;;  %v4157_v0 = vld [vmem:[#allocation4 + $0x128] sm:$0xf0] }
 0x13e   :  { %v5563_v8 = vld [vmem:[#allocation4 + $0xc08] sm:$0xf]  ;;  %v5308_v25 = vor.u32 %v6390_v6, %v5307_v5  ;;  %3430 = vmatpush.bf16.msrb.mxu0 %v5052_v21  ;;  %v6226_v5 = vld [vmem:[#allocation4 + $0x50c] sm:$0xf]  ;;  %v3237_v21 = vpop.f32.mrf.mxu1 }
 0x13f   :  { %v6454_v11 = vld [vmem:[#allocation4 + $0xc24] sm:$0xf0]  ;;  %v4669_v6 = vld [vmem:[#allocation4 + $0x528] sm:$0xf0] }
 0x140   :  { %v5819_v12 = vld [vmem:[#allocation4 + $0xe08] sm:$0xf]  ;;  %v5564_v26 = vor.u32 %v6454_v11, %v5563_v8  ;;  %3443 = vmatpush.bf16.msrb.mxu1 %v5308_v25  ;;  %v6290_v8 = vld [vmem:[#allocation4 + $0x70c] sm:$0xf]  ;;  %v4160_v11 = vor.u32 %v6098_v62, %v4157_v0  ;;  %v4672_v14 = vor.u32 %v6226_v5, %v4669_v6 }
 0x141   :  { %v6518_v13 = vld [vmem:[#allocation4 + $0xe24] sm:$0xf0]  ;;  %3431 = vmatmul.bf16.vlgmr.msrb.gmra.mxu0 %v6708_v37  ;;  %v4925_v10 = vld [vmem:[#allocation4 + $0x728] sm:$0xf0] }
 0x142   :  { %v5820_v29 = vor.u32 %v6518_v13, %v5819_v12  ;;  %3456 = vmatpush.bf16.msrb.mxu2 %v5564_v26  ;;  %3475 = vmatpush.bf16.msra.mxu0 %v4256_v30  ;;  %v3224_v12 = vpop.f32.mrf.mxu0  ;;  %v4416_v13 = vor.u32 %v6162_v2, %v4413_v4  ;;  %v4928_v22 = vor.u32 %v6290_v8, %v4925_v10  ;;  %v6218_v24 = vld [vmem:[#allocation4 + $0x4cc] sm:$0xf]  ;;  %v3252_v10 = vpop.f32.mrf.mxu2 }
 0x143   :  { %3444 = vmatmul.bf16.vlgmr.msrb.gmra.mxu1 %v6712_v40  ;;  %v3225_v20 = vadd.f32 %v3224_v12, %v6733_v1  ;;  %v4637_v25 = vld [vmem:[#allocation4 + $0x4e8] sm:$0xf0]  ;;  %v4384_v30 = vor.u32 %v6154_v19, %v4381_v23 }
 0x144   :  { %3469 = vmatpush.bf16.msrb.mxu3 %v5820_v29  ;;  %3488 = vmatpush.bf16.msra.mxu1 %v4512_v31  ;;  %v6282_v26 = vld [vmem:[#allocation4 + $0x6cc] sm:$0xf]  ;;  %v4128_v29 = vor.u32 %v6090_v15, %v4125_v18  ;;  %v4640_v31 = vor.u32 %v6218_v24, %v4637_v25  ;;  %v3265_v15 = vpop.f32.mrf.mxu3 }
 0x145   :  { %3457 = vmatmul.bf16.vlgmr.msrb.gmra.mxu2 %v6706_v34  ;;  %v4893_v27 = vld [vmem:[#allocation4 + $0x6e8] sm:$0xf0]  ;;  %v3238_v28 = vadd.f32 %v3237_v21, %v3225_v20 }
 0x146   :  { %3501 = vmatpush.bf16.msra.mxu2 %v4768_v32  ;;  %3476 = vmatpush.bf16.msra.mxu0 %v4224_v47  ;;  %v6082_v32 = vld [vmem:[#allocation4 + $0x8c] sm:$0xf]  ;;  %v4896_v1 = vor.u32 %v6282_v26, %v4893_v27  ;;  %v3239_v55 = vpop.f32.mrf.mxu1 }
 0x147   :  { %3470 = vmatmul.bf16.vlgmr.msrb.gmra.mxu3 %v6710_v38  ;;  %v4093_v33 = vld [vmem:[#allocation4 + $0xa8] sm:$0xf0]  ;;  %v3251_v43 = vadd.f32 %v3250_v36, %v3238_v28 }
 0x148   :  { %3514 = vmatpush.bf16.msra.mxu3 %v5024_v41  ;;  %3489 = vmatpush.bf16.msra.mxu1 %v4480_v48  ;;  %v6146_v35 = vld [vmem:[#allocation4 + $0x28c] sm:$0xf]  ;;  %v4096_v47 = vor.u32 %v6082_v32, %v4093_v33 }
 0x149   :  { %v4349_v39 = vld [vmem:[#allocation4 + $0x2a8] sm:$0xf0]  ;;  %v6740_v48 = vadd.f32 %v3263_v44, %v3251_v43 }
 0x14a   :  { %3502 = vmatpush.bf16.msra.mxu2 %v4736_v49  ;;  %3477 = vmatpush.bf16.msra.mxu0 %v4192_v59  ;;  %v6210_v41 = vld [vmem:[#allocation4 + $0x48c] sm:$0xf]  ;;  %v3226_v49 = vpop.f32.mrf.mxu0  ;;  %v4352_v50 = vor.u32 %v6146_v35, %v4349_v39 }
 0x14b   :  { %v4605_v42 = vld [vmem:[#allocation4 + $0x4a8] sm:$0xf0] }
 0x14c   :  { %3515 = vmatpush.bf16.msra.mxu3 %v4992_v53  ;;  %3490 = vmatpush.bf16.msra.mxu1 %v4448_v60  ;;  %v6274_v45 = vld [vmem:[#allocation4 + $0x68c] sm:$0xf]  ;;  %v4608_v51 = vor.u32 %v6210_v41, %v4605_v42 }
 0x14d   :  { %v4861_v46 = vld [vmem:[#allocation4 + $0x6a8] sm:$0xf0] }
 0x14e   :  { %3503 = vmatpush.bf16.msra.mxu2 %v4704_v61  ;;  %3478 = vmatpush.bf16.msra.mxu0 %v4160_v11  ;;  %v6074_v52 = vld [vmem:[#allocation4 + $0x4c] sm:$0xf]  ;;  %v4864_v56 = vor.u32 %v6274_v45, %v4861_v46 }
 0x14f   :  { %v4061_v53 = vld [vmem:[#allocation4 + $0x68] sm:$0xf0] }
 0x150   :  { %3516 = vmatpush.bf16.msra.mxu3 %v4960_v3  ;;  %3491 = vmatpush.bf16.msra.mxu1 %v4416_v13  ;;  %v6138_v54 = vld [vmem:[#allocation4 + $0x24c] sm:$0xf]  ;;  %v4064_v62 = vor.u32 %v6074_v52, %v4061_v53 }
 0x151   :  { %v4317_v57 = vld [vmem:[#allocation4 + $0x268] sm:$0xf0] }
 0x152   :  { %3504 = vmatpush.bf16.msra.mxu2 %v4672_v14  ;;  %3479 = vmatpush.bf16.msra.mxu0 %v4128_v29  ;;  %v6202_v58 = vld [vmem:[#allocation4 + $0x44c] sm:$0xf]  ;;  %v4320_v3 = vor.u32 %v6138_v54, %v4317_v57 }
 0x153   :  { %v4573_v59 = vld [vmem:[#allocation4 + $0x468] sm:$0xf0] }
 0x154   :  { %3517 = vmatpush.bf16.msra.mxu3 %v4928_v22  ;;  %3492 = vmatpush.bf16.msra.mxu1 %v4384_v30  ;;  %v6266_v60 = vld [vmem:[#allocation4 + $0x64c] sm:$0xf]  ;;  %v4576_v4 = vor.u32 %v6202_v58, %v4573_v59 }
 0x155   :  { %v4829_v61 = vld [vmem:[#allocation4 + $0x668] sm:$0xf0] }
 0x156   :  { %3505 = vmatpush.bf16.msra.mxu2 %v4640_v31  ;;  %3480 = vmatpush.bf16.msra.mxu0 %v4096_v47  ;;  %v6066_v0 = vld [vmem:[#allocation4 + $0xc] sm:$0xf]  ;;  %v4832_v11 = vor.u32 %v6266_v60, %v4829_v61 }
 0x157   :  { %v4029_v2 = vld [vmem:[#allocation4 + $0x28] sm:$0xf0] }
 0x158   :  { %3518 = vmatpush.bf16.msra.mxu3 %v4896_v1  ;;  %3493 = vmatpush.bf16.msra.mxu1 %v4352_v50  ;;  %v6130_v5 = vld [vmem:[#allocation4 + $0x20c] sm:$0xf]  ;;  %v4032_v21 = vor.u32 %v6066_v0, %v4029_v2  ;;  %v588_v2 = vperm.slane %v6730_v7, 1 }
 0x159   :  { %v4285_v6 = vld [vmem:[#allocation4 + $0x228] sm:$0xf0] }
 0x15a   :  { %3506 = vmatpush.bf16.msra.mxu2 %v4608_v51  ;;  %v6194_v8 = vld [vmem:[#allocation4 + $0x40c] sm:$0xf]  ;;  %3481 = vmatpush.bf16.msra.mxu0 %v4064_v62  ;;  %v4288_v25 = vor.u32 %v6130_v5, %v4285_v6 }
 0x15b   :  { %v4541_v12 = vld [vmem:[#allocation4 + $0x428] sm:$0xf0] }
 0x15c   :  { %3519 = vmatpush.bf16.msra.mxu3 %v4864_v56  ;;  %v6258_v13 = vld [vmem:[#allocation4 + $0x60c] sm:$0xf]  ;;  %3494 = vmatpush.bf16.msra.mxu1 %v4320_v3  ;;  %v4544_v26 = vor.u32 %v6194_v8, %v4541_v12  ;;  %v3276_v12 = vpop.f32.mrf.mxu0 }
 0x15d   :  { %v4797_v14 = vld [vmem:[#allocation4 + $0x628] sm:$0xf0] }
 0x15e   :  { %v6378_v18 = vld [vmem:[#allocation4 + $0x9cc] sm:$0xf]  ;;  %3507 = vmatpush.bf16.msra.mxu2 %v4576_v4  ;;  %v4800_v29 = vor.u32 %v6258_v13, %v4797_v14  ;;  %3482 = vmatpush.bf16.msra.mxu0 %v4032_v21  ;;  %v3289_v21 = vpop.f32.mrf.mxu1 }
 0x15f   :  { %v5277_v19 = vld [vmem:[#allocation4 + $0x9e8] sm:$0xf0] }
 0x160   :  { %v6442_v20 = vld [vmem:[#allocation4 + $0xbcc] sm:$0xf]  ;;  %3520 = vmatpush.bf16.msra.mxu3 %v4832_v11  ;;  %v5280_v30 = vor.u32 %v6378_v18, %v5277_v19  ;;  %3495 = vmatpush.bf16.msra.mxu1 %v4288_v25 }
 0x161   :  { %v5533_v22 = vld [vmem:[#allocation4 + $0xbe8] sm:$0xf0]  ;;  %3483 = vmatmul.bf16.vlgmr.msra.gmra.mxu0 %v6697_v9 }
 0x162   :  { %v6506_v23 = vld [vmem:[#allocation4 + $0xdcc] sm:$0xf]  ;;  %v5536_v31 = vor.u32 %v6442_v20, %v5533_v22  ;;  %3508 = vmatpush.bf16.msra.mxu2 %v4544_v26  ;;  %3527 = vmatpush.bf16.msrb.mxu0 %v5280_v30  ;;  %v3277_v20 = vadd.f32 %v3276_v12, %v588_v2 }
 0x163   :  { %v5789_v24 = vld [vmem:[#allocation4 + $0xde8] sm:$0xf0]  ;;  %3496 = vmatmul.bf16.vlgmr.msra.gmra.mxu1 %v6701_v17 }
 0x164   :  { %v6570_v27 = vld [vmem:[#allocation4 + $0xfcc] sm:$0xf]  ;;  %v5792_v32 = vor.u32 %v6506_v23, %v5789_v24  ;;  %3521 = vmatpush.bf16.msra.mxu3 %v4800_v29  ;;  %3540 = vmatpush.bf16.msrb.mxu1 %v5536_v31 }
 0x165   :  { %v6045_v28 = vld [vmem:[#allocation4 + $0xfe8] sm:$0xf0]  ;;  %3509 = vmatmul.bf16.vlgmr.msra.gmra.mxu2 %v6694_v63 }
 0x166   :  { %v6370_v33 = vld [vmem:[#allocation4 + $0x98c] sm:$0xf]  ;;  %v6048_v1 = vor.u32 %v6570_v27, %v6045_v28  ;;  %3553 = vmatpush.bf16.msrb.mxu2 %v5792_v32  ;;  %v3290_v27 = vadd.f32 %v3289_v21, %v3277_v20  ;;  %v4515_v20 = vld [vmem:[#allocation4 + $0x3d0] sm:$0xf] }
 0x167   :  { %v5245_v35 = vld [vmem:[#allocation4 + $0x9a8] sm:$0xf0]  ;;  %3522 = vmatmul.bf16.vlgmr.msra.gmra.mxu3 %v6699_v16 }
 0x168   :  { %v6434_v36 = vld [vmem:[#allocation4 + $0xb8c] sm:$0xf]  ;;  %v5248_v45 = vor.u32 %v6370_v33, %v5245_v35  ;;  %3566 = vmatpush.bf16.msrb.mxu3 %v6048_v1  ;;  %v3302_v35 = vpop.f32.mrf.mxu2 }
 0x169   :  { %v5501_v39 = vld [vmem:[#allocation4 + $0xba8] sm:$0xf0] }
 0x16a   :  { %v6498_v41 = vld [vmem:[#allocation4 + $0xd8c] sm:$0xf]  ;;  %v5504_v46 = vor.u32 %v6434_v36, %v5501_v39  ;;  %3528 = vmatpush.bf16.msrb.mxu0 %v5248_v45 }
 0x16b   :  { %v5757_v42 = vld [vmem:[#allocation4 + $0xda8] sm:$0xf0] }
 0x16c   :  { %v6562_v43 = vld [vmem:[#allocation4 + $0xf8c] sm:$0xf]  ;;  %v5760_v47 = vor.u32 %v6498_v41, %v5757_v42  ;;  %3541 = vmatpush.bf16.msrb.mxu1 %v5504_v46  ;;  %v3303_v42 = vadd.f32 %v3302_v35, %v3290_v27  ;;  %v6319_v27 = vld [vmem:[#allocation4 + $0x7ec] sm:$0xf0] }
 0x16d   :  { %v6013_v44 = vld [vmem:[#allocation4 + $0xfa8] sm:$0xf0]  ;;  %v4483_v35 = vld [vmem:[#allocation4 + $0x390] sm:$0xf] }
 0x16e   :  { %v6362_v49 = vld [vmem:[#allocation4 + $0x94c] sm:$0xf]  ;;  %v6016_v52 = vor.u32 %v6562_v43, %v6013_v44  ;;  %3554 = vmatpush.bf16.msrb.mxu2 %v5760_v47  ;;  %v3315_v43 = vpop.f32.mrf.mxu3 }
 0x16f   :  { %v5213_v50 = vld [vmem:[#allocation4 + $0x968] sm:$0xf0]  ;;  %v6747_v47 = vadd.f32 %v3315_v43, %v3303_v42  ;;  %v4995_v42 = vld [vmem:[#allocation4 + $0x790] sm:$0xf] }
 0x170   :  { %v6426_v51 = vld [vmem:[#allocation4 + $0xb4c] sm:$0xf]  ;;  %v5216_v58 = vor.u32 %v6362_v49, %v5213_v50  ;;  %3567 = vmatpush.bf16.msrb.mxu3 %v6016_v52  ;;  %v3278_v49 = vpop.f32.mrf.mxu0  ;;  %v6311_v43 = vld [vmem:[#allocation4 + $0x7ac] sm:$0xf0] }
 0x171   :  { %v5469_v53 = vld [vmem:[#allocation4 + $0xb68] sm:$0xf0]  ;;  %v4195_v49 = vld [vmem:[#allocation4 + $0x150] sm:$0xf] }
 0x172   :  { %v6490_v54 = vld [vmem:[#allocation4 + $0xd4c] sm:$0xf]  ;;  %v5472_v60 = vor.u32 %v6426_v51, %v5469_v53  ;;  %3529 = vmatpush.bf16.msrb.mxu0 %v5216_v58 }
 0x173   :  { %v5725_v55 = vld [vmem:[#allocation4 + $0xd68] sm:$0xf0] }
 0x174   :  { %v6554_v56 = vld [vmem:[#allocation4 + $0xf4c] sm:$0xf]  ;;  %v5728_v61 = vor.u32 %v6490_v54, %v5725_v55  ;;  %3542 = vmatpush.bf16.msrb.mxu1 %v5472_v60  ;;  %v3291_v55 = vpop.f32.mrf.mxu1 }
 0x175   :  { %v5981_v57 = vld [vmem:[#allocation4 + $0xf68] sm:$0xf0]  ;;  %v6239_v55 = vld [vmem:[#allocation4 + $0x56c] sm:$0xf0] }
 0x176   :  { %v6354_v59 = vld [vmem:[#allocation4 + $0x90c] sm:$0xf]  ;;  %v5984_v3 = vor.u32 %v6554_v56, %v5981_v57  ;;  %3555 = vmatpush.bf16.msrb.mxu2 %v5728_v61 }
 0x177   :  { %v5181_v62 = vld [vmem:[#allocation4 + $0x928] sm:$0xf0] }
 0x178   :  { %v6418_v0 = vld [vmem:[#allocation4 + $0xb0c] sm:$0xf]  ;;  %v5184_v11 = vor.u32 %v6354_v59, %v5181_v62  ;;  %3568 = vmatpush.bf16.msrb.mxu3 %v5984_v3 }
 0x179   :  { %v5437_v4 = vld [vmem:[#allocation4 + $0xb28] sm:$0xf0] }
 0x17a   :  { %v6482_v5 = vld [vmem:[#allocation4 + $0xd0c] sm:$0xf]  ;;  %v5440_v13 = vor.u32 %v6418_v0, %v5437_v4  ;;  %3530 = vmatpush.bf16.msrb.mxu0 %v5184_v11 }
 0x17b   :  { %v5693_v6 = vld [vmem:[#allocation4 + $0xd28] sm:$0xf0] }
 0x17c   :  { %v6546_v8 = vld [vmem:[#allocation4 + $0xf0c] sm:$0xf]  ;;  %v5696_v14 = vor.u32 %v6482_v5, %v5693_v6  ;;  %3543 = vmatpush.bf16.msrb.mxu1 %v5440_v13 }
 0x17d   :  { %v5949_v10 = vld [vmem:[#allocation4 + $0xf28] sm:$0xf0] }
 0x17e   :  { %v6346_v15 = vld [vmem:[#allocation4 + $0x8cc] sm:$0xf]  ;;  %v5952_v7 = vor.u32 %v6546_v8, %v5949_v10  ;;  %3556 = vmatpush.bf16.msrb.mxu2 %v5696_v14  ;;  %v3304_v10 = vpop.f32.mrf.mxu2 }
 0x17f   :  { %v5149_v18 = vld [vmem:[#allocation4 + $0x8e8] sm:$0xf0] }
 0x180   :  { %v6410_v19 = vld [vmem:[#allocation4 + $0xacc] sm:$0xf]  ;;  %v5152_v28 = vor.u32 %v6346_v15, %v5149_v18  ;;  %3569 = vmatpush.bf16.msrb.mxu3 %v5952_v7  ;;  %v3317_v15 = vpop.f32.mrf.mxu3  ;;  %v4259_v18 = vld [vmem:[#allocation4 + $0x1d0] sm:$0xf] }
 0x181   :  { %v5405_v22 = vld [vmem:[#allocation4 + $0xae8] sm:$0xf0]  ;;  %v6191_v7 = vld [vmem:[#allocation4 + $0x3ec] sm:$0xf0]  ;;  %v3341_v15 = vpop.f32.mrf.mxu1 }
 0x182   :  { %v6474_v23 = vld [vmem:[#allocation4 + $0xccc] sm:$0xf]  ;;  %v5408_v29 = vor.u32 %v6410_v19, %v5405_v22  ;;  %3531 = vmatpush.bf16.msrb.mxu0 %v5152_v28  ;;  %v6127_v19 = vld [vmem:[#allocation4 + $0x1ec] sm:$0xf0] }
 0x183   :  { %v5661_v24 = vld [vmem:[#allocation4 + $0xce8] sm:$0xf0]  ;;  %v4771_v22 = vld [vmem:[#allocation4 + $0x5d0] sm:$0xf] }
 0x184   :  { %v6538_v25 = vld [vmem:[#allocation4 + $0xecc] sm:$0xf]  ;;  %v5664_v30 = vor.u32 %v6474_v23, %v5661_v24  ;;  %3544 = vmatpush.bf16.msrb.mxu1 %v5408_v29  ;;  %v6255_v23 = vld [vmem:[#allocation4 + $0x5ec] sm:$0xf0]  ;;  %v4260_v29 = vor.u32 %v6127_v19, %v4259_v18 }
 0x185   :  { %v5917_v26 = vld [vmem:[#allocation4 + $0xee8] sm:$0xf0]  ;;  %v4131_v18 = vld [vmem:[#allocation4 + $0xd0] sm:$0xf] }
 0x186   :  { %v6338_v31 = vld [vmem:[#allocation4 + $0x88c] sm:$0xf]  ;;  %v5920_v36 = vor.u32 %v6538_v25, %v5917_v26  ;;  %3557 = vmatpush.bf16.msrb.mxu2 %v5664_v30  ;;  %v5027_v26 = vld [vmem:[#allocation4 + $0x7d0] sm:$0xf]  ;;  %v4516_v30 = vor.u32 %v6191_v7, %v4515_v20 }
 0x187   :  { %v5117_v32 = vld [vmem:[#allocation4 + $0x8a8] sm:$0xf0]  ;;  %v6095_v19 = vld [vmem:[#allocation4 + $0xec] sm:$0xf0] }
 0x188   :  { %v6402_v33 = vld [vmem:[#allocation4 + $0xa8c] sm:$0xf]  ;;  %v5120_v46 = vor.u32 %v6338_v31, %v5117_v32  ;;  %3570 = vmatpush.bf16.msrb.mxu3 %v5920_v36  ;;  %v4772_v31 = vor.u32 %v6255_v23, %v4771_v22  ;;  %v4227_v32 = vld [vmem:[#allocation4 + $0x190] sm:$0xf]  ;;  %v5028_v36 = vor.u32 %v6319_v27, %v5027_v26  ;;  %v4132_v27 = vor.u32 %v6095_v19, %v4131_v18 }
 0x189   :  { %v5373_v1 = vld [vmem:[#allocation4 + $0xaa8] sm:$0xf0]  ;;  %v4387_v20 = vld [vmem:[#allocation4 + $0x2d0] sm:$0xf] }
 0x18a   :  { %v6466_v39 = vld [vmem:[#allocation4 + $0xc8c] sm:$0xf]  ;;  %v5376_v50 = vor.u32 %v6402_v33, %v5373_v1  ;;  %3532 = vmatpush.bf16.msrb.mxu0 %v5120_v46  ;;  %v6119_v33 = vld [vmem:[#allocation4 + $0x1ac] sm:$0xf0] }
 0x18b   :  { %v5629_v41 = vld [vmem:[#allocation4 + $0xca8] sm:$0xf0]  ;;  %v6183_v1 = vld [vmem:[#allocation4 + $0x3ac] sm:$0xf0] }
 0x18c   :  { %v6530_v44 = vld [vmem:[#allocation4 + $0xe8c] sm:$0xf]  ;;  %v5632_v51 = vor.u32 %v6466_v39, %v5629_v41  ;;  %3545 = vmatpush.bf16.msrb.mxu1 %v5376_v50  ;;  %v4739_v39 = vld [vmem:[#allocation4 + $0x590] sm:$0xf] }
 0x18d   :  { %v5885_v45 = vld [vmem:[#allocation4 + $0xea8] sm:$0xf0]  ;;  %v6247_v41 = vld [vmem:[#allocation4 + $0x5ac] sm:$0xf0] }
 0x18e   :  { %v6330_v52 = vld [vmem:[#allocation4 + $0x84c] sm:$0xf]  ;;  %v5888_v56 = vor.u32 %v6530_v44, %v5885_v45  ;;  %3558 = vmatpush.bf16.msrb.mxu2 %v5632_v51  ;;  %v4228_v44 = vor.u32 %v6119_v33, %v4227_v32  ;;  %v4484_v45 = vor.u32 %v6183_v1, %v4483_v35  ;;  %v4740_v46 = vor.u32 %v6247_v41, %v4739_v39  ;;  %v6111_v50 = vld [vmem:[#allocation4 + $0x16c] sm:$0xf0] }
 0x18f   :  { %v5085_v53 = vld [vmem:[#allocation4 + $0x868] sm:$0xf0]  ;;  %v4451_v51 = vld [vmem:[#allocation4 + $0x350] sm:$0xf] }
 0x190   :  { %v6394_v54 = vld [vmem:[#allocation4 + $0xa4c] sm:$0xf]  ;;  %v5088_v62 = vor.u32 %v6330_v52, %v5085_v53  ;;  %3571 = vmatpush.bf16.msrb.mxu3 %v5888_v56  ;;  %v4996_v52 = vor.u32 %v6311_v43, %v4995_v42  ;;  %v6175_v53 = vld [vmem:[#allocation4 + $0x36c] sm:$0xf0] }
 0x191   :  { %v5341_v57 = vld [vmem:[#allocation4 + $0xa68] sm:$0xf0]  ;;  %v4963_v56 = vld [vmem:[#allocation4 + $0x750] sm:$0xf] }
 0x192   :  { %v6458_v58 = vld [vmem:[#allocation4 + $0xc4c] sm:$0xf]  ;;  %v5344_v3 = vor.u32 %v6394_v54, %v5341_v57  ;;  %3533 = vmatpush.bf16.msrb.mxu0 %v5088_v62  ;;  %v4707_v54 = vld [vmem:[#allocation4 + $0x550] sm:$0xf] }
 0x193   :  { %v5597_v59 = vld [vmem:[#allocation4 + $0xc68] sm:$0xf0]  ;;  %v6303_v57 = vld [vmem:[#allocation4 + $0x76c] sm:$0xf0] }
 0x194   :  { %v6522_v60 = vld [vmem:[#allocation4 + $0xe4c] sm:$0xf]  ;;  %v5600_v4 = vor.u32 %v6458_v58, %v5597_v59  ;;  %3546 = vmatpush.bf16.msrb.mxu1 %v5344_v3  ;;  %v4196_v58 = vor.u32 %v6111_v50, %v4195_v49  ;;  %v4452_v59 = vor.u32 %v6175_v53, %v4451_v51  ;;  %v6103_v62 = vld [vmem:[#allocation4 + $0x12c] sm:$0xf0] }
 0x195   :  { %v5853_v61 = vld [vmem:[#allocation4 + $0xe68] sm:$0xf0]  ;;  %v6167_v3 = vld [vmem:[#allocation4 + $0x32c] sm:$0xf0] }
 0x196   :  { %v6322_v0 = vld [vmem:[#allocation4 + $0x80c] sm:$0xf]  ;;  %v5856_v11 = vor.u32 %v6522_v60, %v5853_v61  ;;  %3559 = vmatpush.bf16.msrb.mxu2 %v5600_v4  ;;  %v4708_v60 = vor.u32 %v6239_v55, %v4707_v54  ;;  %v4163_v61 = vld [vmem:[#allocation4 + $0x110] sm:$0xf]  ;;  %v3343_v55 = vpop.f32.mrf.mxu1 }
 0x197   :  { %v5053_v2 = vld [vmem:[#allocation4 + $0x828] sm:$0xf0]  ;;  %v4675_v4 = vld [vmem:[#allocation4 + $0x510] sm:$0xf]  ;;  %v4164_v10 = vor.u32 %v6103_v62, %v4163_v61 }
 0x198   :  { %v6386_v5 = vld [vmem:[#allocation4 + $0xa0c] sm:$0xf]  ;;  %v5056_v21 = vor.u32 %v6322_v0, %v5053_v2  ;;  %3572 = vmatpush.bf16.msrb.mxu3 %v5856_v11  ;;  %v4419_v0 = vld [vmem:[#allocation4 + $0x310] sm:$0xf]  ;;  %v4964_v2 = vor.u32 %v6303_v57, %v4963_v56  ;;  %v3328_v11 = vpop.f32.mrf.mxu0  ;;  %v3995_v56 = vmax.f32 %v6740_v48, 0.0 }
 0x199   :  { %v5309_v6 = vld [vmem:[#allocation4 + $0xa28] sm:$0xf0]  ;;  %v6159_v7 = vld [vmem:[#allocation4 + $0x2ec] sm:$0xf0] }
 0x19a   :  { %v6450_v8 = vld [vmem:[#allocation4 + $0xc0c] sm:$0xf]  ;;  %v5312_v24 = vor.u32 %v6386_v5, %v5309_v6  ;;  %3534 = vmatpush.bf16.msrb.mxu0 %v5056_v21  ;;  %v6231_v5 = vld [vmem:[#allocation4 + $0x52c] sm:$0xf0] }
 0x19b   :  { %v5565_v12 = vld [vmem:[#allocation4 + $0xc28] sm:$0xf0]  ;;  %v4931_v6 = vld [vmem:[#allocation4 + $0x710] sm:$0xf] }
 0x19c   :  { %v6514_v13 = vld [vmem:[#allocation4 + $0xe0c] sm:$0xf]  ;;  %v5568_v25 = vor.u32 %v6450_v8, %v5565_v12  ;;  %3547 = vmatpush.bf16.msrb.mxu1 %v5312_v24  ;;  %v6295_v8 = vld [vmem:[#allocation4 + $0x72c] sm:$0xf0]  ;;  %v4420_v12 = vor.u32 %v6167_v3, %v4419_v0 }
 0x19d   :  { %v5821_v14 = vld [vmem:[#allocation4 + $0xe28] sm:$0xf0]  ;;  %3535 = vmatmul.bf16.vlgmr.msrb.gmra.mxu0 %v6708_v37  ;;  %v4932_v21 = vor.u32 %v6295_v8, %v4931_v6  ;;  %v4643_v22 = vld [vmem:[#allocation4 + $0x4d0] sm:$0xf] }
 0x19e   :  { %v5824_v28 = vor.u32 %v6514_v13, %v5821_v14  ;;  %3560 = vmatpush.bf16.msrb.mxu2 %v5568_v25  ;;  %3579 = vmatpush.bf16.msra.mxu0 %v4260_v29  ;;  %v4676_v13 = vor.u32 %v6231_v5, %v4675_v4  ;;  %v3329_v14 = vadd.f32 %v3328_v11, %v6747_v47  ;;  %v6223_v23 = vld [vmem:[#allocation4 + $0x4ec] sm:$0xf0] }
 0x19f   :  { %3548 = vmatmul.bf16.vlgmr.msrb.gmra.mxu1 %v6712_v40  ;;  %v4899_v25 = vld [vmem:[#allocation4 + $0x6d0] sm:$0xf]  ;;  %v4644_v29 = vor.u32 %v6223_v23, %v4643_v22 }
 0x1a0   :  { %3573 = vmatpush.bf16.msrb.mxu3 %v5824_v28  ;;  %3592 = vmatpush.bf16.msra.mxu1 %v4516_v30  ;;  %v3342_v24 = vadd.f32 %v3341_v15, %v3329_v14  ;;  %v6287_v26 = vld [vmem:[#allocation4 + $0x6ec] sm:$0xf0]  ;;  %v4388_v28 = vor.u32 %v6159_v7, %v4387_v20  ;;  %v3354_v30 = vpop.f32.mrf.mxu2  ;;  %v3330_v49 = vpop.f32.mrf.mxu0 }
 0x1a1   :  { %3561 = vmatmul.bf16.vlgmr.msrb.gmra.mxu2 %v6706_v34  ;;  %v4099_v47 = vld [vmem:[#allocation4 + $0x90] sm:$0xf]  ;;  %v4900_v33 = vor.u32 %v6287_v26, %v4899_v25 }
 0x1a2   :  { %3605 = vmatpush.bf16.msra.mxu2 %v4772_v31  ;;  %3580 = vmatpush.bf16.msra.mxu0 %v4228_v44  ;;  %v6087_v31 = vld [vmem:[#allocation4 + $0xac] sm:$0xf0]  ;;  %v3355_v35 = vadd.f32 %v3354_v30, %v3342_v24 }
 0x1a3   :  { %3574 = vmatmul.bf16.vlgmr.msrb.gmra.mxu3 %v6710_v38  ;;  %v4355_v32 = vld [vmem:[#allocation4 + $0x290] sm:$0xf] }
 0x1a4   :  { %3618 = vmatpush.bf16.msra.mxu3 %v5028_v36  ;;  %3593 = vmatpush.bf16.msra.mxu1 %v4484_v45  ;;  %v3367_v36 = vpop.f32.mrf.mxu3  ;;  %v6151_v1 = vld [vmem:[#allocation4 + $0x2ac] sm:$0xf0]  ;;  %v4100_v45 = vor.u32 %v6087_v31, %v4099_v47 }
 0x1a5   :  { %v4611_v39 = vld [vmem:[#allocation4 + $0x490] sm:$0xf]  ;;  %v3368_v44 = vadd.f32 %v3367_v36, %v3355_v35  ;;  %v4356_v50 = vor.u32 %v6151_v1, %v4355_v32 }
 0x1a6   :  { %3606 = vmatpush.bf16.msra.mxu2 %v4740_v46  ;;  %3581 = vmatpush.bf16.msra.mxu0 %v4196_v58  ;;  %v6215_v41 = vld [vmem:[#allocation4 + $0x4ac] sm:$0xf0] }
 0x1a7   :  { %v4867_v42 = vld [vmem:[#allocation4 + $0x690] sm:$0xf]  ;;  %v4612_v51 = vor.u32 %v6215_v41, %v4611_v39  ;;  %v3996_v57 = vmax.f32 %v3368_v44, 0.0 }
 0x1a8   :  { %3619 = vmatpush.bf16.msra.mxu3 %v4996_v52  ;;  %3594 = vmatpush.bf16.msra.mxu1 %v4452_v59  ;;  %v6279_v43 = vld [vmem:[#allocation4 + $0x6ac] sm:$0xf0]  ;;  %v3356_v11 = vpop.f32.mrf.mxu2 }
 0x1a9   :  { %v4067_v46 = vld [vmem:[#allocation4 + $0x50] sm:$0xf]  ;;  %v4868_v58 = vor.u32 %v6279_v43, %v4867_v42  ;;  %v6755_v0 = vadd.f32 %v3996_v57, %v3995_v56 }
 0x1aa   :  { %3607 = vmatpush.bf16.msra.mxu2 %v4708_v60  ;;  %3582 = vmatpush.bf16.msra.mxu0 %v4164_v10  ;;  %v6079_v52 = vld [vmem:[#allocation4 + $0x6c] sm:$0xf0] }
 0x1ab   :  { %v4323_v53 = vld [vmem:[#allocation4 + $0x250] sm:$0xf] }
 0x1ac   :  { %3620 = vmatpush.bf16.msra.mxu3 %v4964_v2  ;;  %3595 = vmatpush.bf16.msra.mxu1 %v4420_v12  ;;  %v6143_v54 = vld [vmem:[#allocation4 + $0x26c] sm:$0xf0]  ;;  %v4068_v2 = vor.u32 %v6079_v52, %v4067_v46  ;;  %v3369_v18 = vpop.f32.mrf.mxu3 }
 0x1ad   :  { %v4579_v59 = vld [vmem:[#allocation4 + $0x450] sm:$0xf]  ;;  %v4324_v5 = vor.u32 %v6143_v54, %v4323_v53 }
 0x1ae   :  { %3608 = vmatpush.bf16.msra.mxu2 %v4676_v13  ;;  %3583 = vmatpush.bf16.msra.mxu0 %v4132_v27  ;;  %v6207_v60 = vld [vmem:[#allocation4 + $0x46c] sm:$0xf0] }
 0x1af   :  { %v4835_v61 = vld [vmem:[#allocation4 + $0x650] sm:$0xf]  ;;  %v4580_v6 = vor.u32 %v6207_v60, %v4579_v59 }
 0x1b0   :  { %3621 = vmatpush.bf16.msra.mxu3 %v4932_v21  ;;  %3596 = vmatpush.bf16.msra.mxu1 %v4388_v28  ;;  %v6271_v62 = vld [vmem:[#allocation4 + $0x66c] sm:$0xf0] }
 0x1b1   :  { %v4035_v3 = vld [vmem:[#allocation4 + $0x10] sm:$0xf]  ;;  %v4836_v12 = vor.u32 %v6271_v62, %v4835_v61 }
 0x1b2   :  { %3609 = vmatpush.bf16.msra.mxu2 %v4644_v29  ;;  %3584 = vmatpush.bf16.msra.mxu0 %v4100_v45  ;;  %v6071_v4 = vld [vmem:[#allocation4 + $0x2c] sm:$0xf0] }
 0x1b3   :  { %v4291_v8 = vld [vmem:[#allocation4 + $0x210] sm:$0xf]  ;;  %v4036_v7 = vor.u32 %v6071_v4, %v4035_v3  ;;  %v6761_v3 = vld [vmem:[#allocation6] sm:$0xff] }
 0x1b4   :  { %3622 = vmatpush.bf16.msra.mxu3 %v4900_v33  ;;  %3597 = vmatpush.bf16.msra.mxu1 %v4356_v50  ;;  %v6135_v10 = vld [vmem:[#allocation4 + $0x22c] sm:$0xf0]  ;;  %v589_v4 = vperm.slane %v6761_v3, 2 }
 0x1b5   :  { %v4547_v48 = vld [vmem:[#allocation4 + $0x410] sm:$0xf]  ;;  %v4292_v25 = vor.u32 %v6135_v10, %v4291_v8 }
 0x1b6   :  { %3610 = vmatpush.bf16.msra.mxu2 %v4612_v51  ;;  %v6199_v13 = vld [vmem:[#allocation4 + $0x42c] sm:$0xf0]  ;;  %3585 = vmatpush.bf16.msra.mxu0 %v4068_v2 }
 0x1b7   :  { %v4803_v14 = vld [vmem:[#allocation4 + $0x610] sm:$0xf]  ;;  %v4548_v26 = vor.u32 %v6199_v13, %v4547_v48  ;;  %v3380_v13 = vpop.f32.mrf.mxu0 }
 0x1b8   :  { %3623 = vmatpush.bf16.msra.mxu3 %v4868_v58  ;;  %v6263_v15 = vld [vmem:[#allocation4 + $0x62c] sm:$0xf0]  ;;  %3598 = vmatpush.bf16.msra.mxu1 %v4324_v5 }
 0x1b9   :  { %v5283_v19 = vld [vmem:[#allocation4 + $0x9d0] sm:$0xf]  ;;  %v4804_v29 = vor.u32 %v6263_v15, %v4803_v14 }
 0x1ba   :  { %v6383_v20 = vld [vmem:[#allocation4 + $0x9ec] sm:$0xf0]  ;;  %3611 = vmatpush.bf16.msra.mxu2 %v4580_v6  ;;  %3586 = vmatpush.bf16.msra.mxu0 %v4036_v7  ;;  %v3393_v7 = vpop.f32.mrf.mxu1 }
 0x1bb   :  { %v5539_v21 = vld [vmem:[#allocation4 + $0xbd0] sm:$0xf]  ;;  %v5284_v30 = vor.u32 %v6383_v20, %v5283_v19 }
 0x1bc   :  { %v6447_v22 = vld [vmem:[#allocation4 + $0xbec] sm:$0xf0]  ;;  %3624 = vmatpush.bf16.msra.mxu3 %v4836_v12  ;;  %3599 = vmatpush.bf16.msra.mxu1 %v4292_v25 }
 0x1bd   :  { %v5795_v23 = vld [vmem:[#allocation4 + $0xdd0] sm:$0xf]  ;;  %v5540_v47 = vor.u32 %v6447_v22, %v5539_v21  ;;  %3587 = vmatmul.bf16.vlgmr.msra.gmra.mxu0 %v6697_v9  ;;  %v3381_v21 = vadd.f32 %v3380_v13, %v589_v4 }
 0x1be   :  { %v6511_v24 = vld [vmem:[#allocation4 + $0xdec] sm:$0xf0]  ;;  %3612 = vmatpush.bf16.msra.mxu2 %v4548_v26  ;;  %3631 = vmatpush.bf16.msrb.mxu0 %v5284_v30 }
 0x1bf   :  { %v6051_v27 = vld [vmem:[#allocation4 + $0xfd0] sm:$0xf]  ;;  %v5796_v31 = vor.u32 %v6511_v24, %v5795_v23  ;;  %3600 = vmatmul.bf16.vlgmr.msra.gmra.mxu1 %v6701_v17 }
 0x1c0   :  { %v6575_v28 = vld [vmem:[#allocation4 + $0xfec] sm:$0xf0]  ;;  %3625 = vmatpush.bf16.msra.mxu3 %v4804_v29  ;;  %3644 = vmatpush.bf16.msrb.mxu1 %v5540_v47 }
 0x1c1   :  { %v5251_v32 = vld [vmem:[#allocation4 + $0x990] sm:$0xf]  ;;  %v6052_v36 = vor.u32 %v6575_v28, %v6051_v27  ;;  %3613 = vmatmul.bf16.vlgmr.msra.gmra.mxu2 %v6694_v63  ;;  %v3394_v28 = vadd.f32 %v3393_v7, %v3381_v21  ;;  %v4261_v21 = vld [vmem:[#allocation4 + $0x1f0] sm:$0xf0] }
 0x1c2   :  { %v6375_v33 = vld [vmem:[#allocation4 + $0x9ac] sm:$0xf0]  ;;  %3657 = vmatpush.bf16.msrb.mxu2 %v5796_v31  ;;  %v6187_v7 = vld [vmem:[#allocation4 + $0x3d4] sm:$0xf] }
 0x1c3   :  { %v5507_v35 = vld [vmem:[#allocation4 + $0xb90] sm:$0xf]  ;;  %v5252_v44 = vor.u32 %v6375_v33, %v5251_v32  ;;  %3626 = vmatmul.bf16.vlgmr.msra.gmra.mxu3 %v6699_v16 }
 0x1c4   :  { %v6439_v1 = vld [vmem:[#allocation4 + $0xbac] sm:$0xf0]  ;;  %3670 = vmatpush.bf16.msrb.mxu3 %v6052_v36 }
 0x1c5   :  { %v5763_v39 = vld [vmem:[#allocation4 + $0xd90] sm:$0xf]  ;;  %v5508_v45 = vor.u32 %v6439_v1, %v5507_v35  ;;  %3632 = vmatpush.bf16.msrb.mxu0 %v5252_v44  ;;  %v3406_v35 = vpop.f32.mrf.mxu2 }
 0x1c6   :  { %v6503_v41 = vld [vmem:[#allocation4 + $0xdac] sm:$0xf0] }
 0x1c7   :  { %v6019_v42 = vld [vmem:[#allocation4 + $0xf90] sm:$0xf]  ;;  %v5764_v46 = vor.u32 %v6503_v41, %v5763_v39  ;;  %3645 = vmatpush.bf16.msrb.mxu1 %v5508_v45 }
 0x1c8   :  { %v6567_v43 = vld [vmem:[#allocation4 + $0xfac] sm:$0xf0] }
 0x1c9   :  { %v5219_v49 = vld [vmem:[#allocation4 + $0x950] sm:$0xf]  ;;  %v6020_v52 = vor.u32 %v6567_v43, %v6019_v42  ;;  %3658 = vmatpush.bf16.msrb.mxu2 %v5764_v46  ;;  %v3407_v42 = vadd.f32 %v3406_v35, %v3394_v28  ;;  %v3419_v43 = vpop.f32.mrf.mxu3  ;;  %v6315_v28 = vld [vmem:[#allocation4 + $0x7d4] sm:$0xf] }
 0x1ca   :  { %v6367_v50 = vld [vmem:[#allocation4 + $0x96c] sm:$0xf0]  ;;  %v4229_v35 = vld [vmem:[#allocation4 + $0x1b0] sm:$0xf0] }
 0x1cb   :  { %v5475_v51 = vld [vmem:[#allocation4 + $0xb50] sm:$0xf]  ;;  %v5220_v58 = vor.u32 %v6367_v50, %v5219_v49  ;;  %3671 = vmatpush.bf16.msrb.mxu3 %v6020_v52  ;;  %v6764_v49 = vadd.f32 %v3419_v43, %v3407_v42  ;;  %v3382_v50 = vpop.f32.mrf.mxu0  ;;  %v4741_v42 = vld [vmem:[#allocation4 + $0x5b0] sm:$0xf0] }
 0x1cc   :  { %v6431_v53 = vld [vmem:[#allocation4 + $0xb6c] sm:$0xf0]  ;;  %v6307_v43 = vld [vmem:[#allocation4 + $0x794] sm:$0xf] }
 0x1cd   :  { %v5731_v54 = vld [vmem:[#allocation4 + $0xd50] sm:$0xf]  ;;  %v5476_v60 = vor.u32 %v6431_v53, %v5475_v51  ;;  %3633 = vmatpush.bf16.msrb.mxu0 %v5220_v58 }
 0x1ce   :  { %v6495_v55 = vld [vmem:[#allocation4 + $0xd6c] sm:$0xf0] }
 0x1cf   :  { %v5987_v56 = vld [vmem:[#allocation4 + $0xf50] sm:$0xf]  ;;  %v5732_v61 = vor.u32 %v6495_v55, %v5731_v54  ;;  %3646 = vmatpush.bf16.msrb.mxu1 %v5476_v60 }
 0x1d0   :  { %v6559_v57 = vld [vmem:[#allocation4 + $0xf6c] sm:$0xf0] }
 0x1d1   :  { %v5187_v59 = vld [vmem:[#allocation4 + $0x910] sm:$0xf]  ;;  %v5988_v5 = vor.u32 %v6559_v57, %v5987_v56  ;;  %3659 = vmatpush.bf16.msrb.mxu2 %v5732_v61  ;;  %v3395_v56 = vpop.f32.mrf.mxu1 }
 0x1d2   :  { %v6359_v62 = vld [vmem:[#allocation4 + $0x92c] sm:$0xf0]  ;;  %v6235_v56 = vld [vmem:[#allocation4 + $0x554] sm:$0xf] }
 0x1d3   :  { %v5443_v2 = vld [vmem:[#allocation4 + $0xb10] sm:$0xf]  ;;  %v5188_v12 = vor.u32 %v6359_v62, %v5187_v59  ;;  %3672 = vmatpush.bf16.msrb.mxu3 %v5988_v5 }
 0x1d4   :  { %v6423_v6 = vld [vmem:[#allocation4 + $0xb2c] sm:$0xf0] }
 0x1d5   :  { %v5699_v8 = vld [vmem:[#allocation4 + $0xd10] sm:$0xf]  ;;  %v5444_v14 = vor.u32 %v6423_v6, %v5443_v2  ;;  %3634 = vmatpush.bf16.msrb.mxu0 %v5188_v12  ;;  %v3408_v12 = vpop.f32.mrf.mxu2 }
 0x1d6   :  { %v6487_v10 = vld [vmem:[#allocation4 + $0xd2c] sm:$0xf0]  ;;  %v4933_v12 = vld [vmem:[#allocation4 + $0x730] sm:$0xf0] }
 0x1d7   :  { %v5955_v48 = vld [vmem:[#allocation4 + $0xf10] sm:$0xf]  ;;  %v5700_v15 = vor.u32 %v6487_v10, %v5699_v8  ;;  %3647 = vmatpush.bf16.msrb.mxu1 %v5444_v14 }
 0x1d8   :  { %v6551_v11 = vld [vmem:[#allocation4 + $0xf2c] sm:$0xf0] }
 0x1d9   :  { %v5155_v18 = vld [vmem:[#allocation4 + $0x8d0] sm:$0xf]  ;;  %v5956_v22 = vor.u32 %v6551_v11, %v5955_v48  ;;  %3660 = vmatpush.bf16.msrb.mxu2 %v5700_v15 }
 0x1da   :  { %v6351_v19 = vld [vmem:[#allocation4 + $0x8ec] sm:$0xf0] }
 0x1db   :  { %v5411_v20 = vld [vmem:[#allocation4 + $0xad0] sm:$0xf]  ;;  %v5156_v29 = vor.u32 %v6351_v19, %v5155_v18  ;;  %3673 = vmatpush.bf16.msrb.mxu3 %v5956_v22  ;;  %v3421_v19 = vpop.f32.mrf.mxu3 }
 0x1dc   :  { %v6415_v23 = vld [vmem:[#allocation4 + $0xaec] sm:$0xf0] }
 0x1dd   :  { %v5667_v24 = vld [vmem:[#allocation4 + $0xcd0] sm:$0xf]  ;;  %v5412_v30 = vor.u32 %v6415_v23, %v5411_v20  ;;  %3635 = vmatpush.bf16.msrb.mxu0 %v5156_v29  ;;  %v6123_v20 = vld [vmem:[#allocation4 + $0x1d4] sm:$0xf] }
 0x1de   :  { %v6479_v25 = vld [vmem:[#allocation4 + $0xcec] sm:$0xf0]  ;;  %v4517_v23 = vld [vmem:[#allocation4 + $0x3f0] sm:$0xf0] }
 0x1df   :  { %v5923_v26 = vld [vmem:[#allocation4 + $0xed0] sm:$0xf]  ;;  %v5668_v47 = vor.u32 %v6479_v25, %v5667_v24  ;;  %3648 = vmatpush.bf16.msrb.mxu1 %v5412_v30  ;;  %v6251_v24 = vld [vmem:[#allocation4 + $0x5d4] sm:$0xf] }
 0x1e0   :  { %v6543_v27 = vld [vmem:[#allocation4 + $0xeec] sm:$0xf0]  ;;  %v4773_v25 = vld [vmem:[#allocation4 + $0x5f0] sm:$0xf0] }
 0x1e1   :  { %v5123_v31 = vld [vmem:[#allocation4 + $0x890] sm:$0xf]  ;;  %v5924_v36 = vor.u32 %v6543_v27, %v5923_v26  ;;  %3661 = vmatpush.bf16.msrb.mxu2 %v5668_v47  ;;  %v5029_v29 = vld [vmem:[#allocation4 + $0x7f0] sm:$0xf0]  ;;  %v4264_v47 = vor.u32 %v6123_v20, %v4261_v21  ;;  %v3445_v20 = vpop.f32.mrf.mxu1 }
 0x1e2   :  { %v6343_v32 = vld [vmem:[#allocation4 + $0x8ac] sm:$0xf0]  ;;  %v6091_v21 = vld [vmem:[#allocation4 + $0xd4] sm:$0xf] }
 0x1e3   :  { %v5379_v33 = vld [vmem:[#allocation4 + $0xa90] sm:$0xf]  ;;  %v5124_v46 = vor.u32 %v6343_v32, %v5123_v31  ;;  %3674 = vmatpush.bf16.msrb.mxu3 %v5924_v36  ;;  %v4520_v31 = vor.u32 %v6187_v7, %v4517_v23  ;;  %v4776_v32 = vor.u32 %v6251_v24, %v4773_v25  ;;  %v6179_v36 = vld [vmem:[#allocation4 + $0x394] sm:$0xf] }
 0x1e4   :  { %v6407_v1 = vld [vmem:[#allocation4 + $0xaac] sm:$0xf0]  ;;  %v4133_v7 = vld [vmem:[#allocation4 + $0xf0] sm:$0xf0] }
 0x1e5   :  { %v5635_v39 = vld [vmem:[#allocation4 + $0xc90] sm:$0xf]  ;;  %v5380_v51 = vor.u32 %v6407_v1, %v5379_v33  ;;  %3636 = vmatpush.bf16.msrb.mxu0 %v5124_v46  ;;  %v6115_v33 = vld [vmem:[#allocation4 + $0x194] sm:$0xf]  ;;  %v5032_v1 = vor.u32 %v6315_v28, %v5029_v29 }
 0x1e6   :  { %v6471_v41 = vld [vmem:[#allocation4 + $0xcac] sm:$0xf0]  ;;  %v4389_v24 = vld [vmem:[#allocation4 + $0x2f0] sm:$0xf0] }
 0x1e7   :  { %v5891_v44 = vld [vmem:[#allocation4 + $0xe90] sm:$0xf]  ;;  %v5636_v52 = vor.u32 %v6471_v41, %v5635_v39  ;;  %3649 = vmatpush.bf16.msrb.mxu1 %v5380_v51  ;;  %v4485_v39 = vld [vmem:[#allocation4 + $0x3b0] sm:$0xf0] }
 0x1e8   :  { %v6535_v45 = vld [vmem:[#allocation4 + $0xeac] sm:$0xf0]  ;;  %v6243_v41 = vld [vmem:[#allocation4 + $0x594] sm:$0xf]  ;;  %v4488_v46 = vor.u32 %v6179_v36, %v4485_v39  ;;  %v3471_v39 = vpop.f32.mrf.mxu3 }
 0x1e9   :  { %v5091_v53 = vld [vmem:[#allocation4 + $0x850] sm:$0xf]  ;;  %v5892_v57 = vor.u32 %v6535_v45, %v5891_v44  ;;  %3662 = vmatpush.bf16.msrb.mxu2 %v5636_v52  ;;  %v4997_v44 = vld [vmem:[#allocation4 + $0x7b0] sm:$0xf0]  ;;  %v4232_v45 = vor.u32 %v6115_v33, %v4229_v35  ;;  %v4744_v50 = vor.u32 %v6243_v41, %v4741_v42 }
 0x1ea   :  { %v6335_v54 = vld [vmem:[#allocation4 + $0x86c] sm:$0xf0]  ;;  %v6107_v51 = vld [vmem:[#allocation4 + $0x154] sm:$0xf] }
 0x1eb   :  { %v5347_v55 = vld [vmem:[#allocation4 + $0xa50] sm:$0xf]  ;;  %v5092_v2 = vor.u32 %v6335_v54, %v5091_v53  ;;  %3675 = vmatpush.bf16.msrb.mxu3 %v5892_v57  ;;  %v4197_v52 = vld [vmem:[#allocation4 + $0x170] sm:$0xf0]  ;;  %v5000_v54 = vor.u32 %v6307_v43, %v4997_v44 }
 0x1ec   :  { %v6399_v58 = vld [vmem:[#allocation4 + $0xa6c] sm:$0xf0]  ;;  %v6171_v53 = vld [vmem:[#allocation4 + $0x354] sm:$0xf] }
 0x1ed   :  { %v5603_v59 = vld [vmem:[#allocation4 + $0xc50] sm:$0xf]  ;;  %v5348_v6 = vor.u32 %v6399_v58, %v5347_v55  ;;  %3637 = vmatpush.bf16.msrb.mxu0 %v5092_v2  ;;  %v4453_v55 = vld [vmem:[#allocation4 + $0x370] sm:$0xf0] }
 0x1ee   :  { %v6463_v60 = vld [vmem:[#allocation4 + $0xc6c] sm:$0xf0]  ;;  %v4709_v57 = vld [vmem:[#allocation4 + $0x570] sm:$0xf0] }
 0x1ef   :  { %v5859_v61 = vld [vmem:[#allocation4 + $0xe50] sm:$0xf]  ;;  %v5604_v8 = vor.u32 %v6463_v60, %v5603_v59  ;;  %3650 = vmatpush.bf16.msrb.mxu1 %v5348_v6  ;;  %v6299_v58 = vld [vmem:[#allocation4 + $0x754] sm:$0xf]  ;;  %v4200_v60 = vor.u32 %v6107_v51, %v4197_v52 }
 0x1f0   :  { %v6527_v62 = vld [vmem:[#allocation4 + $0xe6c] sm:$0xf0]  ;;  %v4965_v59 = vld [vmem:[#allocation4 + $0x770] sm:$0xf0] }
 0x1f1   :  { %v5059_v4 = vld [vmem:[#allocation4 + $0x810] sm:$0xf]  ;;  %v5860_v13 = vor.u32 %v6527_v62, %v5859_v61  ;;  %3663 = vmatpush.bf16.msrb.mxu2 %v5604_v8  ;;  %v4456_v61 = vor.u32 %v6171_v53, %v4453_v55  ;;  %v4712_v62 = vor.u32 %v6235_v56, %v4709_v57  ;;  %v6099_v2 = vld [vmem:[#allocation4 + $0x114] sm:$0xf]  ;;  %v4968_v6 = vor.u32 %v6299_v58, %v4965_v59  ;;  %v3447_v58 = vpop.f32.mrf.mxu1 }
 0x1f2   :  { %v6327_v5 = vld [vmem:[#allocation4 + $0x82c] sm:$0xf0]  ;;  %v4421_v8 = vld [vmem:[#allocation4 + $0x330] sm:$0xf0] }
 0x1f3   :  { %v5315_v10 = vld [vmem:[#allocation4 + $0xa10] sm:$0xf]  ;;  %v5060_v22 = vor.u32 %v6327_v5, %v5059_v4  ;;  %3676 = vmatpush.bf16.msrb.mxu3 %v5860_v13  ;;  %v4165_v4 = vld [vmem:[#allocation4 + $0x130] sm:$0xf0] }
 0x1f4   :  { %v6391_v48 = vld [vmem:[#allocation4 + $0xa2c] sm:$0xf0]  ;;  %v6163_v5 = vld [vmem:[#allocation4 + $0x314] sm:$0xf]  ;;  %v4168_v13 = vor.u32 %v6099_v2, %v4165_v4 }
 0x1f5   :  { %v5571_v11 = vld [vmem:[#allocation4 + $0xc10] sm:$0xf]  ;;  %v5316_v26 = vor.u32 %v6391_v48, %v5315_v10  ;;  %3638 = vmatpush.bf16.msrb.mxu0 %v5060_v22  ;;  %v6227_v10 = vld [vmem:[#allocation4 + $0x514] sm:$0xf] }
 0x1f6   :  { %v6455_v14 = vld [vmem:[#allocation4 + $0xc2c] sm:$0xf0]  ;;  %v4677_v48 = vld [vmem:[#allocation4 + $0x530] sm:$0xf0] }
 0x1f7   :  { %v5827_v15 = vld [vmem:[#allocation4 + $0xe10] sm:$0xf]  ;;  %v5572_v27 = vor.u32 %v6455_v14, %v5571_v11  ;;  %3651 = vmatpush.bf16.msrb.mxu1 %v5316_v26  ;;  %v6291_v11 = vld [vmem:[#allocation4 + $0x714] sm:$0xf]  ;;  %v3432_v14 = vpop.f32.mrf.mxu0 }
 0x1f8   :  { %v6519_v18 = vld [vmem:[#allocation4 + $0xe2c] sm:$0xf0]  ;;  %3639 = vmatmul.bf16.vlgmr.msrb.gmra.mxu0 %v6708_v37  ;;  %v3433_v19 = vadd.f32 %v3432_v14, %v6764_v49  ;;  %v6155_v22 = vld [vmem:[#allocation4 + $0x2d4] sm:$0xf]  ;;  %v4936_v23 = vor.u32 %v6291_v11, %v4933_v12 }
 0x1f9   :  { %v5828_v30 = vor.u32 %v6519_v18, %v5827_v15  ;;  %3664 = vmatpush.bf16.msrb.mxu2 %v5572_v27  ;;  %3683 = vmatpush.bf16.msra.mxu0 %v4264_v47  ;;  %v4424_v15 = vor.u32 %v6163_v5, %v4421_v8  ;;  %v4680_v18 = vor.u32 %v6227_v10, %v4677_v48  ;;  %v6219_v25 = vld [vmem:[#allocation4 + $0x4d4] sm:$0xf] }
 0x1fa   :  { %3652 = vmatmul.bf16.vlgmr.msrb.gmra.mxu1 %v6712_v40  ;;  %v4645_v26 = vld [vmem:[#allocation4 + $0x4f0] sm:$0xf0]  ;;  %v3446_v27 = vadd.f32 %v3445_v20, %v3433_v19  ;;  %v4392_v47 = vor.u32 %v6155_v22, %v4389_v24 }
 0x1fb   :  { %3677 = vmatpush.bf16.msrb.mxu3 %v5828_v30  ;;  %3696 = vmatpush.bf16.msra.mxu1 %v4520_v31  ;;  %v6283_v28 = vld [vmem:[#allocation4 + $0x6d4] sm:$0xf]  ;;  %v4136_v30 = vor.u32 %v6091_v21, %v4133_v7  ;;  %v4648_v31 = vor.u32 %v6219_v25, %v4645_v26  ;;  %v3473_v7 = vpop.f32.mrf.mxu3 }
 0x1fc   :  { %3665 = vmatmul.bf16.vlgmr.msrb.gmra.mxu2 %v6706_v34  ;;  %v4901_v29 = vld [vmem:[#allocation4 + $0x6f0] sm:$0xf0] }
 0x1fd   :  { %3709 = vmatpush.bf16.msra.mxu2 %v4776_v32  ;;  %3684 = vmatpush.bf16.msra.mxu0 %v4232_v45  ;;  %v3458_v32 = vpop.f32.mrf.mxu2  ;;  %v6083_v49 = vld [vmem:[#allocation4 + $0x94] sm:$0xf]  ;;  %v4904_v36 = vor.u32 %v6283_v28, %v4901_v29 }
 0x1fe   :  { %3678 = vmatmul.bf16.vlgmr.msrb.gmra.mxu3 %v6710_v38  ;;  %v4101_v33 = vld [vmem:[#allocation4 + $0xb0] sm:$0xf0] }
 0x1ff   :  { %3722 = vmatpush.bf16.msra.mxu3 %v5032_v1  ;;  %3697 = vmatpush.bf16.msra.mxu1 %v4488_v46  ;;  %v6147_v35 = vld [vmem:[#allocation4 + $0x294] sm:$0xf]  ;;  %v3459_v1 = vadd.f32 %v3458_v32, %v3446_v27  ;;  %v3434_v52 = vpop.f32.mrf.mxu0 }
 0x200   :  { %v4357_v41 = vld [vmem:[#allocation4 + $0x2b0] sm:$0xf0] }
 0x201   :  { %3710 = vmatpush.bf16.msra.mxu2 %v4744_v50  ;;  %3685 = vmatpush.bf16.msra.mxu0 %v4200_v60  ;;  %v6211_v42 = vld [vmem:[#allocation4 + $0x494] sm:$0xf]  ;;  %v3472_v46 = vadd.f32 %v3471_v39, %v3459_v1  ;;  %v4104_v50 = vor.u32 %v6083_v49, %v4101_v33  ;;  %v4360_v53 = vor.u32 %v6147_v35, %v4357_v41 }
 0x202   :  { %v4613_v43 = vld [vmem:[#allocation4 + $0x4b0] sm:$0xf0] }
 0x203   :  { %3723 = vmatpush.bf16.msra.mxu3 %v5000_v54  ;;  %3698 = vmatpush.bf16.msra.mxu1 %v4456_v61  ;;  %v6275_v44 = vld [vmem:[#allocation4 + $0x694] sm:$0xf]  ;;  %v4616_v54 = vor.u32 %v6211_v42, %v4613_v43  ;;  %v3997_v59 = vmax.f32 %v3472_v46, 0.0 }
 0x204   :  { %v4869_v45 = vld [vmem:[#allocation4 + $0x6b0] sm:$0xf0] }
 0x205   :  { %3711 = vmatpush.bf16.msra.mxu2 %v4712_v62  ;;  %3686 = vmatpush.bf16.msra.mxu0 %v4168_v13  ;;  %v6075_v51 = vld [vmem:[#allocation4 + $0x54] sm:$0xf]  ;;  %v4872_v60 = vor.u32 %v6275_v44, %v4869_v45  ;;  %v6772_v5 = vadd.f32 %v6755_v0, %v3997_v59 }
 0x206   :  { %v4069_v55 = vld [vmem:[#allocation4 + $0x70] sm:$0xf0] }
 0x207   :  { %3724 = vmatpush.bf16.msra.mxu3 %v4968_v6  ;;  %3699 = vmatpush.bf16.msra.mxu1 %v4424_v15  ;;  %v6139_v56 = vld [vmem:[#allocation4 + $0x254] sm:$0xf]  ;;  %v4072_v6 = vor.u32 %v6075_v51, %v4069_v55  ;;  %v3460_v15 = vpop.f32.mrf.mxu2 }
 0x208   :  { %v4325_v57 = vld [vmem:[#allocation4 + $0x270] sm:$0xf0] }
 0x209   :  { %3712 = vmatpush.bf16.msra.mxu2 %v4680_v18  ;;  %3687 = vmatpush.bf16.msra.mxu0 %v4136_v30  ;;  %v6203_v61 = vld [vmem:[#allocation4 + $0x454] sm:$0xf]  ;;  %v4328_v48 = vor.u32 %v6139_v56, %v4325_v57 }
 0x20a   :  { %v4581_v62 = vld [vmem:[#allocation4 + $0x470] sm:$0xf0] }
 0x20b   :  { %3725 = vmatpush.bf16.msra.mxu3 %v4936_v23  ;;  %3700 = vmatpush.bf16.msra.mxu1 %v4392_v47  ;;  %v6267_v2 = vld [vmem:[#allocation4 + $0x654] sm:$0xf]  ;;  %v4584_v11 = vor.u32 %v6203_v61, %v4581_v62 }
 0x20c   :  { %v4837_v4 = vld [vmem:[#allocation4 + $0x670] sm:$0xf0] }
 0x20d   :  { %3713 = vmatpush.bf16.msra.mxu2 %v4648_v31  ;;  %3688 = vmatpush.bf16.msra.mxu0 %v4104_v50  ;;  %v6067_v8 = vld [vmem:[#allocation4 + $0x14] sm:$0xf]  ;;  %v4840_v18 = vor.u32 %v6267_v2, %v4837_v4 }
 0x20e   :  { %v4037_v10 = vld [vmem:[#allocation4 + $0x30] sm:$0xf0] }
 0x20f   :  { %3726 = vmatpush.bf16.msra.mxu3 %v4904_v36  ;;  %3701 = vmatpush.bf16.msra.mxu1 %v4360_v53  ;;  %v6131_v12 = vld [vmem:[#allocation4 + $0x214] sm:$0xf]  ;;  %v4040_v24 = vor.u32 %v6067_v8, %v4037_v10  ;;  %v590_v10 = vperm.slane %v6761_v3, 3 }
 0x210   :  { %v4293_v13 = vld [vmem:[#allocation4 + $0x230] sm:$0xf0] }
 0x211   :  { %3714 = vmatpush.bf16.msra.mxu2 %v4616_v54  ;;  %v6195_v14 = vld [vmem:[#allocation4 + $0x414] sm:$0xf]  ;;  %3689 = vmatpush.bf16.msra.mxu0 %v4072_v6  ;;  %v4296_v28 = vor.u32 %v6131_v12, %v4293_v13 }
 0x212   :  { %v4549_v19 = vld [vmem:[#allocation4 + $0x430] sm:$0xf0] }
 0x213   :  { %3727 = vmatpush.bf16.msra.mxu3 %v4872_v60  ;;  %v6259_v20 = vld [vmem:[#allocation4 + $0x614] sm:$0xf]  ;;  %3702 = vmatpush.bf16.msra.mxu1 %v4328_v48  ;;  %v4552_v29 = vor.u32 %v6195_v14, %v4549_v19  ;;  %v3484_v19 = vpop.f32.mrf.mxu0 }
 0x214   :  { %v4805_v21 = vld [vmem:[#allocation4 + $0x630] sm:$0xf0] }
 0x215   :  { %v6379_v0 = vld [vmem:[#allocation4 + $0x9d4] sm:$0xf]  ;;  %3715 = vmatpush.bf16.msra.mxu2 %v4584_v11  ;;  %v4808_v31 = vor.u32 %v6259_v20, %v4805_v21  ;;  %3690 = vmatpush.bf16.msra.mxu0 %v4040_v24  ;;  %v3497_v24 = vpop.f32.mrf.mxu1 }
 0x216   :  { %v5285_v22 = vld [vmem:[#allocation4 + $0x9f0] sm:$0xf0] }
 0x217   :  { %v6443_v23 = vld [vmem:[#allocation4 + $0xbd4] sm:$0xf]  ;;  %3728 = vmatpush.bf16.msra.mxu3 %v4840_v18  ;;  %v5288_v32 = vor.u32 %v6379_v0, %v5285_v22  ;;  %3703 = vmatpush.bf16.msra.mxu1 %v4296_v28 }
 0x218   :  { %v5541_v25 = vld [vmem:[#allocation4 + $0xbf0] sm:$0xf0]  ;;  %3691 = vmatmul.bf16.vlgmr.msra.gmra.mxu0 %v6697_v9 }
 0x219   :  { %v6507_v26 = vld [vmem:[#allocation4 + $0xdd4] sm:$0xf]  ;;  %v5544_v49 = vor.u32 %v6443_v23, %v5541_v25  ;;  %3716 = vmatpush.bf16.msra.mxu2 %v4552_v29  ;;  %3735 = vmatpush.bf16.msrb.mxu0 %v5288_v32  ;;  %v3485_v23 = vadd.f32 %v3484_v19, %v590_v10 }
 0x21a   :  { %v5797_v27 = vld [vmem:[#allocation4 + $0xdf0] sm:$0xf0]  ;;  %3704 = vmatmul.bf16.vlgmr.msra.gmra.mxu1 %v6701_v17 }
 0x21b   :  { %v6571_v30 = vld [vmem:[#allocation4 + $0xfd4] sm:$0xf]  ;;  %v5800_v33 = vor.u32 %v6507_v26, %v5797_v27  ;;  %3729 = vmatpush.bf16.msra.mxu3 %v4808_v31  ;;  %3748 = vmatpush.bf16.msrb.mxu1 %v5544_v49 }
 0x21c   :  { %v6053_v47 = vld [vmem:[#allocation4 + $0xff0] sm:$0xf0]  ;;  %3717 = vmatmul.bf16.vlgmr.msra.gmra.mxu2 %v6694_v63 }
 0x21d   :  { %v6371_v35 = vld [vmem:[#allocation4 + $0x994] sm:$0xf]  ;;  %v6056_v39 = vor.u32 %v6571_v30, %v6053_v47  ;;  %3761 = vmatpush.bf16.msrb.mxu2 %v5800_v33  ;;  %v3498_v30 = vadd.f32 %v3497_v24, %v3485_v23  ;;  %v4523_v23 = vld [vmem:[#allocation4 + $0x3d8] sm:$0xf] }
 0x21e   :  { %v5253_v36 = vld [vmem:[#allocation4 + $0x9b0] sm:$0xf0]  ;;  %3730 = vmatmul.bf16.vlgmr.msra.gmra.mxu3 %v6699_v16 }
 0x21f   :  { %v6435_v1 = vld [vmem:[#allocation4 + $0xb94] sm:$0xf]  ;;  %v5256_v46 = vor.u32 %v6371_v35, %v5253_v36  ;;  %3774 = vmatpush.bf16.msrb.mxu3 %v6056_v39  ;;  %v3510_v36 = vpop.f32.mrf.mxu2 }
 0x220   :  { %v5509_v41 = vld [vmem:[#allocation4 + $0xbb0] sm:$0xf0] }
 0x221   :  { %v6499_v42 = vld [vmem:[#allocation4 + $0xd94] sm:$0xf]  ;;  %v5512_v50 = vor.u32 %v6435_v1, %v5509_v41  ;;  %3736 = vmatpush.bf16.msrb.mxu0 %v5256_v46 }
 0x222   :  { %v5765_v43 = vld [vmem:[#allocation4 + $0xdb0] sm:$0xf0] }
 0x223   :  { %v6563_v44 = vld [vmem:[#allocation4 + $0xf94] sm:$0xf]  ;;  %v5768_v51 = vor.u32 %v6499_v42, %v5765_v43  ;;  %3749 = vmatpush.bf16.msrb.mxu1 %v5512_v50  ;;  %v3511_v43 = vadd.f32 %v3510_v36, %v3498_v30  ;;  %v6320_v30 = vld [vmem:[#allocation4 + $0x7f4] sm:$0xf0] }
 0x224   :  { %v6021_v45 = vld [vmem:[#allocation4 + $0xfb0] sm:$0xf0]  ;;  %v4491_v36 = vld [vmem:[#allocation4 + $0x398] sm:$0xf] }
 0x225   :  { %v6363_v52 = vld [vmem:[#allocation4 + $0x954] sm:$0xf]  ;;  %v6024_v55 = vor.u32 %v6563_v44, %v6021_v45  ;;  %3762 = vmatpush.bf16.msrb.mxu2 %v5768_v51  ;;  %v3523_v44 = vpop.f32.mrf.mxu3 }
 0x226   :  { %v5221_v53 = vld [vmem:[#allocation4 + $0x970] sm:$0xf0]  ;;  %v6779_v51 = vadd.f32 %v3523_v44, %v3511_v43  ;;  %v5003_v43 = vld [vmem:[#allocation4 + $0x798] sm:$0xf] }
 0x227   :  { %v6427_v54 = vld [vmem:[#allocation4 + $0xb54] sm:$0xf]  ;;  %v5224_v61 = vor.u32 %v6363_v52, %v5221_v53  ;;  %3775 = vmatpush.bf16.msrb.mxu3 %v6024_v55  ;;  %v3486_v52 = vpop.f32.mrf.mxu0  ;;  %v6312_v44 = vld [vmem:[#allocation4 + $0x7b4] sm:$0xf0] }
 0x228   :  { %v5477_v56 = vld [vmem:[#allocation4 + $0xb70] sm:$0xf0]  ;;  %v4203_v52 = vld [vmem:[#allocation4 + $0x158] sm:$0xf] }
 0x229   :  { %v6491_v57 = vld [vmem:[#allocation4 + $0xd54] sm:$0xf]  ;;  %v5480_v2 = vor.u32 %v6427_v54, %v5477_v56  ;;  %3737 = vmatpush.bf16.msrb.mxu0 %v5224_v61 }
 0x22a   :  { %v5733_v58 = vld [vmem:[#allocation4 + $0xd70] sm:$0xf0] }
 0x22b   :  { %v6555_v59 = vld [vmem:[#allocation4 + $0xf54] sm:$0xf]  ;;  %v5736_v4 = vor.u32 %v6491_v57, %v5733_v58  ;;  %3750 = vmatpush.bf16.msrb.mxu1 %v5480_v2  ;;  %v3499_v58 = vpop.f32.mrf.mxu1 }
 0x22c   :  { %v5989_v60 = vld [vmem:[#allocation4 + $0xf70] sm:$0xf0]  ;;  %v6240_v58 = vld [vmem:[#allocation4 + $0x574] sm:$0xf0] }
 0x22d   :  { %v6355_v62 = vld [vmem:[#allocation4 + $0x914] sm:$0xf]  ;;  %v5992_v48 = vor.u32 %v6555_v59, %v5989_v60  ;;  %3763 = vmatpush.bf16.msrb.mxu2 %v5736_v4 }
 0x22e   :  { %v5189_v6 = vld [vmem:[#allocation4 + $0x930] sm:$0xf0] }
 0x22f   :  { %v6419_v8 = vld [vmem:[#allocation4 + $0xb14] sm:$0xf]  ;;  %v5192_v18 = vor.u32 %v6355_v62, %v5189_v6  ;;  %3776 = vmatpush.bf16.msrb.mxu3 %v5992_v48 }
 0x230   :  { %v5445_v11 = vld [vmem:[#allocation4 + $0xb30] sm:$0xf0] }
 0x231   :  { %v6483_v12 = vld [vmem:[#allocation4 + $0xd14] sm:$0xf]  ;;  %v5448_v20 = vor.u32 %v6419_v8, %v5445_v11  ;;  %3738 = vmatpush.bf16.msrb.mxu0 %v5192_v18 }
 0x232   :  { %v5701_v13 = vld [vmem:[#allocation4 + $0xd30] sm:$0xf0] }
 0x233   :  { %v6547_v14 = vld [vmem:[#allocation4 + $0xf14] sm:$0xf]  ;;  %v5704_v21 = vor.u32 %v6483_v12, %v5701_v13  ;;  %3751 = vmatpush.bf16.msrb.mxu1 %v5448_v20 }
 0x234   :  { %v5957_v15 = vld [vmem:[#allocation4 + $0xf30] sm:$0xf0] }
 0x235   :  { %v6347_v7 = vld [vmem:[#allocation4 + $0x8d4] sm:$0xf]  ;;  %v5960_v3 = vor.u32 %v6547_v14, %v5957_v15  ;;  %3764 = vmatpush.bf16.msrb.mxu2 %v5704_v21  ;;  %v3512_v15 = vpop.f32.mrf.mxu2 }
 0x236   :  { %v5157_v0 = vld [vmem:[#allocation4 + $0x8f0] sm:$0xf0] }
 0x237   :  { %v6411_v22 = vld [vmem:[#allocation4 + $0xad4] sm:$0xf]  ;;  %v5160_v47 = vor.u32 %v6347_v7, %v5157_v0  ;;  %3777 = vmatpush.bf16.msrb.mxu3 %v5960_v3  ;;  %v3525_v7 = vpop.f32.mrf.mxu3  ;;  %v4267_v0 = vld [vmem:[#allocation4 + $0x1d8] sm:$0xf] }
 0x238   :  { %v5413_v25 = vld [vmem:[#allocation4 + $0xaf0] sm:$0xf0]  ;;  %v6192_v3 = vld [vmem:[#allocation4 + $0x3f4] sm:$0xf0]  ;;  %v3549_v7 = vpop.f32.mrf.mxu1 }
 0x239   :  { %v6475_v26 = vld [vmem:[#allocation4 + $0xcd4] sm:$0xf]  ;;  %v5416_v31 = vor.u32 %v6411_v22, %v5413_v25  ;;  %3739 = vmatpush.bf16.msrb.mxu0 %v5160_v47  ;;  %v6128_v22 = vld [vmem:[#allocation4 + $0x1f4] sm:$0xf0] }
 0x23a   :  { %v5669_v27 = vld [vmem:[#allocation4 + $0xcf0] sm:$0xf0]  ;;  %v4779_v25 = vld [vmem:[#allocation4 + $0x5d8] sm:$0xf] }
 0x23b   :  { %v6539_v28 = vld [vmem:[#allocation4 + $0xed4] sm:$0xf]  ;;  %v5672_v32 = vor.u32 %v6475_v26, %v5669_v27  ;;  %3752 = vmatpush.bf16.msrb.mxu1 %v5416_v31  ;;  %v6256_v26 = vld [vmem:[#allocation4 + $0x5f4] sm:$0xf0]  ;;  %v4268_v31 = vor.u32 %v6128_v22, %v4267_v0 }
 0x23c   :  { %v5925_v29 = vld [vmem:[#allocation4 + $0xef0] sm:$0xf0]  ;;  %v4139_v0 = vld [vmem:[#allocation4 + $0xd8] sm:$0xf] }
 0x23d   :  { %v6339_v49 = vld [vmem:[#allocation4 + $0x894] sm:$0xf]  ;;  %v5928_v1 = vor.u32 %v6539_v28, %v5925_v29  ;;  %3765 = vmatpush.bf16.msrb.mxu2 %v5672_v32  ;;  %v5035_v29 = vld [vmem:[#allocation4 + $0x7d8] sm:$0xf]  ;;  %v4524_v32 = vor.u32 %v6192_v3, %v4523_v23 }
 0x23e   :  { %v5125_v33 = vld [vmem:[#allocation4 + $0x8b0] sm:$0xf0]  ;;  %v6096_v22 = vld [vmem:[#allocation4 + $0xf4] sm:$0xf0] }
 0x23f   :  { %v6403_v35 = vld [vmem:[#allocation4 + $0xa94] sm:$0xf]  ;;  %v5128_v50 = vor.u32 %v6339_v49, %v5125_v33  ;;  %3778 = vmatpush.bf16.msrb.mxu3 %v5928_v1  ;;  %v4780_v49 = vor.u32 %v6256_v26, %v4779_v25  ;;  %v4235_v33 = vld [vmem:[#allocation4 + $0x198] sm:$0xf]  ;;  %v5036_v1 = vor.u32 %v6320_v30, %v5035_v29  ;;  %v4140_v30 = vor.u32 %v6096_v22, %v4139_v0 }
 0x240   :  { %v5381_v39 = vld [vmem:[#allocation4 + $0xab0] sm:$0xf0]  ;;  %v4395_v23 = vld [vmem:[#allocation4 + $0x2d8] sm:$0xf] }
 0x241   :  { %v6467_v41 = vld [vmem:[#allocation4 + $0xc94] sm:$0xf]  ;;  %v5384_v53 = vor.u32 %v6403_v35, %v5381_v39  ;;  %3740 = vmatpush.bf16.msrb.mxu0 %v5128_v50  ;;  %v6120_v35 = vld [vmem:[#allocation4 + $0x1b4] sm:$0xf0] }
 0x242   :  { %v5637_v42 = vld [vmem:[#allocation4 + $0xcb0] sm:$0xf0]  ;;  %v6184_v39 = vld [vmem:[#allocation4 + $0x3b4] sm:$0xf0] }
 0x243   :  { %v6531_v45 = vld [vmem:[#allocation4 + $0xe94] sm:$0xf]  ;;  %v5640_v54 = vor.u32 %v6467_v41, %v5637_v42  ;;  %3753 = vmatpush.bf16.msrb.mxu1 %v5384_v53  ;;  %v4747_v41 = vld [vmem:[#allocation4 + $0x598] sm:$0xf] }
 0x244   :  { %v5893_v46 = vld [vmem:[#allocation4 + $0xeb0] sm:$0xf0]  ;;  %v6248_v42 = vld [vmem:[#allocation4 + $0x5b4] sm:$0xf0] }
 0x245   :  { %v6331_v55 = vld [vmem:[#allocation4 + $0x854] sm:$0xf]  ;;  %v5896_v59 = vor.u32 %v6531_v45, %v5893_v46  ;;  %3766 = vmatpush.bf16.msrb.mxu2 %v5640_v54  ;;  %v4236_v45 = vor.u32 %v6120_v35, %v4235_v33  ;;  %v4492_v46 = vor.u32 %v6184_v39, %v4491_v36  ;;  %v4748_v50 = vor.u32 %v6248_v42, %v4747_v41  ;;  %v6112_v53 = vld [vmem:[#allocation4 + $0x174] sm:$0xf0] }
 0x246   :  { %v5093_v56 = vld [vmem:[#allocation4 + $0x870] sm:$0xf0]  ;;  %v4459_v54 = vld [vmem:[#allocation4 + $0x358] sm:$0xf] }
 0x247   :  { %v6395_v57 = vld [vmem:[#allocation4 + $0xa54] sm:$0xf]  ;;  %v5096_v6 = vor.u32 %v6331_v55, %v5093_v56  ;;  %3779 = vmatpush.bf16.msrb.mxu3 %v5896_v59  ;;  %v5004_v55 = vor.u32 %v6312_v44, %v5003_v43  ;;  %v6176_v56 = vld [vmem:[#allocation4 + $0x374] sm:$0xf0] }
 0x248   :  { %v5349_v60 = vld [vmem:[#allocation4 + $0xa70] sm:$0xf0]  ;;  %v4971_v59 = vld [vmem:[#allocation4 + $0x758] sm:$0xf] }
 0x249   :  { %v6459_v61 = vld [vmem:[#allocation4 + $0xc54] sm:$0xf]  ;;  %v5352_v48 = vor.u32 %v6395_v57, %v5349_v60  ;;  %3741 = vmatpush.bf16.msrb.mxu0 %v5096_v6  ;;  %v4715_v57 = vld [vmem:[#allocation4 + $0x558] sm:$0xf] }
 0x24a   :  { %v5605_v62 = vld [vmem:[#allocation4 + $0xc70] sm:$0xf0]  ;;  %v6304_v60 = vld [vmem:[#allocation4 + $0x774] sm:$0xf0] }
 0x24b   :  { %v6523_v2 = vld [vmem:[#allocation4 + $0xe54] sm:$0xf]  ;;  %v5608_v11 = vor.u32 %v6459_v61, %v5605_v62  ;;  %3754 = vmatpush.bf16.msrb.mxu1 %v5352_v48  ;;  %v4204_v61 = vor.u32 %v6112_v53, %v4203_v52  ;;  %v4460_v62 = vor.u32 %v6176_v56, %v4459_v54  ;;  %v6104_v6 = vld [vmem:[#allocation4 + $0x134] sm:$0xf0] }
 0x24c   :  { %v5861_v4 = vld [vmem:[#allocation4 + $0xe70] sm:$0xf0]  ;;  %v6168_v48 = vld [vmem:[#allocation4 + $0x334] sm:$0xf0] }
 0x24d   :  { %v6323_v8 = vld [vmem:[#allocation4 + $0x814] sm:$0xf]  ;;  %v5864_v18 = vor.u32 %v6523_v2, %v5861_v4  ;;  %3767 = vmatpush.bf16.msrb.mxu2 %v5608_v11  ;;  %v4716_v2 = vor.u32 %v6240_v58, %v4715_v57  ;;  %v4171_v4 = vld [vmem:[#allocation4 + $0x118] sm:$0xf]  ;;  %v3551_v58 = vpop.f32.mrf.mxu1 }
 0x24e   :  { %v5061_v10 = vld [vmem:[#allocation4 + $0x830] sm:$0xf0]  ;;  %v4683_v11 = vld [vmem:[#allocation4 + $0x518] sm:$0xf]  ;;  %v4172_v15 = vor.u32 %v6104_v6, %v4171_v4 }
 0x24f   :  { %v6387_v12 = vld [vmem:[#allocation4 + $0xa14] sm:$0xf]  ;;  %v5064_v24 = vor.u32 %v6323_v8, %v5061_v10  ;;  %3780 = vmatpush.bf16.msrb.mxu3 %v5864_v18  ;;  %v4427_v8 = vld [vmem:[#allocation4 + $0x318] sm:$0xf]  ;;  %v4972_v10 = vor.u32 %v6304_v60, %v4971_v59  ;;  %v3536_v18 = vpop.f32.mrf.mxu0 }
 0x250   :  { %v5317_v13 = vld [vmem:[#allocation4 + $0xa30] sm:$0xf0]  ;;  %v6160_v3 = vld [vmem:[#allocation4 + $0x2f4] sm:$0xf0] }
 0x251   :  { %v6451_v14 = vld [vmem:[#allocation4 + $0xc14] sm:$0xf]  ;;  %v5320_v27 = vor.u32 %v6387_v12, %v5317_v13  ;;  %3742 = vmatpush.bf16.msrb.mxu0 %v5064_v24  ;;  %v6232_v12 = vld [vmem:[#allocation4 + $0x534] sm:$0xf0] }
 0x252   :  { %v5573_v19 = vld [vmem:[#allocation4 + $0xc30] sm:$0xf0]  ;;  %v4939_v13 = vld [vmem:[#allocation4 + $0x718] sm:$0xf] }
 0x253   :  { %v6515_v20 = vld [vmem:[#allocation4 + $0xe14] sm:$0xf]  ;;  %v5576_v28 = vor.u32 %v6451_v14, %v5573_v19  ;;  %3755 = vmatpush.bf16.msrb.mxu1 %v5320_v27  ;;  %v6296_v14 = vld [vmem:[#allocation4 + $0x734] sm:$0xf0]  ;;  %v4428_v19 = vor.u32 %v6168_v48, %v4427_v8 }
 0x254   :  { %v5829_v21 = vld [vmem:[#allocation4 + $0xe30] sm:$0xf0]  ;;  %3743 = vmatmul.bf16.vlgmr.msrb.gmra.mxu0 %v6708_v37  ;;  %v4940_v24 = vor.u32 %v6296_v14, %v4939_v13  ;;  %v4651_v25 = vld [vmem:[#allocation4 + $0x4d8] sm:$0xf] }
 0x255   :  { %v5832_v47 = vor.u32 %v6515_v20, %v5829_v21  ;;  %3768 = vmatpush.bf16.msrb.mxu2 %v5576_v28  ;;  %3787 = vmatpush.bf16.msra.mxu0 %v4268_v31  ;;  %v4684_v20 = vor.u32 %v6232_v12, %v4683_v11  ;;  %v3537_v21 = vadd.f32 %v3536_v18, %v6779_v51  ;;  %v6224_v26 = vld [vmem:[#allocation4 + $0x4f4] sm:$0xf0] }
 0x256   :  { %3756 = vmatmul.bf16.vlgmr.msrb.gmra.mxu1 %v6712_v40  ;;  %v4907_v28 = vld [vmem:[#allocation4 + $0x6d8] sm:$0xf]  ;;  %v4652_v31 = vor.u32 %v6224_v26, %v4651_v25 }
 0x257   :  { %3781 = vmatpush.bf16.msrb.mxu3 %v5832_v47  ;;  %3800 = vmatpush.bf16.msra.mxu1 %v4524_v32  ;;  %v3550_v27 = vadd.f32 %v3549_v7, %v3537_v21  ;;  %v6288_v29 = vld [vmem:[#allocation4 + $0x6f4] sm:$0xf0]  ;;  %v4396_v47 = vor.u32 %v6160_v3, %v4395_v23  ;;  %v3562_v32 = vpop.f32.mrf.mxu2  ;;  %v3538_v52 = vpop.f32.mrf.mxu0 }
 0x258   :  { %3769 = vmatmul.bf16.vlgmr.msrb.gmra.mxu2 %v6706_v34  ;;  %v4107_v51 = vld [vmem:[#allocation4 + $0x98] sm:$0xf]  ;;  %v4908_v35 = vor.u32 %v6288_v29, %v4907_v28 }
 0x259   :  { %3813 = vmatpush.bf16.msra.mxu2 %v4780_v49  ;;  %3788 = vmatpush.bf16.msra.mxu0 %v4236_v45  ;;  %v6088_v49 = vld [vmem:[#allocation4 + $0xb4] sm:$0xf0]  ;;  %v3563_v36 = vadd.f32 %v3562_v32, %v3550_v27 }
 0x25a   :  { %3782 = vmatmul.bf16.vlgmr.msrb.gmra.mxu3 %v6710_v38  ;;  %v4363_v33 = vld [vmem:[#allocation4 + $0x298] sm:$0xf] }
 0x25b   :  { %3826 = vmatpush.bf16.msra.mxu3 %v5036_v1  ;;  %3801 = vmatpush.bf16.msra.mxu1 %v4492_v46  ;;  %v3575_v1 = vpop.f32.mrf.mxu3  ;;  %v6152_v39 = vld [vmem:[#allocation4 + $0x2b4] sm:$0xf0]  ;;  %v4108_v46 = vor.u32 %v6088_v49, %v4107_v51 }
 0x25c   :  { %v4619_v41 = vld [vmem:[#allocation4 + $0x498] sm:$0xf]  ;;  %v3576_v45 = vadd.f32 %v3575_v1, %v3563_v36  ;;  %v4364_v53 = vor.u32 %v6152_v39, %v4363_v33 }
 0x25d   :  { %3814 = vmatpush.bf16.msra.mxu2 %v4748_v50  ;;  %3789 = vmatpush.bf16.msra.mxu0 %v4204_v61  ;;  %v6216_v42 = vld [vmem:[#allocation4 + $0x4b4] sm:$0xf0] }
 0x25e   :  { %v4875_v43 = vld [vmem:[#allocation4 + $0x698] sm:$0xf]  ;;  %v4620_v54 = vor.u32 %v6216_v42, %v4619_v41  ;;  %v3998_v59 = vmax.f32 %v3576_v45, 0.0 }
 0x25f   :  { %3827 = vmatpush.bf16.msra.mxu3 %v5004_v55  ;;  %3802 = vmatpush.bf16.msra.mxu1 %v4460_v62  ;;  %v6280_v44 = vld [vmem:[#allocation4 + $0x6b4] sm:$0xf0]  ;;  %v3564_v18 = vpop.f32.mrf.mxu2 }
 0x260   :  { %v4075_v50 = vld [vmem:[#allocation4 + $0x58] sm:$0xf]  ;;  %v4876_v60 = vor.u32 %v6280_v44, %v4875_v43  ;;  %v6787_v6 = vadd.f32 %v6772_v5, %v3998_v59 }
 0x261   :  { %3815 = vmatpush.bf16.msra.mxu2 %v4716_v2  ;;  %3790 = vmatpush.bf16.msra.mxu0 %v4172_v15  ;;  %v6080_v55 = vld [vmem:[#allocation4 + $0x74] sm:$0xf0] }
 0x262   :  { %v4331_v56 = vld [vmem:[#allocation4 + $0x258] sm:$0xf]  ;;  %v4076_v8 = vor.u32 %v6080_v55, %v4075_v50 }
 0x263   :  { %3828 = vmatpush.bf16.msra.mxu3 %v4972_v10  ;;  %3803 = vmatpush.bf16.msra.mxu1 %v4428_v19  ;;  %v6144_v57 = vld [vmem:[#allocation4 + $0x274] sm:$0xf0]  ;;  %v3577_v0 = vpop.f32.mrf.mxu3 }
 0x264   :  { %v4587_v61 = vld [vmem:[#allocation4 + $0x458] sm:$0xf]  ;;  %v4332_v11 = vor.u32 %v6144_v57, %v4331_v56 }
 0x265   :  { %3816 = vmatpush.bf16.msra.mxu2 %v4684_v20  ;;  %3791 = vmatpush.bf16.msra.mxu0 %v4140_v30  ;;  %v6208_v62 = vld [vmem:[#allocation4 + $0x474] sm:$0xf0] }
 0x266   :  { %v4843_v2 = vld [vmem:[#allocation4 + $0x658] sm:$0xf]  ;;  %v4588_v12 = vor.u32 %v6208_v62, %v4587_v61 }
 0x267   :  { %3829 = vmatpush.bf16.msra.mxu3 %v4940_v24  ;;  %3804 = vmatpush.bf16.msra.mxu1 %v4396_v47  ;;  %v6272_v4 = vld [vmem:[#allocation4 + $0x674] sm:$0xf0] }
 0x268   :  { %v4043_v10 = vld [vmem:[#allocation4 + $0x18] sm:$0xf]  ;;  %v4844_v19 = vor.u32 %v6272_v4, %v4843_v2 }
 0x269   :  { %3817 = vmatpush.bf16.msra.mxu2 %v4652_v31  ;;  %3792 = vmatpush.bf16.msra.mxu0 %v4108_v46  ;;  %v6072_v48 = vld [vmem:[#allocation4 + $0x34] sm:$0xf0] }
 0x26a   :  { %v4299_v13 = vld [vmem:[#allocation4 + $0x218] sm:$0xf]  ;;  %v4044_v24 = vor.u32 %v6072_v48, %v4043_v10  ;;  %v6793_v10 = vld [vmem:[#allocation6] sm:$0xff] }
 0x26b   :  { %3830 = vmatpush.bf16.msra.mxu3 %v4908_v35  ;;  %3805 = vmatpush.bf16.msra.mxu1 %v4364_v53  ;;  %v6136_v14 = vld [vmem:[#allocation4 + $0x234] sm:$0xf0]  ;;  %v591_v48 = vperm.slane %v6793_v10, 4 }
 0x26c   :  { %v4555_v15 = vld [vmem:[#allocation4 + $0x418] sm:$0xf]  ;;  %v4300_v27 = vor.u32 %v6136_v14, %v4299_v13 }
 0x26d   :  { %3818 = vmatpush.bf16.msra.mxu2 %v4620_v54  ;;  %v6200_v20 = vld [vmem:[#allocation4 + $0x434] sm:$0xf0]  ;;  %3793 = vmatpush.bf16.msra.mxu0 %v4076_v8 }
 0x26e   :  { %v4811_v21 = vld [vmem:[#allocation4 + $0x618] sm:$0xf]  ;;  %v4556_v28 = vor.u32 %v6200_v20, %v4555_v15  ;;  %v3588_v20 = vpop.f32.mrf.mxu0 }
 0x26f   :  { %3831 = vmatpush.bf16.msra.mxu3 %v4876_v60  ;;  %v6264_v7 = vld [vmem:[#allocation4 + $0x634] sm:$0xf0]  ;;  %3806 = vmatpush.bf16.msra.mxu1 %v4332_v11 }
 0x270   :  { %v5291_v5 = vld [vmem:[#allocation4 + $0x9d8] sm:$0xf]  ;;  %v4812_v47 = vor.u32 %v6264_v7, %v4811_v21 }
 0x271   :  { %v6384_v22 = vld [vmem:[#allocation4 + $0x9f4] sm:$0xf0]  ;;  %3819 = vmatpush.bf16.msra.mxu2 %v4588_v12  ;;  %3794 = vmatpush.bf16.msra.mxu0 %v4044_v24  ;;  %v3601_v24 = vpop.f32.mrf.mxu1 }
 0x272   :  { %v5547_v23 = vld [vmem:[#allocation4 + $0xbd8] sm:$0xf]  ;;  %v5292_v31 = vor.u32 %v6384_v22, %v5291_v5 }
 0x273   :  { %v6448_v3 = vld [vmem:[#allocation4 + $0xbf4] sm:$0xf0]  ;;  %3832 = vmatpush.bf16.msra.mxu3 %v4844_v19  ;;  %3807 = vmatpush.bf16.msra.mxu1 %v4300_v27 }
 0x274   :  { %v5803_v25 = vld [vmem:[#allocation4 + $0xdd8] sm:$0xf]  ;;  %v5548_v32 = vor.u32 %v6448_v3, %v5547_v23  ;;  %3795 = vmatmul.bf16.vlgmr.msra.gmra.mxu0 %v6697_v9  ;;  %v3589_v23 = vadd.f32 %v3588_v20, %v591_v48 }
 0x275   :  { %v6512_v26 = vld [vmem:[#allocation4 + $0xdf4] sm:$0xf0]  ;;  %3820 = vmatpush.bf16.msra.mxu2 %v4556_v28  ;;  %3839 = vmatpush.bf16.msrb.mxu0 %v5292_v31 }
 0x276   :  { %v6059_v29 = vld [vmem:[#allocation4 + $0xfd8] sm:$0xf]  ;;  %v5804_v51 = vor.u32 %v6512_v26, %v5803_v25  ;;  %3808 = vmatmul.bf16.vlgmr.msra.gmra.mxu1 %v6701_v17 }
 0x277   :  { %v6576_v30 = vld [vmem:[#allocation4 + $0xff4] sm:$0xf0]  ;;  %3833 = vmatpush.bf16.msra.mxu3 %v4812_v47  ;;  %3852 = vmatpush.bf16.msrb.mxu1 %v5548_v32 }
 0x278   :  { %v5259_v49 = vld [vmem:[#allocation4 + $0x998] sm:$0xf]  ;;  %v6060_v36 = vor.u32 %v6576_v30, %v6059_v29  ;;  %3821 = vmatmul.bf16.vlgmr.msra.gmra.mxu2 %v6694_v63  ;;  %v3602_v30 = vadd.f32 %v3601_v24, %v3589_v23  ;;  %v4269_v23 = vld [vmem:[#allocation4 + $0x1f8] sm:$0xf0] }
 0x279   :  { %v6376_v33 = vld [vmem:[#allocation4 + $0x9b4] sm:$0xf0]  ;;  %3865 = vmatpush.bf16.msrb.mxu2 %v5804_v51  ;;  %v6188_v24 = vld [vmem:[#allocation4 + $0x3dc] sm:$0xf] }
 0x27a   :  { %v5515_v35 = vld [vmem:[#allocation4 + $0xb98] sm:$0xf]  ;;  %v5260_v44 = vor.u32 %v6376_v33, %v5259_v49  ;;  %3834 = vmatmul.bf16.vlgmr.msra.gmra.mxu3 %v6699_v16 }
 0x27b   :  { %v6440_v1 = vld [vmem:[#allocation4 + $0xbb4] sm:$0xf0]  ;;  %3878 = vmatpush.bf16.msrb.mxu3 %v6060_v36 }
 0x27c   :  { %v5771_v39 = vld [vmem:[#allocation4 + $0xd98] sm:$0xf]  ;;  %v5516_v45 = vor.u32 %v6440_v1, %v5515_v35  ;;  %3840 = vmatpush.bf16.msrb.mxu0 %v5260_v44  ;;  %v3614_v35 = vpop.f32.mrf.mxu2 }
 0x27d   :  { %v6504_v41 = vld [vmem:[#allocation4 + $0xdb4] sm:$0xf0] }
 0x27e   :  { %v6027_v42 = vld [vmem:[#allocation4 + $0xf98] sm:$0xf]  ;;  %v5772_v46 = vor.u32 %v6504_v41, %v5771_v39  ;;  %3853 = vmatpush.bf16.msrb.mxu1 %v5516_v45 }
 0x27f   :  { %v6568_v43 = vld [vmem:[#allocation4 + $0xfb4] sm:$0xf0] }
 0x280   :  { %v5227_v50 = vld [vmem:[#allocation4 + $0x958] sm:$0xf]  ;;  %v6028_v54 = vor.u32 %v6568_v43, %v6027_v42  ;;  %3866 = vmatpush.bf16.msrb.mxu2 %v5772_v46  ;;  %v3615_v42 = vadd.f32 %v3614_v35, %v3602_v30  ;;  %v3627_v43 = vpop.f32.mrf.mxu3  ;;  %v6316_v30 = vld [vmem:[#allocation4 + $0x7dc] sm:$0xf] }
 0x281   :  { %v6368_v52 = vld [vmem:[#allocation4 + $0x974] sm:$0xf0]  ;;  %v4237_v35 = vld [vmem:[#allocation4 + $0x1b8] sm:$0xf0] }
 0x282   :  { %v5483_v53 = vld [vmem:[#allocation4 + $0xb58] sm:$0xf]  ;;  %v5228_v60 = vor.u32 %v6368_v52, %v5227_v50  ;;  %3879 = vmatpush.bf16.msrb.mxu3 %v6028_v54  ;;  %v6796_v50 = vadd.f32 %v3627_v43, %v3615_v42  ;;  %v3590_v52 = vpop.f32.mrf.mxu0  ;;  %v4749_v42 = vld [vmem:[#allocation4 + $0x5b8] sm:$0xf0] }
 0x283   :  { %v6432_v55 = vld [vmem:[#allocation4 + $0xb74] sm:$0xf0]  ;;  %v6308_v43 = vld [vmem:[#allocation4 + $0x79c] sm:$0xf] }
 0x284   :  { %v5739_v56 = vld [vmem:[#allocation4 + $0xd58] sm:$0xf]  ;;  %v5484_v62 = vor.u32 %v6432_v55, %v5483_v53  ;;  %3841 = vmatpush.bf16.msrb.mxu0 %v5228_v60 }
 0x285   :  { %v6496_v57 = vld [vmem:[#allocation4 + $0xd74] sm:$0xf0] }
 0x286   :  { %v5995_v58 = vld [vmem:[#allocation4 + $0xf58] sm:$0xf]  ;;  %v5740_v2 = vor.u32 %v6496_v57, %v5739_v56  ;;  %3854 = vmatpush.bf16.msrb.mxu1 %v5484_v62 }
 0x287   :  { %v6560_v59 = vld [vmem:[#allocation4 + $0xf74] sm:$0xf0] }
 0x288   :  { %v5195_v61 = vld [vmem:[#allocation4 + $0x918] sm:$0xf]  ;;  %v5996_v11 = vor.u32 %v6560_v59, %v5995_v58  ;;  %3867 = vmatpush.bf16.msrb.mxu2 %v5740_v2  ;;  %v3603_v58 = vpop.f32.mrf.mxu1 }
 0x289   :  { %v6360_v4 = vld [vmem:[#allocation4 + $0x934] sm:$0xf0]  ;;  %v6236_v58 = vld [vmem:[#allocation4 + $0x55c] sm:$0xf] }
 0x28a   :  { %v5451_v8 = vld [vmem:[#allocation4 + $0xb18] sm:$0xf]  ;;  %v5196_v19 = vor.u32 %v6360_v4, %v5195_v61  ;;  %3880 = vmatpush.bf16.msrb.mxu3 %v5996_v11 }
 0x28b   :  { %v6424_v12 = vld [vmem:[#allocation4 + $0xb34] sm:$0xf0] }
 0x28c   :  { %v5707_v13 = vld [vmem:[#allocation4 + $0xd18] sm:$0xf]  ;;  %v5452_v21 = vor.u32 %v6424_v12, %v5451_v8  ;;  %3842 = vmatpush.bf16.msrb.mxu0 %v5196_v19  ;;  %v3616_v19 = vpop.f32.mrf.mxu2 }
 0x28d   :  { %v6488_v14 = vld [vmem:[#allocation4 + $0xd34] sm:$0xf0]  ;;  %v4941_v19 = vld [vmem:[#allocation4 + $0x738] sm:$0xf0] }
 0x28e   :  { %v5963_v15 = vld [vmem:[#allocation4 + $0xf18] sm:$0xf]  ;;  %v5708_v7 = vor.u32 %v6488_v14, %v5707_v13  ;;  %3855 = vmatpush.bf16.msrb.mxu1 %v5452_v21 }
 0x28f   :  { %v6552_v18 = vld [vmem:[#allocation4 + $0xf34] sm:$0xf0] }
 0x290   :  { %v5163_v0 = vld [vmem:[#allocation4 + $0x8d8] sm:$0xf]  ;;  %v5964_v3 = vor.u32 %v6552_v18, %v5963_v15  ;;  %3868 = vmatpush.bf16.msrb.mxu2 %v5708_v7 }
 0x291   :  { %v6352_v5 = vld [vmem:[#allocation4 + $0x8f4] sm:$0xf0] }
 0x292   :  { %v5419_v22 = vld [vmem:[#allocation4 + $0xad8] sm:$0xf]  ;;  %v5164_v47 = vor.u32 %v6352_v5, %v5163_v0  ;;  %3881 = vmatpush.bf16.msrb.mxu3 %v5964_v3  ;;  %v3629_v5 = vpop.f32.mrf.mxu3 }
 0x293   :  { %v6416_v25 = vld [vmem:[#allocation4 + $0xaf4] sm:$0xf0] }
 0x294   :  { %v5675_v26 = vld [vmem:[#allocation4 + $0xcd8] sm:$0xf]  ;;  %v5420_v31 = vor.u32 %v6416_v25, %v5419_v22  ;;  %3843 = vmatpush.bf16.msrb.mxu0 %v5164_v47  ;;  %v6124_v22 = vld [vmem:[#allocation4 + $0x1dc] sm:$0xf] }
 0x295   :  { %v6480_v27 = vld [vmem:[#allocation4 + $0xcf4] sm:$0xf0]  ;;  %v4525_v25 = vld [vmem:[#allocation4 + $0x3f8] sm:$0xf0] }
 0x296   :  { %v5931_v28 = vld [vmem:[#allocation4 + $0xed8] sm:$0xf]  ;;  %v5676_v32 = vor.u32 %v6480_v27, %v5675_v26  ;;  %3856 = vmatpush.bf16.msrb.mxu1 %v5420_v31  ;;  %v6252_v26 = vld [vmem:[#allocation4 + $0x5dc] sm:$0xf] }
 0x297   :  { %v6544_v29 = vld [vmem:[#allocation4 + $0xef4] sm:$0xf0]  ;;  %v4781_v27 = vld [vmem:[#allocation4 + $0x5f8] sm:$0xf0] }
 0x298   :  { %v5131_v51 = vld [vmem:[#allocation4 + $0x898] sm:$0xf]  ;;  %v5932_v36 = vor.u32 %v6544_v29, %v5931_v28  ;;  %3869 = vmatpush.bf16.msrb.mxu2 %v5676_v32  ;;  %v5037_v47 = vld [vmem:[#allocation4 + $0x7f8] sm:$0xf0]  ;;  %v4272_v32 = vor.u32 %v6124_v22, %v4269_v23  ;;  %v3653_v22 = vpop.f32.mrf.mxu1 }
 0x299   :  { %v6344_v49 = vld [vmem:[#allocation4 + $0x8b4] sm:$0xf0]  ;;  %v6092_v23 = vld [vmem:[#allocation4 + $0xdc] sm:$0xf] }
 0x29a   :  { %v5387_v33 = vld [vmem:[#allocation4 + $0xa98] sm:$0xf]  ;;  %v5132_v46 = vor.u32 %v6344_v49, %v5131_v51  ;;  %3882 = vmatpush.bf16.msrb.mxu3 %v5932_v36  ;;  %v4528_v51 = vor.u32 %v6188_v24, %v4525_v25  ;;  %v4784_v49 = vor.u32 %v6252_v26, %v4781_v27  ;;  %v6180_v36 = vld [vmem:[#allocation4 + $0x39c] sm:$0xf] }
 0x29b   :  { %v6408_v1 = vld [vmem:[#allocation4 + $0xab4] sm:$0xf0]  ;;  %v4141_v24 = vld [vmem:[#allocation4 + $0xf8] sm:$0xf0] }
 0x29c   :  { %v5643_v39 = vld [vmem:[#allocation4 + $0xc98] sm:$0xf]  ;;  %v5388_v53 = vor.u32 %v6408_v1, %v5387_v33  ;;  %3844 = vmatpush.bf16.msrb.mxu0 %v5132_v46  ;;  %v6116_v33 = vld [vmem:[#allocation4 + $0x19c] sm:$0xf]  ;;  %v5040_v1 = vor.u32 %v6316_v30, %v5037_v47 }
 0x29d   :  { %v6472_v41 = vld [vmem:[#allocation4 + $0xcb4] sm:$0xf0]  ;;  %v4397_v26 = vld [vmem:[#allocation4 + $0x2f8] sm:$0xf0] }
 0x29e   :  { %v5899_v44 = vld [vmem:[#allocation4 + $0xe98] sm:$0xf]  ;;  %v5644_v54 = vor.u32 %v6472_v41, %v5643_v39  ;;  %3857 = vmatpush.bf16.msrb.mxu1 %v5388_v53  ;;  %v4493_v39 = vld [vmem:[#allocation4 + $0x3b8] sm:$0xf0] }
 0x29f   :  { %v6536_v45 = vld [vmem:[#allocation4 + $0xeb4] sm:$0xf0]  ;;  %v6244_v41 = vld [vmem:[#allocation4 + $0x59c] sm:$0xf]  ;;  %v4496_v46 = vor.u32 %v6180_v36, %v4493_v39  ;;  %v3679_v39 = vpop.f32.mrf.mxu3 }
 0x2a0   :  { %v5099_v55 = vld [vmem:[#allocation4 + $0x858] sm:$0xf]  ;;  %v5900_v59 = vor.u32 %v6536_v45, %v5899_v44  ;;  %3870 = vmatpush.bf16.msrb.mxu2 %v5644_v54  ;;  %v5005_v44 = vld [vmem:[#allocation4 + $0x7b8] sm:$0xf0]  ;;  %v4240_v45 = vor.u32 %v6116_v33, %v4237_v35  ;;  %v4752_v52 = vor.u32 %v6244_v41, %v4749_v42 }
 0x2a1   :  { %v6336_v56 = vld [vmem:[#allocation4 + $0x874] sm:$0xf0]  ;;  %v6108_v53 = vld [vmem:[#allocation4 + $0x15c] sm:$0xf] }
 0x2a2   :  { %v5355_v57 = vld [vmem:[#allocation4 + $0xa58] sm:$0xf]  ;;  %v5100_v8 = vor.u32 %v6336_v56, %v5099_v55  ;;  %3883 = vmatpush.bf16.msrb.mxu3 %v5900_v59  ;;  %v4205_v54 = vld [vmem:[#allocation4 + $0x178] sm:$0xf0]  ;;  %v5008_v56 = vor.u32 %v6308_v43, %v5005_v44 }
 0x2a3   :  { %v6400_v60 = vld [vmem:[#allocation4 + $0xa74] sm:$0xf0]  ;;  %v6172_v55 = vld [vmem:[#allocation4 + $0x35c] sm:$0xf] }
 0x2a4   :  { %v5611_v61 = vld [vmem:[#allocation4 + $0xc58] sm:$0xf]  ;;  %v5356_v12 = vor.u32 %v6400_v60, %v5355_v57  ;;  %3845 = vmatpush.bf16.msrb.mxu0 %v5100_v8  ;;  %v4461_v57 = vld [vmem:[#allocation4 + $0x378] sm:$0xf0] }
 0x2a5   :  { %v6464_v62 = vld [vmem:[#allocation4 + $0xc74] sm:$0xf0]  ;;  %v4717_v59 = vld [vmem:[#allocation4 + $0x578] sm:$0xf0] }
 0x2a6   :  { %v5867_v2 = vld [vmem:[#allocation4 + $0xe58] sm:$0xf]  ;;  %v5612_v13 = vor.u32 %v6464_v62, %v5611_v61  ;;  %3858 = vmatpush.bf16.msrb.mxu1 %v5356_v12  ;;  %v6300_v60 = vld [vmem:[#allocation4 + $0x75c] sm:$0xf]  ;;  %v4208_v62 = vor.u32 %v6108_v53, %v4205_v54 }
 0x2a7   :  { %v6528_v4 = vld [vmem:[#allocation4 + $0xe74] sm:$0xf0]  ;;  %v4973_v61 = vld [vmem:[#allocation4 + $0x778] sm:$0xf0] }
 0x2a8   :  { %v5067_v48 = vld [vmem:[#allocation4 + $0x818] sm:$0xf]  ;;  %v5868_v20 = vor.u32 %v6528_v4, %v5867_v2  ;;  %3871 = vmatpush.bf16.msrb.mxu2 %v5612_v13  ;;  %v4464_v2 = vor.u32 %v6172_v55, %v4461_v57  ;;  %v4720_v4 = vor.u32 %v6236_v58, %v4717_v59  ;;  %v6100_v8 = vld [vmem:[#allocation4 + $0x11c] sm:$0xf]  ;;  %v4976_v12 = vor.u32 %v6300_v60, %v4973_v61  ;;  %v3655_v60 = vpop.f32.mrf.mxu1 }
 0x2a9   :  { %v6328_v11 = vld [vmem:[#allocation4 + $0x834] sm:$0xf0]  ;;  %v4429_v13 = vld [vmem:[#allocation4 + $0x338] sm:$0xf0] }
 0x2aa   :  { %v5323_v14 = vld [vmem:[#allocation4 + $0xa18] sm:$0xf]  ;;  %v5068_v3 = vor.u32 %v6328_v11, %v5067_v48  ;;  %3884 = vmatpush.bf16.msrb.mxu3 %v5868_v20  ;;  %v4173_v48 = vld [vmem:[#allocation4 + $0x138] sm:$0xf0] }
 0x2ab   :  { %v6392_v15 = vld [vmem:[#allocation4 + $0xa34] sm:$0xf0]  ;;  %v6164_v11 = vld [vmem:[#allocation4 + $0x31c] sm:$0xf]  ;;  %v4176_v20 = vor.u32 %v6100_v8, %v4173_v48 }
 0x2ac   :  { %v5579_v18 = vld [vmem:[#allocation4 + $0xc18] sm:$0xf]  ;;  %v5324_v28 = vor.u32 %v6392_v15, %v5323_v14  ;;  %3846 = vmatpush.bf16.msrb.mxu0 %v5068_v3  ;;  %v6228_v14 = vld [vmem:[#allocation4 + $0x51c] sm:$0xf] }
 0x2ad   :  { %v6456_v21 = vld [vmem:[#allocation4 + $0xc34] sm:$0xf0]  ;;  %v4685_v15 = vld [vmem:[#allocation4 + $0x538] sm:$0xf0] }
 0x2ae   :  { %v5835_v7 = vld [vmem:[#allocation4 + $0xe18] sm:$0xf]  ;;  %v5580_v29 = vor.u32 %v6456_v21, %v5579_v18  ;;  %3859 = vmatpush.bf16.msrb.mxu1 %v5324_v28  ;;  %v6292_v18 = vld [vmem:[#allocation4 + $0x71c] sm:$0xf]  ;;  %v3640_v21 = vpop.f32.mrf.mxu0 }
 0x2af   :  { %v6520_v0 = vld [vmem:[#allocation4 + $0xe34] sm:$0xf0]  ;;  %3847 = vmatmul.bf16.vlgmr.msrb.gmra.mxu0 %v6708_v37  ;;  %v3641_v5 = vadd.f32 %v3640_v21, %v6796_v50  ;;  %v6156_v3 = vld [vmem:[#allocation4 + $0x2dc] sm:$0xf]  ;;  %v4944_v25 = vor.u32 %v6292_v18, %v4941_v19 }
 0x2b0   :  { %v5836_v31 = vor.u32 %v6520_v0, %v5835_v7  ;;  %3872 = vmatpush.bf16.msrb.mxu2 %v5580_v29  ;;  %3891 = vmatpush.bf16.msra.mxu0 %v4272_v32  ;;  %v4432_v7 = vor.u32 %v6164_v11, %v4429_v13  ;;  %v4688_v0 = vor.u32 %v6228_v14, %v4685_v15  ;;  %v6220_v27 = vld [vmem:[#allocation4 + $0x4dc] sm:$0xf] }
 0x2b1   :  { %3860 = vmatmul.bf16.vlgmr.msrb.gmra.mxu1 %v6712_v40  ;;  %v4653_v28 = vld [vmem:[#allocation4 + $0x4f8] sm:$0xf0]  ;;  %v3654_v29 = vadd.f32 %v3653_v22, %v3641_v5  ;;  %v4400_v32 = vor.u32 %v6156_v3, %v4397_v26 }
 0x2b2   :  { %3885 = vmatpush.bf16.msrb.mxu3 %v5836_v31  ;;  %3904 = vmatpush.bf16.msra.mxu1 %v4528_v51  ;;  %v6284_v30 = vld [vmem:[#allocation4 + $0x6dc] sm:$0xf]  ;;  %v4144_v31 = vor.u32 %v6092_v23, %v4141_v24  ;;  %v4656_v51 = vor.u32 %v6220_v27, %v4653_v28  ;;  %v3681_v24 = vpop.f32.mrf.mxu3 }
 0x2b3   :  { %3873 = vmatmul.bf16.vlgmr.msrb.gmra.mxu2 %v6706_v34  ;;  %v4909_v47 = vld [vmem:[#allocation4 + $0x6f8] sm:$0xf0]  ;;  %v3705_v24 = vpop.f32.mrf.mxu1 }
 0x2b4   :  { %3917 = vmatpush.bf16.msra.mxu2 %v4784_v49  ;;  %3892 = vmatpush.bf16.msra.mxu0 %v4240_v45  ;;  %v3666_v49 = vpop.f32.mrf.mxu2  ;;  %v6084_v50 = vld [vmem:[#allocation4 + $0x9c] sm:$0xf]  ;;  %v4912_v36 = vor.u32 %v6284_v30, %v4909_v47 }
 0x2b5   :  { %3886 = vmatmul.bf16.vlgmr.msrb.gmra.mxu3 %v6710_v38  ;;  %v4109_v33 = vld [vmem:[#allocation4 + $0xb8] sm:$0xf0] }
 0x2b6   :  { %3930 = vmatpush.bf16.msra.mxu3 %v5040_v1  ;;  %3905 = vmatpush.bf16.msra.mxu1 %v4496_v46  ;;  %v6148_v35 = vld [vmem:[#allocation4 + $0x29c] sm:$0xf]  ;;  %v3667_v1 = vadd.f32 %v3666_v49, %v3654_v29  ;;  %v3642_v54 = vpop.f32.mrf.mxu0 }
 0x2b7   :  { %v4365_v41 = vld [vmem:[#allocation4 + $0x2b8] sm:$0xf0] }
 0x2b8   :  { %3918 = vmatpush.bf16.msra.mxu2 %v4752_v52  ;;  %3893 = vmatpush.bf16.msra.mxu0 %v4208_v62  ;;  %v6212_v42 = vld [vmem:[#allocation4 + $0x49c] sm:$0xf]  ;;  %v3680_v46 = vadd.f32 %v3679_v39, %v3667_v1  ;;  %v4112_v52 = vor.u32 %v6084_v50, %v4109_v33  ;;  %v4368_v55 = vor.u32 %v6148_v35, %v4365_v41 }
 0x2b9   :  { %v4621_v43 = vld [vmem:[#allocation4 + $0x4b8] sm:$0xf0] }
 0x2ba   :  { %3931 = vmatpush.bf16.msra.mxu3 %v5008_v56  ;;  %3906 = vmatpush.bf16.msra.mxu1 %v4464_v2  ;;  %v6276_v44 = vld [vmem:[#allocation4 + $0x69c] sm:$0xf]  ;;  %v4624_v56 = vor.u32 %v6212_v42, %v4621_v43  ;;  %v3999_v61 = vmax.f32 %v3680_v46, 0.0 }
 0x2bb   :  { %v4877_v45 = vld [vmem:[#allocation4 + $0x6b8] sm:$0xf0] }
 0x2bc   :  { %3919 = vmatpush.bf16.msra.mxu2 %v4720_v4  ;;  %3894 = vmatpush.bf16.msra.mxu0 %v4176_v20  ;;  %v6076_v53 = vld [vmem:[#allocation4 + $0x5c] sm:$0xf]  ;;  %v4880_v62 = vor.u32 %v6276_v44, %v4877_v45  ;;  %v6804_v11 = vadd.f32 %v6787_v6, %v3999_v61 }
 0x2bd   :  { %v4077_v57 = vld [vmem:[#allocation4 + $0x78] sm:$0xf0] }
 0x2be   :  { %3932 = vmatpush.bf16.msra.mxu3 %v4976_v12  ;;  %3907 = vmatpush.bf16.msra.mxu1 %v4432_v7  ;;  %v6140_v58 = vld [vmem:[#allocation4 + $0x25c] sm:$0xf]  ;;  %v4080_v12 = vor.u32 %v6076_v53, %v4077_v57  ;;  %v3668_v7 = vpop.f32.mrf.mxu2 }
 0x2bf   :  { %v4333_v59 = vld [vmem:[#allocation4 + $0x278] sm:$0xf0] }
 0x2c0   :  { %3920 = vmatpush.bf16.msra.mxu2 %v4688_v0  ;;  %3895 = vmatpush.bf16.msra.mxu0 %v4144_v31  ;;  %v6204_v2 = vld [vmem:[#allocation4 + $0x45c] sm:$0xf]  ;;  %v4336_v15 = vor.u32 %v6140_v58, %v4333_v59 }
 0x2c1   :  { %v4589_v4 = vld [vmem:[#allocation4 + $0x478] sm:$0xf0] }
 0x2c2   :  { %3933 = vmatpush.bf16.msra.mxu3 %v4944_v25  ;;  %3908 = vmatpush.bf16.msra.mxu1 %v4400_v32  ;;  %v6268_v8 = vld [vmem:[#allocation4 + $0x65c] sm:$0xf]  ;;  %v4592_v18 = vor.u32 %v6204_v2, %v4589_v4 }
 0x2c3   :  { %v4845_v48 = vld [vmem:[#allocation4 + $0x678] sm:$0xf0] }
 0x2c4   :  { %3921 = vmatpush.bf16.msra.mxu2 %v4656_v51  ;;  %3896 = vmatpush.bf16.msra.mxu0 %v4112_v52  ;;  %v6068_v13 = vld [vmem:[#allocation4 + $0x1c] sm:$0xf]  ;;  %v4848_v0 = vor.u32 %v6268_v8, %v4845_v48 }
 0x2c5   :  { %v4045_v14 = vld [vmem:[#allocation4 + $0x38] sm:$0xf0] }
 0x2c6   :  { %3934 = vmatpush.bf16.msra.mxu3 %v4912_v36  ;;  %3909 = vmatpush.bf16.msra.mxu1 %v4368_v55  ;;  %v6132_v19 = vld [vmem:[#allocation4 + $0x21c] sm:$0xf]  ;;  %v4048_v26 = vor.u32 %v6068_v13, %v4045_v14  ;;  %v592_v13 = vperm.slane %v6793_v10, 5 }
 0x2c7   :  { %v4301_v20 = vld [vmem:[#allocation4 + $0x238] sm:$0xf0] }
 0x2c8   :  { %3922 = vmatpush.bf16.msra.mxu2 %v4624_v56  ;;  %v6196_v21 = vld [vmem:[#allocation4 + $0x41c] sm:$0xf]  ;;  %3897 = vmatpush.bf16.msra.mxu0 %v4080_v12  ;;  %v4304_v30 = vor.u32 %v6132_v19, %v4301_v20 }
 0x2c9   :  { %v4557_v5 = vld [vmem:[#allocation4 + $0x438] sm:$0xf0] }
 0x2ca   :  { %3935 = vmatpush.bf16.msra.mxu3 %v4880_v62  ;;  %v6260_v22 = vld [vmem:[#allocation4 + $0x61c] sm:$0xf]  ;;  %3910 = vmatpush.bf16.msra.mxu1 %v4336_v15  ;;  %v4560_v47 = vor.u32 %v6196_v21, %v4557_v5  ;;  %v3692_v21 = vpop.f32.mrf.mxu0 }
 0x2cb   :  { %v4813_v23 = vld [vmem:[#allocation4 + $0x638] sm:$0xf0] }
 0x2cc   :  { %v6380_v6 = vld [vmem:[#allocation4 + $0x9dc] sm:$0xf]  ;;  %3923 = vmatpush.bf16.msra.mxu2 %v4592_v18  ;;  %v4816_v51 = vor.u32 %v6260_v22, %v4813_v23  ;;  %3898 = vmatpush.bf16.msra.mxu0 %v4048_v26  ;;  %v3693_v23 = vadd.f32 %v3692_v21, %v592_v13 }
 0x2cd   :  { %v5293_v3 = vld [vmem:[#allocation4 + $0x9f8] sm:$0xf0] }
 0x2ce   :  { %v6444_v25 = vld [vmem:[#allocation4 + $0xbdc] sm:$0xf]  ;;  %3936 = vmatpush.bf16.msra.mxu3 %v4848_v0  ;;  %v5296_v49 = vor.u32 %v6380_v6, %v5293_v3  ;;  %3911 = vmatpush.bf16.msra.mxu1 %v4304_v30 }
 0x2cf   :  { %v5549_v27 = vld [vmem:[#allocation4 + $0xbf8] sm:$0xf0]  ;;  %3899 = vmatmul.bf16.vlgmr.msra.gmra.mxu0 %v6697_v9 }
 0x2d0   :  { %v6508_v28 = vld [vmem:[#allocation4 + $0xddc] sm:$0xf]  ;;  %v5552_v50 = vor.u32 %v6444_v25, %v5549_v27  ;;  %3924 = vmatpush.bf16.msra.mxu2 %v4560_v47  ;;  %3943 = vmatpush.bf16.msrb.mxu0 %v5296_v49 }
 0x2d1   :  { %v5805_v29 = vld [vmem:[#allocation4 + $0xdf8] sm:$0xf0]  ;;  %3912 = vmatmul.bf16.vlgmr.msra.gmra.mxu1 %v6701_v17 }
 0x2d2   :  { %v6572_v31 = vld [vmem:[#allocation4 + $0xfdc] sm:$0xf]  ;;  %v5808_v33 = vor.u32 %v6508_v28, %v5805_v29  ;;  %3937 = vmatpush.bf16.msra.mxu3 %v4816_v51  ;;  %3956 = vmatpush.bf16.msrb.mxu1 %v5552_v50  ;;  %v3706_v29 = vadd.f32 %v3705_v24, %v3693_v23  ;;  %v3718_v50 = vpop.f32.mrf.mxu2 }
 0x2d3   :  { %v6061_v32 = vld [vmem:[#allocation4 + $0xff8] sm:$0xf0]  ;;  %3925 = vmatmul.bf16.vlgmr.msra.gmra.mxu2 %v6694_v63 }
 0x2d4   :  { %v6372_v35 = vld [vmem:[#allocation4 + $0x99c] sm:$0xf]  ;;  %v6064_v39 = vor.u32 %v6572_v31, %v6061_v32  ;;  %3969 = vmatpush.bf16.msrb.mxu2 %v5808_v33 }
 0x2d5   :  { %v5261_v36 = vld [vmem:[#allocation4 + $0x9b8] sm:$0xf0]  ;;  %3938 = vmatmul.bf16.vlgmr.msra.gmra.mxu3 %v6699_v16 }
 0x2d6   :  { %v6436_v1 = vld [vmem:[#allocation4 + $0xb9c] sm:$0xf]  ;;  %v5264_v46 = vor.u32 %v6372_v35, %v5261_v36  ;;  %3982 = vmatpush.bf16.msrb.mxu3 %v6064_v39  ;;  %v3719_v39 = vadd.f32 %v3718_v50, %v3706_v29 }
 0x2d7   :  { %v5517_v41 = vld [vmem:[#allocation4 + $0xbb8] sm:$0xf0] }
 0x2d8   :  { %v6500_v42 = vld [vmem:[#allocation4 + $0xd9c] sm:$0xf]  ;;  %v5520_v52 = vor.u32 %v6436_v1, %v5517_v41  ;;  %3944 = vmatpush.bf16.msrb.mxu0 %v5264_v46  ;;  %v3731_v41 = vpop.f32.mrf.mxu3  ;;  %v3694_v46 = vpop.f32.mrf.mxu0 }
 0x2d9   :  { %v5773_v43 = vld [vmem:[#allocation4 + $0xdb8] sm:$0xf0] }
 0x2da   :  { %v6564_v44 = vld [vmem:[#allocation4 + $0xf9c] sm:$0xf]  ;;  %v5776_v53 = vor.u32 %v6500_v42, %v5773_v43  ;;  %3957 = vmatpush.bf16.msrb.mxu1 %v5520_v52 }
 0x2db   :  { %v6029_v45 = vld [vmem:[#allocation4 + $0xfb8] sm:$0xf0] }
 0x2dc   :  { %v6364_v54 = vld [vmem:[#allocation4 + $0x95c] sm:$0xf]  ;;  %v6032_v57 = vor.u32 %v6564_v44, %v6029_v45  ;;  %3970 = vmatpush.bf16.msrb.mxu2 %v5776_v53  ;;  %v3732_v45 = vadd.f32 %v3731_v41, %v3719_v39 }
 0x2dd   :  { %v5229_v55 = vld [vmem:[#allocation4 + $0x978] sm:$0xf0] }
 0x2de   :  { %v6428_v56 = vld [vmem:[#allocation4 + $0xb5c] sm:$0xf]  ;;  %v5232_v2 = vor.u32 %v6364_v54, %v5229_v55  ;;  %3983 = vmatpush.bf16.msrb.mxu3 %v6032_v57  ;;  %v3707_v57 = vpop.f32.mrf.mxu1 }
 0x2df   :  { %v5485_v58 = vld [vmem:[#allocation4 + $0xb78] sm:$0xf0] }
 0x2e0   :  { %v6492_v59 = vld [vmem:[#allocation4 + $0xd5c] sm:$0xf]  ;;  %v5488_v8 = vor.u32 %v6428_v56, %v5485_v58  ;;  %3945 = vmatpush.bf16.msrb.mxu0 %v5232_v2 }
 0x2e1   :  { %v5741_v60 = vld [vmem:[#allocation4 + $0xd78] sm:$0xf0] }
 0x2e2   :  { %v6556_v61 = vld [vmem:[#allocation4 + $0xf5c] sm:$0xf]  ;;  %v5744_v48 = vor.u32 %v6492_v59, %v5741_v60  ;;  %3958 = vmatpush.bf16.msrb.mxu1 %v5488_v8 }
 0x2e3   :  { %v5997_v62 = vld [vmem:[#allocation4 + $0xf78] sm:$0xf0] }
 0x2e4   :  { %v6356_v4 = vld [vmem:[#allocation4 + $0x91c] sm:$0xf]  ;;  %v6000_v14 = vor.u32 %v6556_v61, %v5997_v62  ;;  %3971 = vmatpush.bf16.msrb.mxu2 %v5744_v48 }
 0x2e5   :  { %v5197_v12 = vld [vmem:[#allocation4 + $0x938] sm:$0xf0] }
 0x2e6   :  { %v6420_v63 = vld [vmem:[#allocation4 + $0xb1c] sm:$0xf]  ;;  %v5200_v20 = vor.u32 %v6356_v4, %v5197_v12  ;;  %3984 = vmatpush.bf16.msrb.mxu3 %v6000_v14  ;;  %v3720_v14 = vpop.f32.mrf.mxu2  ;;  %v3757_v24 = vpop.f32.mrf.mxu1 }
 0x2e7   :  { %v5453_v16 = vld [vmem:[#allocation4 + $0xb38] sm:$0xf0] }
 0x2e8   :  { %v6484_v15 = vld [vmem:[#allocation4 + $0xd1c] sm:$0xf]  ;;  %v5456_v17 = vor.u32 %v6420_v63, %v5453_v16  ;;  %3946 = vmatpush.bf16.msrb.mxu0 %v5200_v20 }
 0x2e9   :  { %v5709_v18 = vld [vmem:[#allocation4 + $0xd38] sm:$0xf0] }
 0x2ea   :  { %v6548_v19 = vld [vmem:[#allocation4 + $0xf1c] sm:$0xf]  ;;  %v5712_v7 = vor.u32 %v6484_v15, %v5709_v18  ;;  %3959 = vmatpush.bf16.msrb.mxu1 %v5456_v17 }
 0x2eb   :  { %v5965_v9 = vld [vmem:[#allocation4 + $0xf38] sm:$0xf0] }
 0x2ec   :  { %v6348_v0 = vld [vmem:[#allocation4 + $0x8dc] sm:$0xf]  ;;  %v5968_v6 = vor.u32 %v6548_v19, %v5965_v9  ;;  %3972 = vmatpush.bf16.msrb.mxu2 %v5712_v7  ;;  %v3733_v9 = vpop.f32.mrf.mxu3 }
 0x2ed   :  { %v5165_v5 = vld [vmem:[#allocation4 + $0x8f8] sm:$0xf0] }
 0x2ee   :  { %v6412_v22 = vld [vmem:[#allocation4 + $0xadc] sm:$0xf]  ;;  %v5168_v30 = vor.u32 %v6348_v0, %v5165_v5  ;;  %3985 = vmatpush.bf16.msrb.mxu3 %v5968_v6  ;;  %v3759_v29 = vpop.f32.mrf.mxu1 }
 0x2ef   :  { %v5421_v3 = vld [vmem:[#allocation4 + $0xaf8] sm:$0xf0] }
 0x2f0   :  { %v6476_v25 = vld [vmem:[#allocation4 + $0xcdc] sm:$0xf]  ;;  %v5424_v47 = vor.u32 %v6412_v22, %v5421_v3  ;;  %3947 = vmatpush.bf16.msrb.mxu0 %v5168_v30  ;;  %v3744_v22 = vpop.f32.mrf.mxu0  ;;  %v3770_v3 = vpop.f32.mrf.mxu2 }
 0x2f1   :  { %v5677_v26 = vld [vmem:[#allocation4 + $0xcf8] sm:$0xf0]  ;;  %v3745_v23 = vadd.f32 %v3744_v22, %v3732_v45 }
 0x2f2   :  { %v6540_v27 = vld [vmem:[#allocation4 + $0xedc] sm:$0xf]  ;;  %v5680_v31 = vor.u32 %v6476_v25, %v5677_v26  ;;  %3960 = vmatpush.bf16.msrb.mxu1 %v5424_v47 }
 0x2f3   :  { %v5933_v28 = vld [vmem:[#allocation4 + $0xef8] sm:$0xf0]  ;;  %v3758_v6 = vadd.f32 %v3757_v24, %v3745_v23 }
 0x2f4   :  { %v6340_v32 = vld [vmem:[#allocation4 + $0x89c] sm:$0xf]  ;;  %v5936_v33 = vor.u32 %v6540_v27, %v5933_v28  ;;  %3973 = vmatpush.bf16.msrb.mxu2 %v5680_v31  ;;  %v3783_v26 = vpop.f32.mrf.mxu3 }
 0x2f5   :  { %v5133_v51 = vld [vmem:[#allocation4 + $0x8b8] sm:$0xf0]  ;;  %v3771_v25 = vadd.f32 %v3770_v3, %v3758_v6 }
 0x2f6   :  { %v6404_v49 = vld [vmem:[#allocation4 + $0xa9c] sm:$0xf]  ;;  %v5136_v44 = vor.u32 %v6340_v32, %v5133_v51  ;;  %3986 = vmatpush.bf16.msrb.mxu3 %v5936_v33 }
 0x2f7   :  { %v5389_v35 = vld [vmem:[#allocation4 + $0xab8] sm:$0xf0]  ;;  %v3784_v27 = vadd.f32 %v3783_v26, %v3771_v25 }
 0x2f8   :  { %v6468_v36 = vld [vmem:[#allocation4 + $0xc9c] sm:$0xf]  ;;  %v5392_v52 = vor.u32 %v6404_v49, %v5389_v35  ;;  %3948 = vmatpush.bf16.msrb.mxu0 %v5136_v44  ;;  %v3746_v28 = vpop.f32.mrf.mxu0 }
 0x2f9   :  { %v5645_v1 = vld [vmem:[#allocation4 + $0xcb8] sm:$0xf0]  ;;  %v4000_v30 = vmax.f32 %v3784_v27, 0.0 }
 0x2fa   :  { %v6532_v42 = vld [vmem:[#allocation4 + $0xe9c] sm:$0xf]  ;;  %v5648_v53 = vor.u32 %v6468_v36, %v5645_v1  ;;  %3961 = vmatpush.bf16.msrb.mxu1 %v5392_v52 }
 0x2fb   :  { %v5901_v43 = vld [vmem:[#allocation4 + $0xeb8] sm:$0xf0]  ;;  %v4007_v47 = vadd.f32 %v6804_v11, %v4000_v30 }
 0x2fc   :  { %v6332_v54 = vld [vmem:[#allocation4 + $0x85c] sm:$0xf]  ;;  %v5904_v58 = vor.u32 %v6532_v42, %v5901_v43  ;;  %3974 = vmatpush.bf16.msrb.mxu2 %v5648_v53  ;;  %v3785_v31 = vpop.f32.mrf.mxu3 }
 0x2fd   :  { %v5101_v55 = vld [vmem:[#allocation4 + $0x878] sm:$0xf0] }
 0x2fe   :  { %v6396_v56 = vld [vmem:[#allocation4 + $0xa5c] sm:$0xf]  ;;  %v5104_v4 = vor.u32 %v6332_v54, %v5101_v55  ;;  %3987 = vmatpush.bf16.msrb.mxu3 %v5904_v58 }
 0x2ff   :  { %v5357_v59 = vld [vmem:[#allocation4 + $0xa78] sm:$0xf0] }
 0x300   :  { %v6460_v60 = vld [vmem:[#allocation4 + $0xc5c] sm:$0xf]  ;;  %v5360_v8 = vor.u32 %v6396_v56, %v5357_v59  ;;  %3949 = vmatpush.bf16.msrb.mxu0 %v5104_v4 }
 0x301   :  { %v5613_v61 = vld [vmem:[#allocation4 + $0xc78] sm:$0xf0] }
 0x302   :  { %v6524_v62 = vld [vmem:[#allocation4 + $0xe5c] sm:$0xf]  ;;  %v5616_v48 = vor.u32 %v6460_v60, %v5613_v61  ;;  %3962 = vmatpush.bf16.msrb.mxu1 %v5360_v8 }
 0x303   :  { %v5869_v2 = vld [vmem:[#allocation4 + $0xe78] sm:$0xf0] }
 0x304   :  { %v6324_v12 = vld [vmem:[#allocation4 + $0x81c] sm:$0xf]  ;;  %v5872_v16 = vor.u32 %v6524_v62, %v5869_v2  ;;  %3975 = vmatpush.bf16.msrb.mxu2 %v5616_v48  ;;  %v3835_v33 = vpop.f32.mrf.mxu3  ;;  %v594_v48 = vperm.slane %v6793_v10, 7 }
 0x305   :  { %v5069_v63 = vld [vmem:[#allocation4 + $0x838] sm:$0xf0] }
 0x306   :  { %v6388_v13 = vld [vmem:[#allocation4 + $0xa1c] sm:$0xf]  ;;  %v5072_v17 = vor.u32 %v6324_v12, %v5069_v63  ;;  %3988 = vmatpush.bf16.msrb.mxu3 %v5872_v16 }
 0x307   :  { %v5325_v15 = vld [vmem:[#allocation4 + $0xa38] sm:$0xf0] }
 0x308   :  { %v6452_v18 = vld [vmem:[#allocation4 + $0xc1c] sm:$0xf]  ;;  %v5328_v7 = vor.u32 %v6388_v13, %v5325_v15  ;;  %3950 = vmatpush.bf16.msrb.mxu0 %v5072_v17 }
 0x309   :  { %v5581_v19 = vld [vmem:[#allocation4 + $0xc38] sm:$0xf0] }
 0x30a   :  { %v6516_v20 = vld [vmem:[#allocation4 + $0xe1c] sm:$0xf]  ;;  %v5584_v0 = vor.u32 %v6452_v18, %v5581_v19  ;;  %3963 = vmatpush.bf16.msrb.mxu1 %v5328_v7 }
 0x30b   :  { %v5837_v21 = vld [vmem:[#allocation4 + $0xe38] sm:$0xf0]  ;;  %3951 = vmatmul.bf16.vlgmr.msrb.gmra.mxu0 %v6708_v37  ;;  %v3772_v37 = vpop.f32.mrf.mxu2 }
 0x30c   :  { %v5840_v5 = vor.u32 %v6516_v20, %v5837_v21  ;;  %3976 = vmatpush.bf16.msrb.mxu2 %v5584_v0  ;;  %v3837_v41 = vpop.f32.mrf.mxu3 }
 0x30d   :  { %3964 = vmatmul.bf16.vlgmr.msrb.gmra.mxu1 %v6712_v40  ;;  %v593_v40 = vperm.slane %v6793_v10, 6 }
 0x30e   :  { %3989 = vmatpush.bf16.msrb.mxu3 %v5840_v5 }
 0x30f   :  { %3977 = vmatmul.bf16.vlgmr.msrb.gmra.mxu2 %v6706_v34  ;;  %v3796_v34 = vpop.f32.mrf.mxu0 }
 0x310   :  { %v3797_v32 = vadd.f32 %v3796_v34, %v593_v40 }
 0x311   :  { %3990 = vmatmul.bf16.vlgmr.msrb.gmra.mxu3 %v6710_v38  ;;  %v3809_v38 = vpop.f32.mrf.mxu1 }
 0x312   :  { %v3810_v51 = vadd.f32 %v3809_v38, %v3797_v32 }
 0x313   :  { %v3822_v49 = vpop.f32.mrf.mxu2 }
 0x314   :  { %v3823_v50 = vadd.f32 %v3822_v49, %v3810_v51 }
 0x316   :  { %v3836_v35 = vadd.f32 %v3835_v33, %v3823_v50 }
 0x317   :  { %v3798_v36 = vpop.f32.mrf.mxu0 }
 0x319   :  { %v3811_v1 = vpop.f32.mrf.mxu1 }
 0x31b   :  { %v3824_v39 = vpop.f32.mrf.mxu2 }
 0x32c   :  { %v3848_v42 = vpop.f32.mrf.mxu0 }
 0x32d   :  { %v3849_v43 = vadd.f32 %v3848_v42, %v3836_v35 }
 0x32e   :  { %v3861_v44 = vpop.f32.mrf.mxu1 }
 0x32f   :  { %v3862_v11 = vadd.f32 %v3861_v44, %v3849_v43 }
 0x334   :  { %v3850_v54 = vpop.f32.mrf.mxu0 }
 0x336   :  { %v3874_v45 = vpop.f32.mrf.mxu2  ;;  %v3863_v55 = vpop.f32.mrf.mxu1 }
 0x337   :  { %v3875_v46 = vadd.f32 %v3874_v45, %v3862_v11 }
 0x338   :  { %v3887_v52 = vpop.f32.mrf.mxu3 }
 0x339   :  { %v3888_v53 = vadd.f32 %v3887_v52, %v3875_v46 }
 0x33b   :  { %v4001_v56 = vmax.f32 %v3888_v53, 0.0 }
 0x33d   :  { %v4008_v57 = vadd.f32 %v4007_v47, %v4001_v56 }
 0x33e   :  { %v3876_v58 = vpop.f32.mrf.mxu2 }
 0x340   :  { %v3889_v59 = vpop.f32.mrf.mxu3 }
 0x34c   :  { %v3900_v60 = vpop.f32.mrf.mxu0 }
 0x34d   :  { %v3901_v13 = vadd.f32 %v3900_v60, %v594_v48 }
 0x34e   :  { %v3913_v61 = vpop.f32.mrf.mxu1 }
 0x34f   :  { %v3914_v14 = vadd.f32 %v3913_v61, %v3901_v13 }
 0x354   :  { %v3902_v4 = vpop.f32.mrf.mxu0 }
 0x356   :  { %v3926_v62 = vpop.f32.mrf.mxu2  ;;  %v3915_v8 = vpop.f32.mrf.mxu1 }
 0x357   :  { %v3927_v16 = vadd.f32 %v3926_v62, %v3914_v14 }
 0x358   :  { %v3939_v2 = vpop.f32.mrf.mxu3 }
 0x359   :  { %v3940_v15 = vadd.f32 %v3939_v2, %v3927_v16 }
 0x35e   :  { %v3928_v12 = vpop.f32.mrf.mxu2 }
 0x360   :  { %v3941_v63 = vpop.f32.mrf.mxu3 }
 0x388   :  { %v3952_v18 = vpop.f32.mrf.mxu0 }
 0x389   :  { %v3953_v9 = vadd.f32 %v3952_v18, %v3940_v15 }
 0x38a   :  { %v3965_v19 = vpop.f32.mrf.mxu1 }
 0x38b   :  { %v3966_v20 = vadd.f32 %v3965_v19, %v3953_v9 }
 0x390   :  { %v3954_v0 = vpop.f32.mrf.mxu0 }
 0x392   :  { %v3978_v21 = vpop.f32.mrf.mxu2  ;;  %v3967_v5 = vpop.f32.mrf.mxu1 }
 0x393   :  { %v3979_v17 = vadd.f32 %v3978_v21, %v3966_v20 }
 0x394   :  { %v3991_v7 = vpop.f32.mrf.mxu3 }
 0x395   :  { %v3992_v22 = vadd.f32 %v3991_v7, %v3979_v17 }
 0x397   :  { %v4002_v23 = vmax.f32 %v3992_v22, 0.0 }
 0x399   :  { %v4009_v24 = vadd.f32 %v4008_v57, %v4002_v23 }
 0x39a   :  { %v3980_v6 = vpop.f32.mrf.mxu2 }
 0x39b   :  { %4010 = vst [vmem:[%s6824_s3] sm:$0xff] %v4009_v24 }
 0x39c   :  { %v3993_v10 = vpop.f32.mrf.mxu3 }
 0x39d   :  { %4015 = vsyncpa [#allocation3], 1 }
 0x39e   :  { %4016 = vsyncpa [#allocation5], 1 }

</bundles_post_ra>
